<compile_context>
chip_gen: v7x
topology: tpu7x:2x2x1
jax: 0.10.0
libtpu: 0.0.40
codegen_flags: <defaults>
</compile_context>

<pallas_src>
import functools

import jax
import jax.numpy as jnp
from jax.experimental import pallas as pl
from jax.experimental.pallas import tpu as pltpu


def word_lstm_kernel(
    # data inputs
    xt_ref, fc_ref, vval_ref, lval_ref, vkey_ref, lkey_ref, sh_ref, sc_ref,
    # parameters (matmul weights arrive in bf16; biases / cw2 in f32)
    w_att_ref, b_att_ref, w_lang_pre_ref, w_lang_ctx_ref, b_lang_ref,
    cw1_ref, cb1_ref, cw2_ref, cb2_ref,
    # outputs
    out_ref, vkey_out_ref, lkey_out_ref, cost_ref, sh_out_ref, sc_out_ref,
    *, max_att_step, epsilon):

    B, H = fc_ref.shape              # B = batch tile
    L = vval_ref.shape[1]
    f32 = jnp.float32

    def mm(x, w_ref):
        # bf16 MXU operands with f32 accumulation; elementwise math stays f32.
        w = w_ref[...]
        return jnp.dot(x.astype(w.dtype), w, preferred_element_type=f32)

    def lstm_gates(pre, c_prev):
        # Gate columns pre-permuted host-side to (i, f, o | g): one sigmoid
        # pass over 3H lanes + one tanh pass (2 EUP pushes per cell, not 4).
        s = jax.nn.sigmoid(pre[:, :3 * H])
        g = jnp.tanh(pre[:, 3 * H:])
        c = s[:, H:2 * H] * c_prev + s[:, :H] * g
        h = s[:, 2 * H:3 * H] * jnp.tanh(c)
        return h, c

    xt = xt_ref[...]
    fc = fc_ref[...]
    sh = sh_ref[...]
    sc = sc_ref[...]
    prev_h = sh[1]                        # state[0][-1]   (fixed across the loop)
    h0_att, c0_att = sh[0], sc[0]         # (state[0][0], state[1][0])
    h0_lang, c0_lang = sh[1], sc[1]       # (state[0][1], state[1][1])

    # ---- attention LSTM: every input is loop-invariant in the PyTorch source,
    # so compute the cell ONCE, as a single fused MXU matmul (weights stacked
    # host-side; rows ordered [prev_h | fc | xt | h0_att]).
    att_in = jnp.concatenate([prev_h, fc, xt, h0_att], axis=1)       # [B, E+3H]
    h_att, c_att = lstm_gates(mm(att_in, w_att_ref) + b_att_ref[...], c0_att)

    # ---- loop-invariant half of the language-LSTM gates, one fused matmul.
    lang_pre = (mm(jnp.concatenate([h_att, h0_lang], axis=1), w_lang_pre_ref)
                + b_lang_ref[...])                                   # [B, 4H]

    # Hoist broadcasts out of the unrolled loop (no CSE of broadcast_in_dim).
    cb1_b = jnp.broadcast_to(cb1_ref[...], (B, H))
    cw2_b = jnp.broadcast_to(cw2_ref[...], (B, H))
    cb2_b = jnp.broadcast_to(cb2_ref[...], (B, 1))

    vval = vval_ref[...]          # bf16 [B, L, H]
    lval = lval_ref[...]
    vkey_flat = vkey_ref[...]     # bf16 [B, L*H], lane-dense, read ONCE
    lkey_flat = lkey_ref[...]

    # ---- kv_attention stand-in: dot-product attention keyed on h_att.
    # TODO(synk): kv_attention / update_kv are externally supplied modules in
    # the PyTorch forward; these stand-ins keep the adaptive-halting control
    # flow exact but are not the real attention / key-update networks.
    h_att_b = h_att[:, None, :]
    v_scores = jnp.sum(vkey_flat.reshape(B, L, H).astype(f32) * h_att_b, axis=-1)
    l_scores = jnp.sum(lkey_flat.reshape(B, L, H).astype(f32) * h_att_b, axis=-1)

    accum_conf = jnp.zeros((B, 1), f32)
    att_cost = jnp.zeros((B, 1), f32)
    selector = jnp.ones((B, 1), f32)
    h_att_acc = jnp.zeros((B, H), f32)
    c_att_acc = jnp.zeros((B, H), f32)
    h_lang_acc = jnp.zeros((B, H), f32)
    c_lang_acc = jnp.zeros((B, H), f32)
    output_acc = jnp.zeros((B, H), f32)
    key_accum = jnp.zeros((B, H), f32)    # sum of outputs fed to update_kv

    # Static unrolled adaptive-computation loop (max_att_step is tiny).
    for i in range(max_att_step):
        # PyTorch breaks once selector is all-zero; per-row accumulations are
        # already selector-gated, so only the (ungated) key/score updates need
        # this flag to reproduce the early break exactly (per batch tile).
        any_active = jnp.max(selector, axis=0, keepdims=True)        # [1, 1]

        v_alpha = jax.nn.softmax(v_scores, axis=-1)
        l_alpha = jax.nn.softmax(l_scores, axis=-1)
        # Context reductions on the MXU (batched dot) instead of VPU multiply
        # + XLU sublane reduce: keeps the XLU free for the confidence / delta
        # lane reduces at realistic L.
        visual_context = jnp.einsum(
            'bql,blh->bqh', v_alpha[:, None, :].astype(vval.dtype), vval,
            preferred_element_type=f32)[:, 0, :]
        lang_context = jnp.einsum(
            'bql,blh->bqh', l_alpha[:, None, :].astype(lval.dtype), lval,
            preferred_element_type=f32)[:, 0, :]

        # ---- language LSTM: single fused matmul for the varying half.
        ctx = jnp.concatenate([visual_context, lang_context], axis=1)  # [B, 2H]
        h_lang, c_lang = lstm_gates(mm(ctx, w_lang_ctx_ref) + lang_pre, c0_lang)
        output = h_lang            # F.dropout(h_lang, p, training=False) == identity

        # ---- update_kv stand-in: key += 0.1 * output.  h_att is loop-invariant,
        # so its effect on next-step scores is a per-row scalar; apply it
        # incrementally instead of rewriting the [B, L, H] keys each iteration.
        key_accum = key_accum + any_active * output
        delta = 0.1 * jnp.sum(output * h_att, axis=-1, keepdims=True)   # [B, 1]
        v_scores = v_scores + any_active * delta
        l_scores = l_scores + any_active * delta

        # ---- confidence MLP: Linear -> ReLU -> Linear(H,1) -> Sigmoid.
        # Second layer as a VPU multiply + lane reduce (no [H,1] MXU matmul).
        hid = jnp.maximum(mm(h_lang, cw1_ref) + cb1_b, 0.0)
        p_ = jax.nn.sigmoid(jnp.sum(hid * cw2_b, axis=-1, keepdims=True) + cb2_b)

        # ---- adaptive accumulation
        beta = p_ * (1.0 - accum_conf)
        bs = beta * selector
        accum_conf = accum_conf + bs
        h_att_acc = h_att_acc + bs * h_att
        c_att_acc = c_att_acc + bs * c_att
        h_lang_acc = h_lang_acc + bs * h_lang
        c_lang_acc = c_lang_acc + bs * c_lang
        output_acc = output_acc + bs * output
        att_cost = att_cost + float(i + 1) * (1.0 - p_) * selector
        selector = (accum_conf < (1.0 - epsilon)).astype(f32) * selector

    # accum_conf > 0 is guaranteed (sigmoid > 0, selector starts at 1,
    # max_att_step >= 1), so the approximate EUP reciprocal is safe.
    inv = pl.reciprocal(accum_conf, approx=True)

    out_ref[...] = output_acc * inv
    cost_ref[...] = att_cost
    sh_out_ref[0, :, :] = h_att_acc * inv
    sh_out_ref[1, :, :] = h_lang_acc * inv
    sc_out_ref[0, :, :] = c_att_acc * inv
    sc_out_ref[1, :, :] = c_lang_acc * inv

    # Lane-dense [B, L*H] key outputs: the same 0.1*sum(outputs) update is
    # added to every region slot, so build it with a single broadcast+reshape
    # (not an L-way concatenate) and store unmasked.
    upd = jnp.broadcast_to((0.1 * key_accum)[:, None, :], (B, L, H)).reshape(B, L * H)
    vkey_out_ref[...] = (vkey_flat.astype(f32) + upd).astype(vkey_out_ref.dtype)
    lkey_out_ref[...] = (lkey_flat.astype(f32) + upd).astype(lkey_out_ref.dtype)


def make_params(key, E, H):
    """Deterministic parameter init matching PyTorch default shapes/inits,
    then fused + gate-permuted host-side for the kernel:
      * LSTM weights pre-transposed to [in, 4H],
      * input-hidden and hidden-hidden rows stacked so each cell is ONE matmul,
      * gate columns permuted (i,f,g,o) -> (i,f,o,g) so the kernel runs one
        sigmoid over 3H lanes and one tanh over H lanes."""
    ks = jax.random.split(key, 12)
    k_att = 1.0 / (H ** 0.5)

    def u(k, shape, scale):
        return jax.random.uniform(k, shape, jnp.float32, -scale, scale)

    # PyTorch-equivalent weights (transposed), gate order (i, f, g, o).
    wih_att = u(ks[0], (2 * H + E, 4 * H), k_att)   # rows [prev_h | fc | xt]
    whh_att = u(ks[1], (H, 4 * H), k_att)
    b_att = u(ks[2], (1, 4 * H), k_att) + u(ks[3], (1, 4 * H), k_att)   # b_ih+b_hh
    wih_lang = u(ks[4], (3 * H, 4 * H), k_att)      # rows [visual_ctx | lang_ctx | h_att]
    whh_lang = u(ks[5], (H, 4 * H), k_att)
    b_lang = u(ks[6], (1, 4 * H), k_att) + u(ks[7], (1, 4 * H), k_att)
    cw1 = u(ks[8], (H, H), 1.0 / (H ** 0.5))
    cb1 = u(ks[9], (1, H), 1.0 / (H ** 0.5))
    # Linear(H,1) weight kept in native PyTorch [out,in]=[1,H] layout so the
    # kernel uses a VPU multiply + lane reduce instead of an MXU matmul.
    cw2 = u(ks[10], (1, H), 1.0 / (H ** 0.5))
    cb2 = u(ks[11], (1, 1), 1.0 / (H ** 0.5))

    def perm_gates(w):           # columns (i,f,g,o) -> (i,f,o,g)
        i, f, g, o = jnp.split(w, 4, axis=-1)
        return jnp.concatenate([i, f, o, g], axis=-1)

    params = dict(
        # att cell: rows [prev_h | fc | xt | h0_att]  -> [E+3H, 4H]
        w_att=perm_gates(jnp.concatenate([wih_att, whh_att], axis=0)),
        b_att=perm_gates(b_att),
        # lang cell, loop-varying rows [visual_ctx | lang_ctx] -> [2H, 4H]
        w_lang_ctx=perm_gates(wih_lang[:2 * H]),
        # lang cell, loop-invariant rows [h_att | h0_lang]     -> [2H, 4H]
        w_lang_pre=perm_gates(jnp.concatenate([wih_lang[2 * H:], whh_lang], axis=0)),
        b_lang=perm_gates(b_lang),
        cw1=cw1, cb1=cb1, cw2=cw2, cb2=cb2,
    )
    # NOTE: self.update (Linear+ReLU) and self.att_step are defined in __init__
    # but never used in forward(), so they are omitted here.
    return params


def word_lstm_forward(params, xt, it, fc_feats, visual_value, visual_key,
                      lang_value, lang_key, kv_state, state,
                      *, max_att_step=3, epsilon=0.1):
    assert max_att_step >= 1
    B, E = xt.shape
    _, H = fc_feats.shape
    L = visual_key.shape[1]
    state_h, state_c = state

    def bf(a):
        return a.astype(jnp.bfloat16)

    # Keys/values live in bf16 in HBM (halves their DMA bytes); keys travel
    # exactly once, as the lane-dense [B, L*H] flat view.
    vval = bf(visual_value)
    lval = bf(lang_value)
    vkey_flat = bf(visual_key).reshape(B, L * H)
    lkey_flat = bf(lang_key).reshape(B, L * H)

    # Batch tiling: one program per TB rows.  For production batches this
    # shards across v7x's two TensorCores (dimension_semantics=parallel) and
    # keeps per-tile VMEM (bf16 key/value tiles, double-buffered) inside the
    # v7x 64 MiB budget; the demo batch runs as a single tile.
    TB = B if B <= 128 else 128
    assert B % TB == 0, "pad the batch to a multiple of the batch tile"
    grid = (B // TB,)

    def row(width):
        return pl.BlockSpec((TB, width), lambda b: (b, 0))

    def full(shape):
        return pl.BlockSpec(shape, lambda b: (0,) * len(shape))

    blh = pl.BlockSpec((TB, L, H), lambda b: (b, 0, 0))
    st = pl.BlockSpec((2, TB, H), lambda b: (0, b, 0))

    in_specs = [
        row(E),            # xt
        row(H),            # fc_feats
        blh,               # visual_value
        blh,               # lang_value
        row(L * H),        # visual_key flat
        row(L * H),        # lang_key flat
        st,                # state h
        st,                # state c
        full(params["w_att"].shape),
        full(params["b_att"].shape),
        full(params["w_lang_pre"].shape),
        full(params["w_lang_ctx"].shape),
        full(params["b_lang"].shape),
        full(params["cw1"].shape),
        full(params["cb1"].shape),
        full(params["cw2"].shape),
        full(params["cb2"].shape),
    ]
    out_specs = (
        row(H),            # output_
        row(L * H),        # visual_key out (flat, bf16)
        row(L * H),        # lang_key out (flat, bf16)
        row(1),            # att_cost
        st,                # state h out
        st,                # state c out
    )
    out_shapes = (
        jax.ShapeDtypeStruct((B, H), jnp.float32),
        jax.ShapeDtypeStruct((B, L * H), jnp.bfloat16),
        jax.ShapeDtypeStruct((B, L * H), jnp.bfloat16),
        jax.ShapeDtypeStruct((B, 1), jnp.float32),
        jax.ShapeDtypeStruct((2, B, H), jnp.float32),
        jax.ShapeDtypeStruct((2, B, H), jnp.float32),
    )

    kernel = functools.partial(word_lstm_kernel,
                               max_att_step=max_att_step, epsilon=epsilon)

    args = (xt, fc_feats, vval, lval, vkey_flat, lkey_flat, state_h, state_c,
            bf(params["w_att"]), params["b_att"],
            bf(params["w_lang_pre"]), bf(params["w_lang_ctx"]), params["b_lang"],
            bf(params["cw1"]), params["cb1"], params["cw2"], params["cb2"])

    (output_, vkeyf_out, lkeyf_out, att_cost, sh_out, sc_out) = pl.pallas_call(
        kernel,
        grid=grid,
        out_shape=out_shapes,
        in_specs=in_specs,
        out_specs=out_specs,
        compiler_params=pltpu.CompilerParams(
            dimension_semantics=("parallel",)),
    )(*args)

    # word_exist gating and the kv_state pass-through are pure wrapper work;
    # keeping them out of the kernel removes an input DMA, a 1-lane masked
    # store, and an HBM->VMEM->HBM round trip.
    word_exist = (it.reshape(B) > 0).astype(jnp.float32)
    att_cost = att_cost[:, 0] * word_exist

    new_state = (sh_out, sc_out)
    vkey_out = vkeyf_out.reshape(B, L, H).astype(visual_key.dtype)
    lkey_out = lkeyf_out.reshape(B, L, H).astype(lang_key.dtype)
    return output_, vkey_out, lkey_out, att_cost, new_state, kv_state


if __name__ == "__main__":
    B, E, H, L = 4, 32, 32, 8        # batch, word_encoding_size, word_rnn_size, #regions
    max_att_step = 3
    epsilon = 0.1

    root = jax.random.PRNGKey(0)
    kp, kd = jax.random.split(root)
    params = make_params(kp, E, H)

    dk = jax.random.split(kd, 9)
    xt = jax.random.normal(dk[0], (B, E), jnp.float32)
    it = jnp.array([1, 0, 5, 3], dtype=jnp.int32)            # word ids (0 => padding)
    fc_feats = jax.random.normal(dk[1], (B, H), jnp.float32)
    visual_value = jax.random.normal(dk[2], (B, L, H), jnp.float32)
    visual_key = jax.random.normal(dk[3], (B, L, H), jnp.float32)
    lang_value = jax.random.normal(dk[4], (B, L, H), jnp.float32)
    lang_key = jax.random.normal(dk[5], (B, L, H), jnp.float32)
    kv_state = jax.random.normal(dk[6], (B, H), jnp.float32)
    state = (jax.random.normal(dk[7], (2, B, H), jnp.float32),
             jax.random.normal(dk[8], (2, B, H), jnp.float32))

    out = word_lstm_forward(params, xt, it, fc_feats, visual_value, visual_key,
                            lang_value, lang_key, kv_state, state,
                            max_att_step=max_att_step, epsilon=epsilon)
    jax.block_until_ready(out)

    output_, vkey_out, lkey_out, att_cost, new_state, kv_state_out = out
    assert output_.shape == (B, H)
    assert vkey_out.shape == (B, L, H) and lkey_out.shape == (B, L, H)
    assert att_cost.shape == (B,)
    assert new_state[0].shape == (2, B, H) and new_state[1].shape == (2, B, H)
    assert kv_state_out.shape == (B, H)
    assert bool(jnp.all(jnp.isfinite(output_)))
    print("KERNEL_OK")
</pallas_src>

<mosaic_0001>
module attributes {stable_mosaic.version = 11 : i64} {
  func.func @word_lstm_kernel(%arg0: i32, %arg1: memref<4x32xf32, #tpu.memory_space<vmem>>, %arg2: memref<4x32xf32, #tpu.memory_space<vmem>>, %arg3: memref<4x8x32xbf16, #tpu.memory_space<vmem>>, %arg4: memref<4x8x32xbf16, #tpu.memory_space<vmem>>, %arg5: memref<4x256xbf16, #tpu.memory_space<vmem>>, %arg6: memref<4x256xbf16, #tpu.memory_space<vmem>>, %arg7: memref<2x4x32xf32, #tpu.memory_space<vmem>>, %arg8: memref<2x4x32xf32, #tpu.memory_space<vmem>>, %arg9: memref<128x128xbf16, #tpu.memory_space<vmem>>, %arg10: memref<1x128xf32, #tpu.memory_space<vmem>>, %arg11: memref<64x128xbf16, #tpu.memory_space<vmem>>, %arg12: memref<64x128xbf16, #tpu.memory_space<vmem>>, %arg13: memref<1x128xf32, #tpu.memory_space<vmem>>, %arg14: memref<32x32xbf16, #tpu.memory_space<vmem>>, %arg15: memref<1x32xf32, #tpu.memory_space<vmem>>, %arg16: memref<1x32xf32, #tpu.memory_space<vmem>>, %arg17: memref<1x1xf32, #tpu.memory_space<vmem>>, %arg18: memref<4x32xf32, #tpu.memory_space<vmem>>, %arg19: memref<4x256xbf16, #tpu.memory_space<vmem>>, %arg20: memref<4x256xbf16, #tpu.memory_space<vmem>>, %arg21: memref<4x1xf32, #tpu.memory_space<vmem>>, %arg22: memref<2x4x32xf32, #tpu.memory_space<vmem>>, %arg23: memref<2x4x32xf32, #tpu.memory_space<vmem>>) attributes {dimension_semantics = [#tpu.dimension_semantics<parallel>], iteration_bounds = array<i64: 1>, scalar_prefetch = 0 : i64, scratch_operands = 0 : i64, tpu.core_type = #tpu.core_type<tc>, window_params = [{transform_indices = @transform_0, window_bounds = array<i64: 4, 32>}, {transform_indices = @transform_1, window_bounds = array<i64: 4, 32>}, {transform_indices = @transform_2, window_bounds = array<i64: 4, 8, 32>}, {transform_indices = @transform_3, window_bounds = array<i64: 4, 8, 32>}, {transform_indices = @transform_4, window_bounds = array<i64: 4, 256>}, {transform_indices = @transform_5, window_bounds = array<i64: 4, 256>}, {transform_indices = @transform_6, window_bounds = array<i64: 2, 4, 32>}, {transform_indices = @transform_7, window_bounds = array<i64: 2, 4, 32>}, {pipeline_mode = #tpu.pipeline_mode<synchronous>, transform_indices = @transform_8, window_bounds = array<i64: 128, 128>}, {pipeline_mode = #tpu.pipeline_mode<synchronous>, transform_indices = @transform_9, window_bounds = array<i64: 1, 128>}, {pipeline_mode = #tpu.pipeline_mode<synchronous>, transform_indices = @transform_10, window_bounds = array<i64: 64, 128>}, {pipeline_mode = #tpu.pipeline_mode<synchronous>, transform_indices = @transform_11, window_bounds = array<i64: 64, 128>}, {pipeline_mode = #tpu.pipeline_mode<synchronous>, transform_indices = @transform_12, window_bounds = array<i64: 1, 128>}, {pipeline_mode = #tpu.pipeline_mode<synchronous>, transform_indices = @transform_13, window_bounds = array<i64: 32, 32>}, {pipeline_mode = #tpu.pipeline_mode<synchronous>, transform_indices = @transform_14, window_bounds = array<i64: 1, 32>}, {pipeline_mode = #tpu.pipeline_mode<synchronous>, transform_indices = @transform_15, window_bounds = array<i64: 1, 32>}, {pipeline_mode = #tpu.pipeline_mode<synchronous>, transform_indices = @transform_16, window_bounds = array<i64: 1, 1>}, {transform_indices = @transform_17, window_bounds = array<i64: 4, 32>}, {transform_indices = @transform_18, window_bounds = array<i64: 4, 256>}, {transform_indices = @transform_19, window_bounds = array<i64: 4, 256>}, {transform_indices = @transform_20, window_bounds = array<i64: 4, 1>}, {transform_indices = @transform_21, window_bounds = array<i64: 2, 4, 32>}, {transform_indices = @transform_22, window_bounds = array<i64: 2, 4, 32>}]} {
    %c0 = arith.constant 0 : index
    %c0_0 = arith.constant 0 : index
    %0 = vector.load %arg1[%c0, %c0_0] : memref<4x32xf32, #tpu.memory_space<vmem>>, vector<4x32xf32>
    %c0_1 = arith.constant 0 : index
    %c0_2 = arith.constant 0 : index
    %1 = vector.load %arg2[%c0_1, %c0_2] : memref<4x32xf32, #tpu.memory_space<vmem>>, vector<4x32xf32>
    %c0_3 = arith.constant 0 : index
    %c0_4 = arith.constant 0 : index
    %c0_5 = arith.constant 0 : index
    %2 = vector.load %arg7[%c0_3, %c0_4, %c0_5] : memref<2x4x32xf32, #tpu.memory_space<vmem>>, vector<2x4x32xf32>
    %c0_6 = arith.constant 0 : index
    %c0_7 = arith.constant 0 : index
    %c0_8 = arith.constant 0 : index
    %3 = vector.load %arg8[%c0_6, %c0_7, %c0_8] : memref<2x4x32xf32, #tpu.memory_space<vmem>>, vector<2x4x32xf32>
    %4 = vector.extract_strided_slice %2 {offsets = [1, 0, 0], sizes = [1, 4, 32], strides = [1, 1, 1]} : vector<2x4x32xf32> to vector<1x4x32xf32>
    %5 = vector.shape_cast %4 : vector<1x4x32xf32> to vector<4x32xf32>
    %6 = vector.extract_strided_slice %2 {offsets = [0, 0, 0], sizes = [1, 4, 32], strides = [1, 1, 1]} : vector<2x4x32xf32> to vector<1x4x32xf32>
    %7 = vector.shape_cast %6 : vector<1x4x32xf32> to vector<4x32xf32>
    %8 = vector.extract_strided_slice %3 {offsets = [0, 0, 0], sizes = [1, 4, 32], strides = [1, 1, 1]} : vector<2x4x32xf32> to vector<1x4x32xf32>
    %9 = vector.shape_cast %8 : vector<1x4x32xf32> to vector<4x32xf32>
    %10 = vector.extract_strided_slice %2 {offsets = [1, 0, 0], sizes = [1, 4, 32], strides = [1, 1, 1]} : vector<2x4x32xf32> to vector<1x4x32xf32>
    %11 = vector.shape_cast %10 : vector<1x4x32xf32> to vector<4x32xf32>
    %12 = vector.extract_strided_slice %3 {offsets = [1, 0, 0], sizes = [1, 4, 32], strides = [1, 1, 1]} : vector<2x4x32xf32> to vector<1x4x32xf32>
    %13 = vector.shape_cast %12 : vector<1x4x32xf32> to vector<4x32xf32>
    %14 = tpu.concatenate %5, %1, %0, %7 in 1 : vector<4x32xf32>, vector<4x32xf32>, vector<4x32xf32>, vector<4x32xf32> -> vector<4x128xf32>
    %c0_9 = arith.constant 0 : index
    %c0_10 = arith.constant 0 : index
    %15 = vector.load %arg9[%c0_9, %c0_10] : memref<128x128xbf16, #tpu.memory_space<vmem>>, vector<128x128xbf16>
    %16 = arith.truncf %14 : vector<4x128xf32> to vector<4x128xbf16>
    %cst = arith.constant dense<0.000000e+00> : vector<4x128xf32>
    %17 = tpu.matmul %16, %15, %cst {dimension_numbers = #tpu.dot_dimension_numbers<[1], [0], [0], [1], [0, 0, 1, 1], [], []>} : vector<4x128xbf16>, vector<128x128xbf16>, vector<4x128xf32> -> vector<4x128xf32>
    %c0_11 = arith.constant 0 : index
    %c0_12 = arith.constant 0 : index
    %18 = vector.load %arg10[%c0_11, %c0_12] : memref<1x128xf32, #tpu.memory_space<vmem>>, vector<1x128xf32>
    %19 = vector.broadcast %18 : vector<1x128xf32> to vector<4x128xf32>
    %20 = arith.addf %17, %19 : vector<4x128xf32>
    %21 = vector.extract_strided_slice %20 {offsets = [0, 0], sizes = [4, 96], strides = [1, 1]} : vector<4x128xf32> to vector<4x96xf32>
    %22 = arith.negf %21 : vector<4x96xf32>
    %23 = math.exp %22 : vector<4x96xf32>
    %cst_13 = arith.constant 1.000000e+00 : f32
    %24 = vector.broadcast %cst_13 : f32 to vector<4x96xf32>
    %25 = arith.addf %24, %23 : vector<4x96xf32>
    %26 = arith.divf %24, %25 : vector<4x96xf32>
    %27 = vector.extract_strided_slice %20 {offsets = [0, 96], sizes = [4, 32], strides = [1, 1]} : vector<4x128xf32> to vector<4x32xf32>
    %28 = math.tanh %27 : vector<4x32xf32>
    %29 = vector.extract_strided_slice %26 {offsets = [0, 32], sizes = [4, 32], strides = [1, 1]} : vector<4x96xf32> to vector<4x32xf32>
    %30 = arith.mulf %29, %9 : vector<4x32xf32>
    %31 = vector.extract_strided_slice %26 {offsets = [0, 0], sizes = [4, 32], strides = [1, 1]} : vector<4x96xf32> to vector<4x32xf32>
    %32 = arith.mulf %31, %28 : vector<4x32xf32>
    %33 = arith.addf %30, %32 : vector<4x32xf32>
    %34 = vector.extract_strided_slice %26 {offsets = [0, 64], sizes = [4, 32], strides = [1, 1]} : vector<4x96xf32> to vector<4x32xf32>
    %35 = math.tanh %33 : vector<4x32xf32>
    %36 = arith.mulf %34, %35 : vector<4x32xf32>
    %37 = tpu.concatenate %36, %11 in 1 : vector<4x32xf32>, vector<4x32xf32> -> vector<4x64xf32>
    %c0_14 = arith.constant 0 : index
    %c0_15 = arith.constant 0 : index
    %38 = vector.load %arg11[%c0_14, %c0_15] : memref<64x128xbf16, #tpu.memory_space<vmem>>, vector<64x128xbf16>
    %39 = arith.truncf %37 : vector<4x64xf32> to vector<4x64xbf16>
    %cst_16 = arith.constant dense<0.000000e+00> : vector<4x128xf32>
    %40 = tpu.matmul %39, %38, %cst_16 {dimension_numbers = #tpu.dot_dimension_numbers<[1], [0], [0], [1], [0, 0, 1, 1], [], []>} : vector<4x64xbf16>, vector<64x128xbf16>, vector<4x128xf32> -> vector<4x128xf32>
    %c0_17 = arith.constant 0 : index
    %c0_18 = arith.constant 0 : index
    %41 = vector.load %arg13[%c0_17, %c0_18] : memref<1x128xf32, #tpu.memory_space<vmem>>, vector<1x128xf32>
    %42 = vector.broadcast %41 : vector<1x128xf32> to vector<4x128xf32>
    %43 = arith.addf %40, %42 : vector<4x128xf32>
    %c0_19 = arith.constant 0 : index
    %c0_20 = arith.constant 0 : index
    %44 = vector.load %arg15[%c0_19, %c0_20] : memref<1x32xf32, #tpu.memory_space<vmem>>, vector<1x32xf32>
    %45 = vector.shape_cast %44 : vector<1x32xf32> to vector<1x32xf32>
    %46 = vector.broadcast %45 : vector<1x32xf32> to vector<4x32xf32>
    %c0_21 = arith.constant 0 : index
    %c0_22 = arith.constant 0 : index
    %47 = vector.load %arg16[%c0_21, %c0_22] : memref<1x32xf32, #tpu.memory_space<vmem>>, vector<1x32xf32>
    %48 = vector.shape_cast %47 : vector<1x32xf32> to vector<1x32xf32>
    %49 = vector.broadcast %48 : vector<1x32xf32> to vector<4x32xf32>
    %c0_23 = arith.constant 0 : index
    %c0_24 = arith.constant 0 : index
    %50 = vector.load %arg17[%c0_23, %c0_24] : memref<1x1xf32, #tpu.memory_space<vmem>>, vector<1x1xf32>
    %51 = vector.shape_cast %50 : vector<1x1xf32> to vector<1x1xf32>
    %52 = vector.broadcast %51 : vector<1x1xf32> to vector<4x1xf32>
    %c0_25 = arith.constant 0 : index
    %c0_26 = arith.constant 0 : index
    %c0_27 = arith.constant 0 : index
    %53 = vector.load %arg3[%c0_25, %c0_26, %c0_27] : memref<4x8x32xbf16, #tpu.memory_space<vmem>>, vector<4x8x32xbf16>
    %c0_28 = arith.constant 0 : index
    %c0_29 = arith.constant 0 : index
    %c0_30 = arith.constant 0 : index
    %54 = vector.load %arg4[%c0_28, %c0_29, %c0_30] : memref<4x8x32xbf16, #tpu.memory_space<vmem>>, vector<4x8x32xbf16>
    %c0_31 = arith.constant 0 : index
    %c0_32 = arith.constant 0 : index
    %55 = vector.load %arg5[%c0_31, %c0_32] : memref<4x256xbf16, #tpu.memory_space<vmem>>, vector<4x256xbf16>
    %c0_33 = arith.constant 0 : index
    %c0_34 = arith.constant 0 : index
    %56 = vector.load %arg6[%c0_33, %c0_34] : memref<4x256xbf16, #tpu.memory_space<vmem>>, vector<4x256xbf16>
    %57 = vector.shape_cast %36 : vector<4x32xf32> to vector<4x1x32xf32>
    %58 = vector.shape_cast %55 : vector<4x256xbf16> to vector<4x8x32xbf16>
    %59 = arith.extf %58 : vector<4x8x32xbf16> to vector<4x8x32xf32>
    %60 = vector.broadcast %57 : vector<4x1x32xf32> to vector<4x8x32xf32>
    %61 = arith.mulf %59, %60 : vector<4x8x32xf32>
    %cst_35 = arith.constant dense<0.000000e+00> : vector<4x8xf32>
    %62 = vector.multi_reduction <add>, %61, %cst_35 [2] : vector<4x8x32xf32> to vector<4x8xf32>
    %63 = vector.shape_cast %56 : vector<4x256xbf16> to vector<4x8x32xbf16>
    %64 = arith.extf %63 : vector<4x8x32xbf16> to vector<4x8x32xf32>
    %65 = vector.broadcast %57 : vector<4x1x32xf32> to vector<4x8x32xf32>
    %66 = arith.mulf %64, %65 : vector<4x8x32xf32>
    %cst_36 = arith.constant dense<0.000000e+00> : vector<4x8xf32>
    %67 = vector.multi_reduction <add>, %66, %cst_36 [2] : vector<4x8x32xf32> to vector<4x8xf32>
    %cst_37 = arith.constant 0.000000e+00 : f32
    %68 = vector.broadcast %cst_37 : f32 to vector<4x1xf32>
    %cst_38 = arith.constant 0.000000e+00 : f32
    %69 = vector.broadcast %cst_38 : f32 to vector<4x1xf32>
    %cst_39 = arith.constant 1.000000e+00 : f32
    %70 = vector.broadcast %cst_39 : f32 to vector<4x1xf32>
    %cst_40 = arith.constant 0.000000e+00 : f32
    %71 = vector.broadcast %cst_40 : f32 to vector<4x32xf32>
    %cst_41 = arith.constant 0.000000e+00 : f32
    %72 = vector.broadcast %cst_41 : f32 to vector<4x32xf32>
    %cst_42 = arith.constant 0.000000e+00 : f32
    %73 = vector.broadcast %cst_42 : f32 to vector<4x32xf32>
    %cst_43 = arith.constant 0.000000e+00 : f32
    %74 = vector.broadcast %cst_43 : f32 to vector<4x32xf32>
    %cst_44 = arith.constant 0.000000e+00 : f32
    %75 = vector.broadcast %cst_44 : f32 to vector<4x32xf32>
    %cst_45 = arith.constant 0.000000e+00 : f32
    %76 = vector.broadcast %cst_45 : f32 to vector<4x32xf32>
    %cst_46 = arith.constant dense<0xFF800000> : vector<1xf32>
    %77 = vector.multi_reduction <maximumf>, %70, %cst_46 [0] : vector<4x1xf32> to vector<1xf32>
    %78 = vector.shape_cast %77 : vector<1xf32> to vector<1x1xf32>
    %cst_47 = arith.constant dense<0xFF800000> : vector<4xf32>
    %79 = vector.multi_reduction <maximumf>, %62, %cst_47 [1] : vector<4x8xf32> to vector<4xf32>
    %cst_48 = arith.constant 0xFF800000 : f32
    %80 = vector.broadcast %cst_48 : f32 to vector<4xf32>
    %81 = arith.maximumf %80, %79 : vector<4xf32>
    %82 = vector.shape_cast %81 : vector<4xf32> to vector<4x1xf32>
    %83 = vector.broadcast %82 : vector<4x1xf32> to vector<4x8xf32>
    %84 = arith.subf %62, %83 : vector<4x8xf32>
    %85 = math.exp %84 : vector<4x8xf32>
    %cst_49 = arith.constant dense<0.000000e+00> : vector<4xf32>
    %86 = vector.multi_reduction <add>, %85, %cst_49 [1] : vector<4x8xf32> to vector<4xf32>
    %87 = vector.shape_cast %86 : vector<4xf32> to vector<4x1xf32>
    %88 = vector.broadcast %87 : vector<4x1xf32> to vector<4x8xf32>
    %89 = arith.divf %85, %88 : vector<4x8xf32>
    %cst_50 = arith.constant dense<0xFF800000> : vector<4xf32>
    %90 = vector.multi_reduction <maximumf>, %67, %cst_50 [1] : vector<4x8xf32> to vector<4xf32>
    %cst_51 = arith.constant 0xFF800000 : f32
    %91 = vector.broadcast %cst_51 : f32 to vector<4xf32>
    %92 = arith.maximumf %91, %90 : vector<4xf32>
    %93 = vector.shape_cast %92 : vector<4xf32> to vector<4x1xf32>
    %94 = vector.broadcast %93 : vector<4x1xf32> to vector<4x8xf32>
    %95 = arith.subf %67, %94 : vector<4x8xf32>
    %96 = math.exp %95 : vector<4x8xf32>
    %cst_52 = arith.constant dense<0.000000e+00> : vector<4xf32>
    %97 = vector.multi_reduction <add>, %96, %cst_52 [1] : vector<4x8xf32> to vector<4xf32>
    %98 = vector.shape_cast %97 : vector<4xf32> to vector<4x1xf32>
    %99 = vector.broadcast %98 : vector<4x1xf32> to vector<4x8xf32>
    %100 = arith.divf %96, %99 : vector<4x8xf32>
    %101 = vector.shape_cast %89 : vector<4x8xf32> to vector<4x1x8xf32>
    %102 = arith.truncf %101 : vector<4x1x8xf32> to vector<4x1x8xbf16>
    "tpu.trace_start"() <{level = 10 : i32, message = "bql,blh->bqh"}> : () -> ()
    %cst_53 = arith.constant dense<0.000000e+00> : vector<4x1x32xf32>
    %103 = tpu.matmul %102, %53, %cst_53 {dimension_numbers = #tpu.dot_dimension_numbers<[2], [1], [1], [2], [0, 0, 0, 1, 1, 2], [0], [0]>} : vector<4x1x8xbf16>, vector<4x8x32xbf16>, vector<4x1x32xf32> -> vector<4x1x32xf32>
    "tpu.trace_stop"() : () -> ()
    %104 = vector.shape_cast %103 : vector<4x1x32xf32> to vector<4x32xf32>
    %105 = vector.shape_cast %100 : vector<4x8xf32> to vector<4x1x8xf32>
    %106 = arith.truncf %105 : vector<4x1x8xf32> to vector<4x1x8xbf16>
    "tpu.trace_start"() <{level = 10 : i32, message = "bql,blh->bqh"}> : () -> ()
    %cst_54 = arith.constant dense<0.000000e+00> : vector<4x1x32xf32>
    %107 = tpu.matmul %106, %54, %cst_54 {dimension_numbers = #tpu.dot_dimension_numbers<[2], [1], [1], [2], [0, 0, 0, 1, 1, 2], [0], [0]>} : vector<4x1x8xbf16>, vector<4x8x32xbf16>, vector<4x1x32xf32> -> vector<4x1x32xf32>
    "tpu.trace_stop"() : () -> ()
    %108 = vector.shape_cast %107 : vector<4x1x32xf32> to vector<4x32xf32>
    %109 = tpu.concatenate %104, %108 in 1 : vector<4x32xf32>, vector<4x32xf32> -> vector<4x64xf32>
    %c0_55 = arith.constant 0 : index
    %c0_56 = arith.constant 0 : index
    %110 = vector.load %arg12[%c0_55, %c0_56] : memref<64x128xbf16, #tpu.memory_space<vmem>>, vector<64x128xbf16>
    %111 = arith.truncf %109 : vector<4x64xf32> to vector<4x64xbf16>
    %cst_57 = arith.constant dense<0.000000e+00> : vector<4x128xf32>
    %112 = tpu.matmul %111, %110, %cst_57 {dimension_numbers = #tpu.dot_dimension_numbers<[1], [0], [0], [1], [0, 0, 1, 1], [], []>} : vector<4x64xbf16>, vector<64x128xbf16>, vector<4x128xf32> -> vector<4x128xf32>
    %113 = arith.addf %112, %43 : vector<4x128xf32>
    %114 = vector.extract_strided_slice %113 {offsets = [0, 0], sizes = [4, 96], strides = [1, 1]} : vector<4x128xf32> to vector<4x96xf32>
    %115 = arith.negf %114 : vector<4x96xf32>
    %116 = math.exp %115 : vector<4x96xf32>
    %cst_58 = arith.constant 1.000000e+00 : f32
    %117 = vector.broadcast %cst_58 : f32 to vector<4x96xf32>
    %118 = arith.addf %117, %116 : vector<4x96xf32>
    %119 = arith.divf %117, %118 : vector<4x96xf32>
    %120 = vector.extract_strided_slice %113 {offsets = [0, 96], sizes = [4, 32], strides = [1, 1]} : vector<4x128xf32> to vector<4x32xf32>
    %121 = math.tanh %120 : vector<4x32xf32>
    %122 = vector.extract_strided_slice %119 {offsets = [0, 32], sizes = [4, 32], strides = [1, 1]} : vector<4x96xf32> to vector<4x32xf32>
    %123 = arith.mulf %122, %13 : vector<4x32xf32>
    %124 = vector.extract_strided_slice %119 {offsets = [0, 0], sizes = [4, 32], strides = [1, 1]} : vector<4x96xf32> to vector<4x32xf32>
    %125 = arith.mulf %124, %121 : vector<4x32xf32>
    %126 = arith.addf %123, %125 : vector<4x32xf32>
    %127 = vector.extract_strided_slice %119 {offsets = [0, 64], sizes = [4, 32], strides = [1, 1]} : vector<4x96xf32> to vector<4x32xf32>
    %128 = math.tanh %126 : vector<4x32xf32>
    %129 = arith.mulf %127, %128 : vector<4x32xf32>
    %130 = vector.broadcast %78 : vector<1x1xf32> to vector<4x32xf32>
    %131 = arith.mulf %130, %129 : vector<4x32xf32>
    %132 = arith.addf %76, %131 : vector<4x32xf32>
    %133 = arith.mulf %129, %36 : vector<4x32xf32>
    %cst_59 = arith.constant dense<0.000000e+00> : vector<4xf32>
    %134 = vector.multi_reduction <add>, %133, %cst_59 [1] : vector<4x32xf32> to vector<4xf32>
    %135 = vector.shape_cast %134 : vector<4xf32> to vector<4x1xf32>
    %cst_60 = arith.constant 1.000000e-01 : f32
    %136 = vector.broadcast %cst_60 : f32 to vector<4x1xf32>
    %137 = arith.mulf %136, %135 : vector<4x1xf32>
    %138 = vector.broadcast %78 : vector<1x1xf32> to vector<4x1xf32>
    %139 = arith.mulf %138, %137 : vector<4x1xf32>
    %140 = vector.broadcast %139 : vector<4x1xf32> to vector<4x8xf32>
    %141 = arith.addf %62, %140 : vector<4x8xf32>
    %142 = vector.broadcast %78 : vector<1x1xf32> to vector<4x1xf32>
    %143 = arith.mulf %142, %137 : vector<4x1xf32>
    %144 = vector.broadcast %143 : vector<4x1xf32> to vector<4x8xf32>
    %145 = arith.addf %67, %144 : vector<4x8xf32>
    %c0_61 = arith.constant 0 : index
    %c0_62 = arith.constant 0 : index
    %146 = vector.load %arg14[%c0_61, %c0_62] : memref<32x32xbf16, #tpu.memory_space<vmem>>, vector<32x32xbf16>
    %147 = arith.truncf %129 : vector<4x32xf32> to vector<4x32xbf16>
    %cst_63 = arith.constant dense<0.000000e+00> : vector<4x32xf32>
    %148 = tpu.matmul %147, %146, %cst_63 {dimension_numbers = #tpu.dot_dimension_numbers<[1], [0], [0], [1], [0, 0, 1, 1], [], []>} : vector<4x32xbf16>, vector<32x32xbf16>, vector<4x32xf32> -> vector<4x32xf32>
    %149 = arith.addf %148, %46 : vector<4x32xf32>
    %cst_64 = arith.constant 0.000000e+00 : f32
    %150 = vector.broadcast %cst_64 : f32 to vector<4x32xf32>
    %151 = arith.maximumf %149, %150 : vector<4x32xf32>
    %152 = arith.mulf %151, %49 : vector<4x32xf32>
    %cst_65 = arith.constant dense<0.000000e+00> : vector<4xf32>
    %153 = vector.multi_reduction <add>, %152, %cst_65 [1] : vector<4x32xf32> to vector<4xf32>
    %154 = vector.shape_cast %153 : vector<4xf32> to vector<4x1xf32>
    %155 = arith.addf %154, %52 : vector<4x1xf32>
    %156 = arith.negf %155 : vector<4x1xf32>
    %157 = math.exp %156 : vector<4x1xf32>
    %cst_66 = arith.constant 1.000000e+00 : f32
    %158 = vector.broadcast %cst_66 : f32 to vector<4x1xf32>
    %159 = arith.addf %158, %157 : vector<4x1xf32>
    %160 = arith.divf %158, %159 : vector<4x1xf32>
    %cst_67 = arith.constant 1.000000e+00 : f32
    %161 = vector.broadcast %cst_67 : f32 to vector<4x1xf32>
    %162 = arith.subf %161, %68 : vector<4x1xf32>
    %163 = arith.mulf %160, %162 : vector<4x1xf32>
    %164 = arith.mulf %163, %70 : vector<4x1xf32>
    %165 = arith.addf %68, %164 : vector<4x1xf32>
    %166 = vector.broadcast %164 : vector<4x1xf32> to vector<4x32xf32>
    %167 = arith.mulf %166, %36 : vector<4x32xf32>
    %168 = arith.addf %71, %167 : vector<4x32xf32>
    %169 = vector.broadcast %164 : vector<4x1xf32> to vector<4x32xf32>
    %170 = arith.mulf %169, %33 : vector<4x32xf32>
    %171 = arith.addf %72, %170 : vector<4x32xf32>
    %172 = vector.broadcast %164 : vector<4x1xf32> to vector<4x32xf32>
    %173 = arith.mulf %172, %129 : vector<4x32xf32>
    %174 = arith.addf %73, %173 : vector<4x32xf32>
    %175 = vector.broadcast %164 : vector<4x1xf32> to vector<4x32xf32>
    %176 = arith.mulf %175, %126 : vector<4x32xf32>
    %177 = arith.addf %74, %176 : vector<4x32xf32>
    %178 = vector.broadcast %164 : vector<4x1xf32> to vector<4x32xf32>
    %179 = arith.mulf %178, %129 : vector<4x32xf32>
    %180 = arith.addf %75, %179 : vector<4x32xf32>
    %cst_68 = arith.constant 1.000000e+00 : f32
    %181 = vector.broadcast %cst_68 : f32 to vector<4x1xf32>
    %182 = arith.subf %181, %160 : vector<4x1xf32>
    %cst_69 = arith.constant 1.000000e+00 : f32
    %183 = vector.broadcast %cst_69 : f32 to vector<4x1xf32>
    %184 = arith.mulf %183, %182 : vector<4x1xf32>
    %185 = arith.mulf %184, %70 : vector<4x1xf32>
    %186 = arith.addf %69, %185 : vector<4x1xf32>
    %cst_70 = arith.constant 0.899999976 : f32
    %187 = vector.broadcast %cst_70 : f32 to vector<4x1xf32>
    %188 = arith.cmpf olt, %165, %187 : vector<4x1xf32>
    %189 = arith.extui %188 : vector<4x1xi1> to vector<4x1xi32>
    %190 = arith.sitofp %189 : vector<4x1xi32> to vector<4x1xf32>
    %191 = arith.mulf %190, %70 : vector<4x1xf32>
    %cst_71 = arith.constant dense<0xFF800000> : vector<1xf32>
    %192 = vector.multi_reduction <maximumf>, %191, %cst_71 [0] : vector<4x1xf32> to vector<1xf32>
    %193 = vector.shape_cast %192 : vector<1xf32> to vector<1x1xf32>
    %cst_72 = arith.constant dense<0xFF800000> : vector<4xf32>
    %194 = vector.multi_reduction <maximumf>, %141, %cst_72 [1] : vector<4x8xf32> to vector<4xf32>
    %cst_73 = arith.constant 0xFF800000 : f32
    %195 = vector.broadcast %cst_73 : f32 to vector<4xf32>
    %196 = arith.maximumf %195, %194 : vector<4xf32>
    %197 = vector.shape_cast %196 : vector<4xf32> to vector<4x1xf32>
    %198 = vector.broadcast %197 : vector<4x1xf32> to vector<4x8xf32>
    %199 = arith.subf %141, %198 : vector<4x8xf32>
    %200 = math.exp %199 : vector<4x8xf32>
    %cst_74 = arith.constant dense<0.000000e+00> : vector<4xf32>
    %201 = vector.multi_reduction <add>, %200, %cst_74 [1] : vector<4x8xf32> to vector<4xf32>
    %202 = vector.shape_cast %201 : vector<4xf32> to vector<4x1xf32>
    %203 = vector.broadcast %202 : vector<4x1xf32> to vector<4x8xf32>
    %204 = arith.divf %200, %203 : vector<4x8xf32>
    %cst_75 = arith.constant dense<0xFF800000> : vector<4xf32>
    %205 = vector.multi_reduction <maximumf>, %145, %cst_75 [1] : vector<4x8xf32> to vector<4xf32>
    %cst_76 = arith.constant 0xFF800000 : f32
    %206 = vector.broadcast %cst_76 : f32 to vector<4xf32>
    %207 = arith.maximumf %206, %205 : vector<4xf32>
    %208 = vector.shape_cast %207 : vector<4xf32> to vector<4x1xf32>
    %209 = vector.broadcast %208 : vector<4x1xf32> to vector<4x8xf32>
    %210 = arith.subf %145, %209 : vector<4x8xf32>
    %211 = math.exp %210 : vector<4x8xf32>
    %cst_77 = arith.constant dense<0.000000e+00> : vector<4xf32>
    %212 = vector.multi_reduction <add>, %211, %cst_77 [1] : vector<4x8xf32> to vector<4xf32>
    %213 = vector.shape_cast %212 : vector<4xf32> to vector<4x1xf32>
    %214 = vector.broadcast %213 : vector<4x1xf32> to vector<4x8xf32>
    %215 = arith.divf %211, %214 : vector<4x8xf32>
    %216 = vector.shape_cast %204 : vector<4x8xf32> to vector<4x1x8xf32>
    %217 = arith.truncf %216 : vector<4x1x8xf32> to vector<4x1x8xbf16>
    "tpu.trace_start"() <{level = 10 : i32, message = "bql,blh->bqh"}> : () -> ()
    %cst_78 = arith.constant dense<0.000000e+00> : vector<4x1x32xf32>
    %218 = tpu.matmul %217, %53, %cst_78 {dimension_numbers = #tpu.dot_dimension_numbers<[2], [1], [1], [2], [0, 0, 0, 1, 1, 2], [0], [0]>} : vector<4x1x8xbf16>, vector<4x8x32xbf16>, vector<4x1x32xf32> -> vector<4x1x32xf32>
    "tpu.trace_stop"() : () -> ()
    %219 = vector.shape_cast %218 : vector<4x1x32xf32> to vector<4x32xf32>
    %220 = vector.shape_cast %215 : vector<4x8xf32> to vector<4x1x8xf32>
    %221 = arith.truncf %220 : vector<4x1x8xf32> to vector<4x1x8xbf16>
    "tpu.trace_start"() <{level = 10 : i32, message = "bql,blh->bqh"}> : () -> ()
    %cst_79 = arith.constant dense<0.000000e+00> : vector<4x1x32xf32>
    %222 = tpu.matmul %221, %54, %cst_79 {dimension_numbers = #tpu.dot_dimension_numbers<[2], [1], [1], [2], [0, 0, 0, 1, 1, 2], [0], [0]>} : vector<4x1x8xbf16>, vector<4x8x32xbf16>, vector<4x1x32xf32> -> vector<4x1x32xf32>
    "tpu.trace_stop"() : () -> ()
    %223 = vector.shape_cast %222 : vector<4x1x32xf32> to vector<4x32xf32>
    %224 = tpu.concatenate %219, %223 in 1 : vector<4x32xf32>, vector<4x32xf32> -> vector<4x64xf32>
    %c0_80 = arith.constant 0 : index
    %c0_81 = arith.constant 0 : index
    %225 = vector.load %arg12[%c0_80, %c0_81] : memref<64x128xbf16, #tpu.memory_space<vmem>>, vector<64x128xbf16>
    %226 = arith.truncf %224 : vector<4x64xf32> to vector<4x64xbf16>
    %cst_82 = arith.constant dense<0.000000e+00> : vector<4x128xf32>
    %227 = tpu.matmul %226, %225, %cst_82 {dimension_numbers = #tpu.dot_dimension_numbers<[1], [0], [0], [1], [0, 0, 1, 1], [], []>} : vector<4x64xbf16>, vector<64x128xbf16>, vector<4x128xf32> -> vector<4x128xf32>
    %228 = arith.addf %227, %43 : vector<4x128xf32>
    %229 = vector.extract_strided_slice %228 {offsets = [0, 0], sizes = [4, 96], strides = [1, 1]} : vector<4x128xf32> to vector<4x96xf32>
    %230 = arith.negf %229 : vector<4x96xf32>
    %231 = math.exp %230 : vector<4x96xf32>
    %cst_83 = arith.constant 1.000000e+00 : f32
    %232 = vector.broadcast %cst_83 : f32 to vector<4x96xf32>
    %233 = arith.addf %232, %231 : vector<4x96xf32>
    %234 = arith.divf %232, %233 : vector<4x96xf32>
    %235 = vector.extract_strided_slice %228 {offsets = [0, 96], sizes = [4, 32], strides = [1, 1]} : vector<4x128xf32> to vector<4x32xf32>
    %236 = math.tanh %235 : vector<4x32xf32>
    %237 = vector.extract_strided_slice %234 {offsets = [0, 32], sizes = [4, 32], strides = [1, 1]} : vector<4x96xf32> to vector<4x32xf32>
    %238 = arith.mulf %237, %13 : vector<4x32xf32>
    %239 = vector.extract_strided_slice %234 {offsets = [0, 0], sizes = [4, 32], strides = [1, 1]} : vector<4x96xf32> to vector<4x32xf32>
    %240 = arith.mulf %239, %236 : vector<4x32xf32>
    %241 = arith.addf %238, %240 : vector<4x32xf32>
    %242 = vector.extract_strided_slice %234 {offsets = [0, 64], sizes = [4, 32], strides = [1, 1]} : vector<4x96xf32> to vector<4x32xf32>
    %243 = math.tanh %241 : vector<4x32xf32>
    %244 = arith.mulf %242, %243 : vector<4x32xf32>
    %245 = vector.broadcast %193 : vector<1x1xf32> to vector<4x32xf32>
    %246 = arith.mulf %245, %244 : vector<4x32xf32>
    %247 = arith.addf %132, %246 : vector<4x32xf32>
    %248 = arith.mulf %244, %36 : vector<4x32xf32>
    %cst_84 = arith.constant dense<0.000000e+00> : vector<4xf32>
    %249 = vector.multi_reduction <add>, %248, %cst_84 [1] : vector<4x32xf32> to vector<4xf32>
    %250 = vector.shape_cast %249 : vector<4xf32> to vector<4x1xf32>
    %cst_85 = arith.constant 1.000000e-01 : f32
    %251 = vector.broadcast %cst_85 : f32 to vector<4x1xf32>
    %252 = arith.mulf %251, %250 : vector<4x1xf32>
    %253 = vector.broadcast %193 : vector<1x1xf32> to vector<4x1xf32>
    %254 = arith.mulf %253, %252 : vector<4x1xf32>
    %255 = vector.broadcast %254 : vector<4x1xf32> to vector<4x8xf32>
    %256 = arith.addf %141, %255 : vector<4x8xf32>
    %257 = vector.broadcast %193 : vector<1x1xf32> to vector<4x1xf32>
    %258 = arith.mulf %257, %252 : vector<4x1xf32>
    %259 = vector.broadcast %258 : vector<4x1xf32> to vector<4x8xf32>
    %260 = arith.addf %145, %259 : vector<4x8xf32>
    %c0_86 = arith.constant 0 : index
    %c0_87 = arith.constant 0 : index
    %261 = vector.load %arg14[%c0_86, %c0_87] : memref<32x32xbf16, #tpu.memory_space<vmem>>, vector<32x32xbf16>
    %262 = arith.truncf %244 : vector<4x32xf32> to vector<4x32xbf16>
    %cst_88 = arith.constant dense<0.000000e+00> : vector<4x32xf32>
    %263 = tpu.matmul %262, %261, %cst_88 {dimension_numbers = #tpu.dot_dimension_numbers<[1], [0], [0], [1], [0, 0, 1, 1], [], []>} : vector<4x32xbf16>, vector<32x32xbf16>, vector<4x32xf32> -> vector<4x32xf32>
    %264 = arith.addf %263, %46 : vector<4x32xf32>
    %cst_89 = arith.constant 0.000000e+00 : f32
    %265 = vector.broadcast %cst_89 : f32 to vector<4x32xf32>
    %266 = arith.maximumf %264, %265 : vector<4x32xf32>
    %267 = arith.mulf %266, %49 : vector<4x32xf32>
    %cst_90 = arith.constant dense<0.000000e+00> : vector<4xf32>
    %268 = vector.multi_reduction <add>, %267, %cst_90 [1] : vector<4x32xf32> to vector<4xf32>
    %269 = vector.shape_cast %268 : vector<4xf32> to vector<4x1xf32>
    %270 = arith.addf %269, %52 : vector<4x1xf32>
    %271 = arith.negf %270 : vector<4x1xf32>
    %272 = math.exp %271 : vector<4x1xf32>
    %cst_91 = arith.constant 1.000000e+00 : f32
    %273 = vector.broadcast %cst_91 : f32 to vector<4x1xf32>
    %274 = arith.addf %273, %272 : vector<4x1xf32>
    %275 = arith.divf %273, %274 : vector<4x1xf32>
    %cst_92 = arith.constant 1.000000e+00 : f32
    %276 = vector.broadcast %cst_92 : f32 to vector<4x1xf32>
    %277 = arith.subf %276, %165 : vector<4x1xf32>
    %278 = arith.mulf %275, %277 : vector<4x1xf32>
    %279 = arith.mulf %278, %191 : vector<4x1xf32>
    %280 = arith.addf %165, %279 : vector<4x1xf32>
    %281 = vector.broadcast %279 : vector<4x1xf32> to vector<4x32xf32>
    %282 = arith.mulf %281, %36 : vector<4x32xf32>
    %283 = arith.addf %168, %282 : vector<4x32xf32>
    %284 = vector.broadcast %279 : vector<4x1xf32> to vector<4x32xf32>
    %285 = arith.mulf %284, %33 : vector<4x32xf32>
    %286 = arith.addf %171, %285 : vector<4x32xf32>
    %287 = vector.broadcast %279 : vector<4x1xf32> to vector<4x32xf32>
    %288 = arith.mulf %287, %244 : vector<4x32xf32>
    %289 = arith.addf %174, %288 : vector<4x32xf32>
    %290 = vector.broadcast %279 : vector<4x1xf32> to vector<4x32xf32>
    %291 = arith.mulf %290, %241 : vector<4x32xf32>
    %292 = arith.addf %177, %291 : vector<4x32xf32>
    %293 = vector.broadcast %279 : vector<4x1xf32> to vector<4x32xf32>
    %294 = arith.mulf %293, %244 : vector<4x32xf32>
    %295 = arith.addf %180, %294 : vector<4x32xf32>
    %cst_93 = arith.constant 1.000000e+00 : f32
    %296 = vector.broadcast %cst_93 : f32 to vector<4x1xf32>
    %297 = arith.subf %296, %275 : vector<4x1xf32>
    %cst_94 = arith.constant 2.000000e+00 : f32
    %298 = vector.broadcast %cst_94 : f32 to vector<4x1xf32>
    %299 = arith.mulf %298, %297 : vector<4x1xf32>
    %300 = arith.mulf %299, %191 : vector<4x1xf32>
    %301 = arith.addf %186, %300 : vector<4x1xf32>
    %cst_95 = arith.constant 0.899999976 : f32
    %302 = vector.broadcast %cst_95 : f32 to vector<4x1xf32>
    %303 = arith.cmpf olt, %280, %302 : vector<4x1xf32>
    %304 = arith.extui %303 : vector<4x1xi1> to vector<4x1xi32>
    %305 = arith.sitofp %304 : vector<4x1xi32> to vector<4x1xf32>
    %306 = arith.mulf %305, %191 : vector<4x1xf32>
    %cst_96 = arith.constant dense<0xFF800000> : vector<1xf32>
    %307 = vector.multi_reduction <maximumf>, %306, %cst_96 [0] : vector<4x1xf32> to vector<1xf32>
    %308 = vector.shape_cast %307 : vector<1xf32> to vector<1x1xf32>
    %cst_97 = arith.constant dense<0xFF800000> : vector<4xf32>
    %309 = vector.multi_reduction <maximumf>, %256, %cst_97 [1] : vector<4x8xf32> to vector<4xf32>
    %cst_98 = arith.constant 0xFF800000 : f32
    %310 = vector.broadcast %cst_98 : f32 to vector<4xf32>
    %311 = arith.maximumf %310, %309 : vector<4xf32>
    %312 = vector.shape_cast %311 : vector<4xf32> to vector<4x1xf32>
    %313 = vector.broadcast %312 : vector<4x1xf32> to vector<4x8xf32>
    %314 = arith.subf %256, %313 : vector<4x8xf32>
    %315 = math.exp %314 : vector<4x8xf32>
    %cst_99 = arith.constant dense<0.000000e+00> : vector<4xf32>
    %316 = vector.multi_reduction <add>, %315, %cst_99 [1] : vector<4x8xf32> to vector<4xf32>
    %317 = vector.shape_cast %316 : vector<4xf32> to vector<4x1xf32>
    %318 = vector.broadcast %317 : vector<4x1xf32> to vector<4x8xf32>
    %319 = arith.divf %315, %318 : vector<4x8xf32>
    %cst_100 = arith.constant dense<0xFF800000> : vector<4xf32>
    %320 = vector.multi_reduction <maximumf>, %260, %cst_100 [1] : vector<4x8xf32> to vector<4xf32>
    %cst_101 = arith.constant 0xFF800000 : f32
    %321 = vector.broadcast %cst_101 : f32 to vector<4xf32>
    %322 = arith.maximumf %321, %320 : vector<4xf32>
    %323 = vector.shape_cast %322 : vector<4xf32> to vector<4x1xf32>
    %324 = vector.broadcast %323 : vector<4x1xf32> to vector<4x8xf32>
    %325 = arith.subf %260, %324 : vector<4x8xf32>
    %326 = math.exp %325 : vector<4x8xf32>
    %cst_102 = arith.constant dense<0.000000e+00> : vector<4xf32>
    %327 = vector.multi_reduction <add>, %326, %cst_102 [1] : vector<4x8xf32> to vector<4xf32>
    %328 = vector.shape_cast %327 : vector<4xf32> to vector<4x1xf32>
    %329 = vector.broadcast %328 : vector<4x1xf32> to vector<4x8xf32>
    %330 = arith.divf %326, %329 : vector<4x8xf32>
    %331 = vector.shape_cast %319 : vector<4x8xf32> to vector<4x1x8xf32>
    %332 = arith.truncf %331 : vector<4x1x8xf32> to vector<4x1x8xbf16>
    "tpu.trace_start"() <{level = 10 : i32, message = "bql,blh->bqh"}> : () -> ()
    %cst_103 = arith.constant dense<0.000000e+00> : vector<4x1x32xf32>
    %333 = tpu.matmul %332, %53, %cst_103 {dimension_numbers = #tpu.dot_dimension_numbers<[2], [1], [1], [2], [0, 0, 0, 1, 1, 2], [0], [0]>} : vector<4x1x8xbf16>, vector<4x8x32xbf16>, vector<4x1x32xf32> -> vector<4x1x32xf32>
    "tpu.trace_stop"() : () -> ()
    %334 = vector.shape_cast %333 : vector<4x1x32xf32> to vector<4x32xf32>
    %335 = vector.shape_cast %330 : vector<4x8xf32> to vector<4x1x8xf32>
    %336 = arith.truncf %335 : vector<4x1x8xf32> to vector<4x1x8xbf16>
    "tpu.trace_start"() <{level = 10 : i32, message = "bql,blh->bqh"}> : () -> ()
    %cst_104 = arith.constant dense<0.000000e+00> : vector<4x1x32xf32>
    %337 = tpu.matmul %336, %54, %cst_104 {dimension_numbers = #tpu.dot_dimension_numbers<[2], [1], [1], [2], [0, 0, 0, 1, 1, 2], [0], [0]>} : vector<4x1x8xbf16>, vector<4x8x32xbf16>, vector<4x1x32xf32> -> vector<4x1x32xf32>
    "tpu.trace_stop"() : () -> ()
    %338 = vector.shape_cast %337 : vector<4x1x32xf32> to vector<4x32xf32>
    %339 = tpu.concatenate %334, %338 in 1 : vector<4x32xf32>, vector<4x32xf32> -> vector<4x64xf32>
    %c0_105 = arith.constant 0 : index
    %c0_106 = arith.constant 0 : index
    %340 = vector.load %arg12[%c0_105, %c0_106] : memref<64x128xbf16, #tpu.memory_space<vmem>>, vector<64x128xbf16>
    %341 = arith.truncf %339 : vector<4x64xf32> to vector<4x64xbf16>
    %cst_107 = arith.constant dense<0.000000e+00> : vector<4x128xf32>
    %342 = tpu.matmul %341, %340, %cst_107 {dimension_numbers = #tpu.dot_dimension_numbers<[1], [0], [0], [1], [0, 0, 1, 1], [], []>} : vector<4x64xbf16>, vector<64x128xbf16>, vector<4x128xf32> -> vector<4x128xf32>
    %343 = arith.addf %342, %43 : vector<4x128xf32>
    %344 = vector.extract_strided_slice %343 {offsets = [0, 0], sizes = [4, 96], strides = [1, 1]} : vector<4x128xf32> to vector<4x96xf32>
    %345 = arith.negf %344 : vector<4x96xf32>
    %346 = math.exp %345 : vector<4x96xf32>
    %cst_108 = arith.constant 1.000000e+00 : f32
    %347 = vector.broadcast %cst_108 : f32 to vector<4x96xf32>
    %348 = arith.addf %347, %346 : vector<4x96xf32>
    %349 = arith.divf %347, %348 : vector<4x96xf32>
    %350 = vector.extract_strided_slice %343 {offsets = [0, 96], sizes = [4, 32], strides = [1, 1]} : vector<4x128xf32> to vector<4x32xf32>
    %351 = math.tanh %350 : vector<4x32xf32>
    %352 = vector.extract_strided_slice %349 {offsets = [0, 32], sizes = [4, 32], strides = [1, 1]} : vector<4x96xf32> to vector<4x32xf32>
    %353 = arith.mulf %352, %13 : vector<4x32xf32>
    %354 = vector.extract_strided_slice %349 {offsets = [0, 0], sizes = [4, 32], strides = [1, 1]} : vector<4x96xf32> to vector<4x32xf32>
    %355 = arith.mulf %354, %351 : vector<4x32xf32>
    %356 = arith.addf %353, %355 : vector<4x32xf32>
    %357 = vector.extract_strided_slice %349 {offsets = [0, 64], sizes = [4, 32], strides = [1, 1]} : vector<4x96xf32> to vector<4x32xf32>
    %358 = math.tanh %356 : vector<4x32xf32>
    %359 = arith.mulf %357, %358 : vector<4x32xf32>
    %360 = vector.broadcast %308 : vector<1x1xf32> to vector<4x32xf32>
    %361 = arith.mulf %360, %359 : vector<4x32xf32>
    %362 = arith.addf %247, %361 : vector<4x32xf32>
    %c0_109 = arith.constant 0 : index
    %c0_110 = arith.constant 0 : index
    %363 = vector.load %arg14[%c0_109, %c0_110] : memref<32x32xbf16, #tpu.memory_space<vmem>>, vector<32x32xbf16>
    %364 = arith.truncf %359 : vector<4x32xf32> to vector<4x32xbf16>
    %cst_111 = arith.constant dense<0.000000e+00> : vector<4x32xf32>
    %365 = tpu.matmul %364, %363, %cst_111 {dimension_numbers = #tpu.dot_dimension_numbers<[1], [0], [0], [1], [0, 0, 1, 1], [], []>} : vector<4x32xbf16>, vector<32x32xbf16>, vector<4x32xf32> -> vector<4x32xf32>
    %366 = arith.addf %365, %46 : vector<4x32xf32>
    %cst_112 = arith.constant 0.000000e+00 : f32
    %367 = vector.broadcast %cst_112 : f32 to vector<4x32xf32>
    %368 = arith.maximumf %366, %367 : vector<4x32xf32>
    %369 = arith.mulf %368, %49 : vector<4x32xf32>
    %cst_113 = arith.constant dense<0.000000e+00> : vector<4xf32>
    %370 = vector.multi_reduction <add>, %369, %cst_113 [1] : vector<4x32xf32> to vector<4xf32>
    %371 = vector.shape_cast %370 : vector<4xf32> to vector<4x1xf32>
    %372 = arith.addf %371, %52 : vector<4x1xf32>
    %373 = arith.negf %372 : vector<4x1xf32>
    %374 = math.exp %373 : vector<4x1xf32>
    %cst_114 = arith.constant 1.000000e+00 : f32
    %375 = vector.broadcast %cst_114 : f32 to vector<4x1xf32>
    %376 = arith.addf %375, %374 : vector<4x1xf32>
    %377 = arith.divf %375, %376 : vector<4x1xf32>
    %cst_115 = arith.constant 1.000000e+00 : f32
    %378 = vector.broadcast %cst_115 : f32 to vector<4x1xf32>
    %379 = arith.subf %378, %280 : vector<4x1xf32>
    %380 = arith.mulf %377, %379 : vector<4x1xf32>
    %381 = arith.mulf %380, %306 : vector<4x1xf32>
    %382 = arith.addf %280, %381 : vector<4x1xf32>
    %383 = vector.broadcast %381 : vector<4x1xf32> to vector<4x32xf32>
    %384 = arith.mulf %383, %36 : vector<4x32xf32>
    %385 = arith.addf %283, %384 : vector<4x32xf32>
    %386 = vector.broadcast %381 : vector<4x1xf32> to vector<4x32xf32>
    %387 = arith.mulf %386, %33 : vector<4x32xf32>
    %388 = arith.addf %286, %387 : vector<4x32xf32>
    %389 = vector.broadcast %381 : vector<4x1xf32> to vector<4x32xf32>
    %390 = arith.mulf %389, %359 : vector<4x32xf32>
    %391 = arith.addf %289, %390 : vector<4x32xf32>
    %392 = vector.broadcast %381 : vector<4x1xf32> to vector<4x32xf32>
    %393 = arith.mulf %392, %356 : vector<4x32xf32>
    %394 = arith.addf %292, %393 : vector<4x32xf32>
    %395 = vector.broadcast %381 : vector<4x1xf32> to vector<4x32xf32>
    %396 = arith.mulf %395, %359 : vector<4x32xf32>
    %397 = arith.addf %295, %396 : vector<4x32xf32>
    %cst_116 = arith.constant 1.000000e+00 : f32
    %398 = vector.broadcast %cst_116 : f32 to vector<4x1xf32>
    %399 = arith.subf %398, %377 : vector<4x1xf32>
    %cst_117 = arith.constant 3.000000e+00 : f32
    %400 = vector.broadcast %cst_117 : f32 to vector<4x1xf32>
    %401 = arith.mulf %400, %399 : vector<4x1xf32>
    %402 = arith.mulf %401, %306 : vector<4x1xf32>
    %403 = arith.addf %301, %402 : vector<4x1xf32>
    %404 = tpu.reciprocal %382 {approx = true} : vector<4x1xf32> -> vector<4x1xf32>
    %405 = vector.broadcast %404 : vector<4x1xf32> to vector<4x32xf32>
    %406 = arith.mulf %397, %405 : vector<4x32xf32>
    %c0_118 = arith.constant 0 : index
    %c0_119 = arith.constant 0 : index
    %407 = vector.load %arg18[%c0_118, %c0_119] : memref<4x32xf32, #tpu.memory_space<vmem>>, vector<4x32xf32>
    tpu.vector_store %arg18[%c0_118, %c0_119], %406 {strides = array<i32>} : memref<4x32xf32, #tpu.memory_space<vmem>>, vector<4x32xf32>,
    %c0_120 = arith.constant 0 : index
    %c0_121 = arith.constant 0 : index
    %408 = vector.load %arg21[%c0_120, %c0_121] : memref<4x1xf32, #tpu.memory_space<vmem>>, vector<4x1xf32>
    tpu.vector_store %arg21[%c0_120, %c0_121], %403 {strides = array<i32>} : memref<4x1xf32, #tpu.memory_space<vmem>>, vector<4x1xf32>,
    %409 = vector.broadcast %404 : vector<4x1xf32> to vector<4x32xf32>
    %410 = arith.mulf %385, %409 : vector<4x32xf32>
    %c0_122 = arith.constant 0 : index
    %c0_123 = arith.constant 0 : index
    %c0_124 = arith.constant 0 : index
    %411 = vector.load %arg22[%c0_122, %c0_123, %c0_124] : memref<2x4x32xf32, #tpu.memory_space<vmem>>, vector<1x4x32xf32>
    %412 = vector.shape_cast %411 : vector<1x4x32xf32> to vector<4x32xf32>
    %413 = vector.shape_cast %410 : vector<4x32xf32> to vector<1x4x32xf32>
    tpu.vector_store %arg22[%c0_122, %c0_123, %c0_124], %413 {strides = array<i32>} : memref<2x4x32xf32, #tpu.memory_space<vmem>>, vector<1x4x32xf32>,
    %414 = vector.broadcast %404 : vector<4x1xf32> to vector<4x32xf32>
    %415 = arith.mulf %391, %414 : vector<4x32xf32>
    %c1 = arith.constant 1 : index
    %c0_125 = arith.constant 0 : index
    %c0_126 = arith.constant 0 : index
    %416 = vector.load %arg22[%c1, %c0_125, %c0_126] : memref<2x4x32xf32, #tpu.memory_space<vmem>>, vector<1x4x32xf32>
    %417 = vector.shape_cast %416 : vector<1x4x32xf32> to vector<4x32xf32>
    %418 = vector.shape_cast %415 : vector<4x32xf32> to vector<1x4x32xf32>
    tpu.vector_store %arg22[%c1, %c0_125, %c0_126], %418 {strides = array<i32>} : memref<2x4x32xf32, #tpu.memory_space<vmem>>, vector<1x4x32xf32>,
    %419 = vector.broadcast %404 : vector<4x1xf32> to vector<4x32xf32>
    %420 = arith.mulf %388, %419 : vector<4x32xf32>
    %c0_127 = arith.constant 0 : index
    %c0_128 = arith.constant 0 : index
    %c0_129 = arith.constant 0 : index
    %421 = vector.load %arg23[%c0_127, %c0_128, %c0_129] : memref<2x4x32xf32, #tpu.memory_space<vmem>>, vector<1x4x32xf32>
    %422 = vector.shape_cast %421 : vector<1x4x32xf32> to vector<4x32xf32>
    %423 = vector.shape_cast %420 : vector<4x32xf32> to vector<1x4x32xf32>
    tpu.vector_store %arg23[%c0_127, %c0_128, %c0_129], %423 {strides = array<i32>} : memref<2x4x32xf32, #tpu.memory_space<vmem>>, vector<1x4x32xf32>,
    %424 = vector.broadcast %404 : vector<4x1xf32> to vector<4x32xf32>
    %425 = arith.mulf %394, %424 : vector<4x32xf32>
    %c1_130 = arith.constant 1 : index
    %c0_131 = arith.constant 0 : index
    %c0_132 = arith.constant 0 : index
    %426 = vector.load %arg23[%c1_130, %c0_131, %c0_132] : memref<2x4x32xf32, #tpu.memory_space<vmem>>, vector<1x4x32xf32>
    %427 = vector.shape_cast %426 : vector<1x4x32xf32> to vector<4x32xf32>
    %428 = vector.shape_cast %425 : vector<4x32xf32> to vector<1x4x32xf32>
    tpu.vector_store %arg23[%c1_130, %c0_131, %c0_132], %428 {strides = array<i32>} : memref<2x4x32xf32, #tpu.memory_space<vmem>>, vector<1x4x32xf32>,
    %cst_133 = arith.constant 1.000000e-01 : f32
    %429 = vector.broadcast %cst_133 : f32 to vector<4x32xf32>
    %430 = arith.mulf %429, %362 : vector<4x32xf32>
    %431 = vector.shape_cast %430 : vector<4x32xf32> to vector<4x1x32xf32>
    %432 = vector.shape_cast %431 : vector<4x1x32xf32> to vector<4x1x32xf32>
    %433 = vector.broadcast %432 : vector<4x1x32xf32> to vector<4x8x32xf32>
    %434 = vector.shape_cast %433 : vector<4x8x32xf32> to vector<4x256xf32>
    %435 = arith.extf %55 : vector<4x256xbf16> to vector<4x256xf32>
    %436 = arith.addf %435, %434 : vector<4x256xf32>
    %437 = arith.truncf %436 : vector<4x256xf32> to vector<4x256xbf16>
    %c0_134 = arith.constant 0 : index
    %c0_135 = arith.constant 0 : index
    %438 = vector.load %arg19[%c0_134, %c0_135] : memref<4x256xbf16, #tpu.memory_space<vmem>>, vector<4x256xbf16>
    tpu.vector_store %arg19[%c0_134, %c0_135], %437 {strides = array<i32>} : memref<4x256xbf16, #tpu.memory_space<vmem>>, vector<4x256xbf16>,
    %439 = arith.extf %56 : vector<4x256xbf16> to vector<4x256xf32>
    %440 = arith.addf %439, %434 : vector<4x256xf32>
    %441 = arith.truncf %440 : vector<4x256xf32> to vector<4x256xbf16>
    %c0_136 = arith.constant 0 : index
    %c0_137 = arith.constant 0 : index
    %442 = vector.load %arg20[%c0_136, %c0_137] : memref<4x256xbf16, #tpu.memory_space<vmem>>, vector<4x256xbf16>
    tpu.vector_store %arg20[%c0_136, %c0_137], %441 {strides = array<i32>} : memref<4x256xbf16, #tpu.memory_space<vmem>>, vector<4x256xbf16>,
    return
  }
  func.func @transform_0(%arg0: i32) -> (i32, i32) {
    %c0_i32 = arith.constant 0 : i32
    %c0_i32_0 = arith.constant 0 : i32
    return %arg0, %c0_i32 : i32, i32
  }
  func.func @transform_1(%arg0: i32) -> (i32, i32) {
    %c0_i32 = arith.constant 0 : i32
    %c0_i32_0 = arith.constant 0 : i32
    return %arg0, %c0_i32 : i32, i32
  }
  func.func @transform_2(%arg0: i32) -> (i32, i32, i32) {
    %c0_i32 = arith.constant 0 : i32
    %c0_i32_0 = arith.constant 0 : i32
    %c0_i32_1 = arith.constant 0 : i32
    return %arg0, %c0_i32, %c0_i32_0 : i32, i32, i32
  }
  func.func @transform_3(%arg0: i32) -> (i32, i32, i32) {
    %c0_i32 = arith.constant 0 : i32
    %c0_i32_0 = arith.constant 0 : i32
    %c0_i32_1 = arith.constant 0 : i32
    return %arg0, %c0_i32, %c0_i32_0 : i32, i32, i32
  }
  func.func @transform_4(%arg0: i32) -> (i32, i32) {
    %c0_i32 = arith.constant 0 : i32
    %c0_i32_0 = arith.constant 0 : i32
    return %arg0, %c0_i32 : i32, i32
  }
  func.func @transform_5(%arg0: i32) -> (i32, i32) {
    %c0_i32 = arith.constant 0 : i32
    %c0_i32_0 = arith.constant 0 : i32
    return %arg0, %c0_i32 : i32, i32
  }
  func.func @transform_6(%arg0: i32) -> (i32, i32, i32) {
    %c0_i32 = arith.constant 0 : i32
    %c0_i32_0 = arith.constant 0 : i32
    %c0_i32_1 = arith.constant 0 : i32
    return %c0_i32, %arg0, %c0_i32_0 : i32, i32, i32
  }
  func.func @transform_7(%arg0: i32) -> (i32, i32, i32) {
    %c0_i32 = arith.constant 0 : i32
    %c0_i32_0 = arith.constant 0 : i32
    %c0_i32_1 = arith.constant 0 : i32
    return %c0_i32, %arg0, %c0_i32_0 : i32, i32, i32
  }
  func.func @transform_8(%arg0: i32) -> (i32, i32) {
    %c0_i32 = arith.constant 0 : i32
    %c0_i32_0 = arith.constant 0 : i32
    %c0_i32_1 = arith.constant 0 : i32
    return %c0_i32, %c0_i32_0 : i32, i32
  }
  func.func @transform_9(%arg0: i32) -> (i32, i32) {
    %c0_i32 = arith.constant 0 : i32
    %c0_i32_0 = arith.constant 0 : i32
    %c0_i32_1 = arith.constant 0 : i32
    return %c0_i32, %c0_i32_0 : i32, i32
  }
  func.func @transform_10(%arg0: i32) -> (i32, i32) {
    %c0_i32 = arith.constant 0 : i32
    %c0_i32_0 = arith.constant 0 : i32
    %c0_i32_1 = arith.constant 0 : i32
    return %c0_i32, %c0_i32_0 : i32, i32
  }
  func.func @transform_11(%arg0: i32) -> (i32, i32) {
    %c0_i32 = arith.constant 0 : i32
    %c0_i32_0 = arith.constant 0 : i32
    %c0_i32_1 = arith.constant 0 : i32
    return %c0_i32, %c0_i32_0 : i32, i32
  }
  func.func @transform_12(%arg0: i32) -> (i32, i32) {
    %c0_i32 = arith.constant 0 : i32
    %c0_i32_0 = arith.constant 0 : i32
    %c0_i32_1 = arith.constant 0 : i32
    return %c0_i32, %c0_i32_0 : i32, i32
  }
  func.func @transform_13(%arg0: i32) -> (i32, i32) {
    %c0_i32 = arith.constant 0 : i32
    %c0_i32_0 = arith.constant 0 : i32
    %c0_i32_1 = arith.constant 0 : i32
    return %c0_i32, %c0_i32_0 : i32, i32
  }
  func.func @transform_14(%arg0: i32) -> (i32, i32) {
    %c0_i32 = arith.constant 0 : i32
    %c0_i32_0 = arith.constant 0 : i32
    %c0_i32_1 = arith.constant 0 : i32
    return %c0_i32, %c0_i32_0 : i32, i32
  }
  func.func @transform_15(%arg0: i32) -> (i32, i32) {
    %c0_i32 = arith.constant 0 : i32
    %c0_i32_0 = arith.constant 0 : i32
    %c0_i32_1 = arith.constant 0 : i32
    return %c0_i32, %c0_i32_0 : i32, i32
  }
  func.func @transform_16(%arg0: i32) -> (i32, i32) {
    %c0_i32 = arith.constant 0 : i32
    %c0_i32_0 = arith.constant 0 : i32
    %c0_i32_1 = arith.constant 0 : i32
    return %c0_i32, %c0_i32_0 : i32, i32
  }
  func.func @transform_17(%arg0: i32) -> (i32, i32) {
    %c0_i32 = arith.constant 0 : i32
    %c0_i32_0 = arith.constant 0 : i32
    return %arg0, %c0_i32 : i32, i32
  }
  func.func @transform_18(%arg0: i32) -> (i32, i32) {
    %c0_i32 = arith.constant 0 : i32
    %c0_i32_0 = arith.constant 0 : i32
    return %arg0, %c0_i32 : i32, i32
  }
  func.func @transform_19(%arg0: i32) -> (i32, i32) {
    %c0_i32 = arith.constant 0 : i32
    %c0_i32_0 = arith.constant 0 : i32
    return %arg0, %c0_i32 : i32, i32
  }
  func.func @transform_20(%arg0: i32) -> (i32, i32) {
    %c0_i32 = arith.constant 0 : i32
    %c0_i32_0 = arith.constant 0 : i32
    return %arg0, %c0_i32 : i32, i32
  }
  func.func @transform_21(%arg0: i32) -> (i32, i32, i32) {
    %c0_i32 = arith.constant 0 : i32
    %c0_i32_0 = arith.constant 0 : i32
    %c0_i32_1 = arith.constant 0 : i32
    return %c0_i32, %arg0, %c0_i32_0 : i32, i32, i32
  }
  func.func @transform_22(%arg0: i32) -> (i32, i32, i32) {
    %c0_i32 = arith.constant 0 : i32
    %c0_i32_0 = arith.constant 0 : i32
    %c0_i32_1 = arith.constant 0 : i32
    return %c0_i32, %arg0, %c0_i32_0 : i32, i32, i32
  }
}

</mosaic_0001>

<bundles_post_ra>
// kernel: tpu_custom_call.1
= control target key start
LH: loop header
LB: loop body
LE: loop exit
PB: predicated region body
PF: predicated region fallthrough
CT: control target
= control target key end

     0   :  { %s6338_s0 = inlined_call_operand.hbm [shape: f32[4,32], index: 0, kind: input, shape index: {}]   ;;  %s6339_s1 = inlined_call_operand.hbm [shape: f32[4,32], index: 1, kind: input, shape index: {}]   ;;  %s6340_s2 = inlined_call_operand.hbm [shape: bf16[4,8,32], index: 2, kind: input, shape index: {}]   ;;  %s6341_s3 = inlined_call_operand.hbm [shape: bf16[4,8,32], index: 3, kind: input, shape index: {}]   ;;  %s6342_s4 = inlined_call_operand.hbm [shape: bf16[4,256], index: 4, kind: input, shape index: {}]   ;;  %s6343_s5 = inlined_call_operand.hbm [shape: bf16[4,256], index: 5, kind: input, shape index: {}]   ;;  %s6344_s6 = inlined_call_operand.hbm [shape: f32[2,4,32], index: 6, kind: input, shape index: {}]   ;;  %s6345_s7 = inlined_call_operand.hbm [shape: f32[2,4,32], index: 7, kind: input, shape index: {}]   ;;  %s6346_s8 = inlined_call_operand.hbm [shape: bf16[128,128], index: 8, kind: input, shape index: {}]   ;;  %s6347_s9 = inlined_call_operand.vmem [shape: f32[1,128], index: 9, kind: input, shape index: {}]   ;;  %s6348_s10 = inlined_call_operand.vmem [shape: bf16[64,128], index: 10, kind: input, shape index: {}]   ;;  %s6349_s11 = inlined_call_operand.hbm [shape: bf16[64,128], index: 11, kind: input, shape index: {}]   ;;  %s6350_s12 = inlined_call_operand.hbm [shape: f32[1,128], index: 12, kind: input, shape index: {}]   ;;  %s6351_s13 = inlined_call_operand.vmem [shape: bf16[32,32], index: 13, kind: input, shape index: {}]   ;;  %s6352_s14 = inlined_call_operand.vmem [shape: f32[1,32], index: 14, kind: input, shape index: {}]   ;;  %s6353_s15 = inlined_call_operand.vmem [shape: f32[1,32], index: 15, kind: input, shape index: {}]   ;;  %s6354_s16 = inlined_call_operand.<no memory space> [shape: f32[1,1], index: 16, kind: input, shape index: {}]   ;;  %s6355_s17 = inlined_call_operand.hbm [shape: f32[4,32], index: 17, kind: output, shape index: {0}]   ;;  %s6356_s18 = inlined_call_operand.hbm [shape: bf16[4,256], index: 18, kind: output, shape index: {1}]   ;;  %s6357_s19 = inlined_call_operand.hbm [shape: bf16[4,256], index: 19, kind: output, shape index: {2}]   ;;  %s6358_s20 = inlined_call_operand.vmem [shape: f32[4,1], index: 20, kind: output, shape index: {3}]   ;;  %s6359_s21 = inlined_call_operand.hbm [shape: f32[2,4,32], index: 21, kind: output, shape index: {4}]   ;;  %s6360_s22 = inlined_call_operand.hbm [shape: f32[2,4,32], index: 22, kind: output, shape index: {5}]  }
   0x1   :  { %6370 = sst [smem:[#allocation37_spill]] %s6338_s0  ;;  %v28_v0 = vstv %s6354_s16 }
   0x2   :  { %6371 = sst [smem:[#allocation38_spill]] %s6339_s1  ;;  %29 = vst [vmem:[#allocation2] sm:$0x1] %v28_v0 }
   0x3   :  { %6372 = sst [smem:[#allocation39_spill]] %s6340_s2 }
   0x4   :  { %6373 = sst [smem:[#allocation40_spill]] %s6341_s3 }
   0x5   :  { %6374 = sst [smem:[#allocation41_spill]] %s6342_s4 }
   0x6   :  { %6375 = sst [smem:[#allocation42_spill]] %s6343_s5 }
   0x7   :  { %6376 = sst [smem:[#allocation43_spill]] %s6344_s6 }
   0x8   :  { %30 = vsyncpa [#allocation4], 0 }
   0x9   :  { %31 = vsyncpa [#allocation7], 0 }
   0xa   :  { %32 = vsyncpa [#allocation10], 0 }
   0xb   :  { %33 = vsyncpa [#allocation13], 0 }
   0xc   :  { %34 = vsyncpa [#allocation16], 0 }
   0xd   :  { %35 = vsyncpa [#allocation19], 0 }
   0xe   :  { %36 = vsyncpa [#allocation5], 0 }
   0xf   :  { %37 = vsyncpa [#allocation23], 0 }
  0x10   :  { %38 = vsyncpa [#allocation26], 0  ;;  %s5029_s29 = smov [#allocation6]   ;;  %s6377_s23 = sld [smem:[#allocation38_spill]] }
  0x11   :  { %s55_s30 = sshll.u32 %s5029_s29, 4  ;;  %s56_s30 = int_to_ptr.vmem [resolvable:$true] %s55_s30 }
  0x16   :  { %s4659_s1 = scalar_lea.hbm %s6377_s23, 64 }
  0x17   :  { %p4660_p0 = scmp.ne.s32.totalorder %s6377_s23, %s4659_s1  ;;  %p4663_p1 = scmp.lt.u32.totalorder %s4659_s1, %s6377_s23 }
  0x19   :  { %p4665_p2 = pnand %p4663_p1, %p4660_p0 }
  0x1b   :  { %4668 = shalt.err (!%p4665_p2)
}
  0x1c   :  { %s4669_s25 = scalar_lea.vmem %s56_s30, 64  ;;  %p4674_p4 = scmp.lt.s32.totalorder %s56_s30, %s56_s30 }
  0x1d   :  { %p4670_p3 = scmp.ne.s32.totalorder %s56_s30, %s4669_s25  ;;  %p4675_p5 = scmp.lt.s32.totalorder %s4669_s25, %s4669_s25 }
  0x1f   :  { %p4676_p6 = por %p4675_p5, %p4674_p4 }
  0x21   :  { %p4677_p7 = pnand %p4676_p6, %p4670_p3 }
  0x23   :  { %4680 = shalt.err (!%p4677_p7)
}
  0x24   :  { %58 = dma.hbm_to_vmem [thread:$0]  %s6377_s23, 64, %s56_s30, [#allocation7]  }
  0x25   :  { %s5030_s27 = smov [#allocation9]   ;;  %s5031_s28 = smov [#allocation12]  }
  0x26   :  { %s76_s3 = sshll.u32 %s5030_s27, 4  ;;  %s99_s29 = sshll.u32 %s5031_s28, 4  ;;  %s77_s3 = int_to_ptr.vmem [resolvable:$true] %s76_s3  ;;  %s100_s29 = int_to_ptr.vmem [resolvable:$true] %s99_s29 }
  0x27   :  { %s6378_s1 = sld [smem:[#allocation40_spill]] }
  0x2d   :  { %s4681_s5 = scalar_lea.hbm %s6378_s1, 256 }
  0x2e   :  { %p4682_p8 = scmp.ne.s32.totalorder %s6378_s1, %s4681_s5  ;;  %p4685_p9 = scmp.lt.u32.totalorder %s4681_s5, %s6378_s1 }
  0x30   :  { %p4687_p10 = pnand %p4685_p9, %p4682_p8 }
  0x32   :  { %4690 = shalt.err (!%p4687_p10)
}
  0x33   :  { %s4691_s30 = scalar_lea.vmem %s77_s3, 256  ;;  %p4696_p12 = scmp.lt.s32.totalorder %s77_s3, %s77_s3 }
  0x34   :  { %p4692_p11 = scmp.ne.s32.totalorder %s77_s3, %s4691_s30  ;;  %p4697_p13 = scmp.lt.s32.totalorder %s4691_s30, %s4691_s30 }
  0x36   :  { %p4698_p0 = por %p4697_p13, %p4696_p12 }
  0x38   :  { %p4699_p1 = pnand %p4698_p0, %p4692_p11 }
  0x3a   :  { %4702 = shalt.err (!%p4699_p1)
}
  0x3b   :  { %s6368_s23 = smov 64   ;;  %s5033_s26 = smov 4  }
  0x3c   :  { %82 = dma.hbm_to_vmem [thread:$0]  %s6378_s1, 256, %s77_s3, [#allocation10], %s6368_s23, %s6368_s23, %s5033_s26  }
  0x3d   :  { %s6379_s0 = sld [smem:[#allocation42_spill]] }
  0x43   :  { %s4703_s5 = scalar_lea.hbm %s6379_s0, 64 }
  0x44   :  { %p4704_p2 = scmp.ne.s32.totalorder %s6379_s0, %s4703_s5  ;;  %p4707_p3 = scmp.lt.u32.totalorder %s4703_s5, %s6379_s0 }
  0x46   :  { %p4709_p4 = pnand %p4707_p3, %p4704_p2 }
  0x48   :  { %4712 = shalt.err (!%p4709_p4)
}
  0x49   :  { %s4713_s30 = scalar_lea.vmem %s100_s29, 64  ;;  %p4718_p6 = scmp.lt.s32.totalorder %s100_s29, %s100_s29 }
  0x4a   :  { %p4714_p5 = scmp.ne.s32.totalorder %s100_s29, %s4713_s30  ;;  %p4719_p7 = scmp.lt.s32.totalorder %s4713_s30, %s4713_s30 }
  0x4c   :  { %p4720_p8 = por %p4719_p7, %p4718_p6 }
  0x4e   :  { %p4721_p9 = pnand %p4720_p8, %p4714_p5 }
  0x50   :  { %4724 = shalt.err (!%p4721_p9)
}
  0x51   :  { %102 = dma.hbm_to_vmem [thread:$0]  %s6379_s0, 64, %s100_s29, [#allocation13]  }
  0x52   :  { %s5034_s2 = smov [#allocation15]   ;;  %s5035_s28 = smov [#allocation18]  }
  0x53   :  { %s120_s27 = sshll.u32 %s5034_s2, 4  ;;  %s148_s4 = sshll.u32 %s5035_s28, 4  ;;  %s121_s27 = int_to_ptr.vmem [resolvable:$true] %s120_s27  ;;  %s149_s4 = int_to_ptr.vmem [resolvable:$true] %s148_s4 }
  0x54   :  { %s4725_s16 = scalar_lea.hbm %s6345_s7, 128 }
  0x55   :  { %p4726_p10 = scmp.ne.s32.totalorder %s6345_s7, %s4725_s16  ;;  %p4729_p11 = scmp.lt.u32.totalorder %s4725_s16, %s6345_s7 }
  0x57   :  { %p4731_p12 = pnand %p4729_p11, %p4726_p10 }
  0x59   :  { %4734 = shalt.err (!%p4731_p12)
}
  0x5a   :  { %s4735_s29 = scalar_lea.vmem %s121_s27, 128  ;;  %p4740_p0 = scmp.lt.s32.totalorder %s121_s27, %s121_s27 }
  0x5b   :  { %p4736_p13 = scmp.ne.s32.totalorder %s121_s27, %s4735_s29  ;;  %p4741_p1 = scmp.lt.s32.totalorder %s4735_s29, %s4735_s29 }
  0x5d   :  { %p4742_p2 = por %p4741_p1, %p4740_p0 }
  0x5f   :  { %p4743_p3 = pnand %p4742_p2, %p4736_p13 }
  0x61   :  { %4746 = shalt.err (!%p4743_p3)
}
  0x62   :  { %s6380_s0 = smov 64   ;;  %s4747_s28 = scalar_lea.hbm %s6349_s11, 512 }
  0x63   :  { %126 = dma.hbm_to_vmem [thread:$0]  %s6345_s7, 128, %s121_s27, [#allocation16], %s6380_s0, %s6380_s0, %s5033_s26  }
  0x64   :  { %p4748_p4 = scmp.ne.s32.totalorder %s6349_s11, %s4747_s28  ;;  %p4751_p5 = scmp.lt.u32.totalorder %s4747_s28, %s6349_s11 }
  0x66   :  { %p4753_p6 = pnand %p4751_p5, %p4748_p4 }
  0x68   :  { %4756 = shalt.err (!%p4753_p6)
}
  0x69   :  { %s4757_s25 = scalar_lea.vmem %s149_s4, 512  ;;  %p4762_p8 = scmp.lt.s32.totalorder %s149_s4, %s149_s4 }
  0x6a   :  { %p4758_p7 = scmp.ne.s32.totalorder %s149_s4, %s4757_s25  ;;  %p4763_p9 = scmp.lt.s32.totalorder %s4757_s25, %s4757_s25 }
  0x6c   :  { %p4764_p10 = por %p4763_p9, %p4762_p8 }
  0x6e   :  { %p4765_p11 = pnand %p4764_p10, %p4758_p7 }
  0x70   :  { %4768 = shalt.err (!%p4765_p11)
}
  0x71   :  { %154 = dma.hbm_to_vmem [thread:$0]  %s6349_s11, 512, %s149_s4, [#allocation19], %s6380_s0, %s6380_s0, %s5033_s26  }
  0x72   :  { %s5036_s30 = smov [#allocation3]   ;;  %s5037_s3 = smov [#allocation8]  }
  0x73   :  { %s45_s29 = sshll.u32 %s5036_s30, 4  ;;  %s64_s1 = sshll.u32 %s5037_s3, 4  ;;  %s46_s29 = int_to_ptr.vmem [resolvable:$true] %s45_s29  ;;  %s65_s1 = int_to_ptr.vmem [resolvable:$true] %s64_s1 }
  0x74   :  { %s6381_s28 = sld [smem:[#allocation37_spill]] }
  0x7a   :  { %s4769_s24 = scalar_lea.hbm %s6381_s28, 64 }
  0x7b   :  { %p4770_p12 = scmp.ne.s32.totalorder %s6381_s28, %s4769_s24  ;;  %p4773_p13 = scmp.lt.u32.totalorder %s4769_s24, %s6381_s28 }
  0x7d   :  { %p4775_p0 = pnand %p4773_p13, %p4770_p12 }
  0x7f   :  { %4778 = shalt.err (!%p4775_p0)
}
  0x80   :  { %s4779_s11 = scalar_lea.vmem %s46_s29, 64  ;;  %p4784_p2 = scmp.lt.s32.totalorder %s46_s29, %s46_s29 }
  0x81   :  { %p4780_p1 = scmp.ne.s32.totalorder %s46_s29, %s4779_s11  ;;  %p4785_p3 = scmp.lt.s32.totalorder %s4779_s11, %s4779_s11 }
  0x83   :  { %p4786_p4 = por %p4785_p3, %p4784_p2 }
  0x85   :  { %p4787_p5 = pnand %p4786_p4, %p4780_p1 }
  0x87   :  { %4790 = shalt.err (!%p4787_p5)
}
  0x88   :  { %48 = dma.hbm_to_vmem [thread:$0]  %s6381_s28, 64, %s46_s29, [#allocation4]  }
  0x89   :  { %s6382_s3 = sld [smem:[#allocation39_spill]] }
  0x8f   :  { %s4791_s2 = scalar_lea.hbm %s6382_s3, 256 }
  0x90   :  { %p4792_p6 = scmp.ne.s32.totalorder %s6382_s3, %s4791_s2  ;;  %p4795_p7 = scmp.lt.u32.totalorder %s4791_s2, %s6382_s3 }
  0x92   :  { %p4797_p8 = pnand %p4795_p7, %p4792_p6 }
  0x94   :  { %4800 = shalt.err (!%p4797_p8)
}
  0x95   :  { %s4801_s6 = scalar_lea.vmem %s65_s1, 256  ;;  %p4806_p10 = scmp.lt.s32.totalorder %s65_s1, %s65_s1 }
  0x96   :  { %p4802_p9 = scmp.ne.s32.totalorder %s65_s1, %s4801_s6  ;;  %p4807_p11 = scmp.lt.s32.totalorder %s4801_s6, %s4801_s6 }
  0x98   :  { %p4808_p12 = por %p4807_p11, %p4806_p10 }
  0x9a   :  { %p4809_p13 = pnand %p4808_p12, %p4802_p9 }
  0x9c   :  { %4812 = shalt.err (!%p4809_p13)
}
  0x9d   :  { %70 = dma.hbm_to_vmem [thread:$0]  %s6382_s3, 256, %s65_s1, [#allocation7], %s6380_s0, %s6380_s0, %s5033_s26  }
  0x9e   :  { %s5038_s25 = smov [#allocation11]   ;;  %s5039_s4 = smov [#allocation14]  }
  0x9f   :  { %s89_s11 = sshll.u32 %s5038_s25, 4  ;;  %s108_s7 = sshll.u32 %s5039_s4, 4  ;;  %s90_s11 = int_to_ptr.vmem [resolvable:$true] %s89_s11  ;;  %s109_s7 = int_to_ptr.vmem [resolvable:$true] %s108_s7 }
  0xa0   :  { %s6383_s2 = sld [smem:[#allocation41_spill]] }
  0xa6   :  { %s4813_s23 = scalar_lea.hbm %s6383_s2, 64 }
  0xa7   :  { %p4814_p0 = scmp.ne.s32.totalorder %s6383_s2, %s4813_s23  ;;  %p4817_p1 = scmp.lt.u32.totalorder %s4813_s23, %s6383_s2 }
  0xa9   :  { %p4819_p2 = pnand %p4817_p1, %p4814_p0 }
  0xab   :  { %4822 = shalt.err (!%p4819_p2)
}
  0xac   :  { %s4823_s1 = scalar_lea.vmem %s90_s11, 64  ;;  %p4828_p4 = scmp.lt.s32.totalorder %s90_s11, %s90_s11 }
  0xad   :  { %p4824_p3 = scmp.ne.s32.totalorder %s90_s11, %s4823_s1  ;;  %p4829_p5 = scmp.lt.s32.totalorder %s4823_s1, %s4823_s1 }
  0xaf   :  { %p4830_p6 = por %p4829_p5, %p4828_p4 }
  0xb1   :  { %p4831_p7 = pnand %p4830_p6, %p4824_p3 }
  0xb3   :  { %4834 = shalt.err (!%p4831_p7)
}
  0xb4   :  { %92 = dma.hbm_to_vmem [thread:$0]  %s6383_s2, 64, %s90_s11, [#allocation10]  }
  0xb5   :  { %s6384_s4 = sld [smem:[#allocation43_spill]] }
  0xbb   :  { %s4835_s27 = scalar_lea.hbm %s6384_s4, 128 }
  0xbc   :  { %p4836_p8 = scmp.ne.s32.totalorder %s6384_s4, %s4835_s27  ;;  %p4839_p9 = scmp.lt.u32.totalorder %s4835_s27, %s6384_s4 }
  0xbe   :  { %p4841_p10 = pnand %p4839_p9, %p4836_p8 }
  0xc0   :  { %4844 = shalt.err (!%p4841_p10)
}
  0xc1   :  { %s4845_s16 = scalar_lea.vmem %s109_s7, 128  ;;  %p4850_p12 = scmp.lt.s32.totalorder %s109_s7, %s109_s7 }
  0xc2   :  { %p4846_p11 = scmp.ne.s32.totalorder %s109_s7, %s4845_s16  ;;  %p4851_p13 = scmp.lt.s32.totalorder %s4845_s16, %s4845_s16 }
  0xc4   :  { %p4852_p0 = por %p4851_p13, %p4850_p12 }
  0xc6   :  { %p4853_p1 = pnand %p4852_p0, %p4846_p11 }
  0xc8   :  { %4856 = shalt.err (!%p4853_p1)
}
  0xc9   :  { %114 = dma.hbm_to_vmem [thread:$0]  %s6384_s4, 128, %s109_s7, [#allocation13], %s6380_s0, %s6380_s0, %s5033_s26  }
  0xca   :  { %s5040_s6 = smov [#allocation17]   ;;  %s5041_s3 = smov [#allocation20]  }
  0xcb   :  { %s132_s1 = sshll.u32 %s5040_s6, 4  ;;  %s161_s29 = sshll.u32 %s5041_s3, 4  ;;  %s133_s1 = int_to_ptr.vmem [resolvable:$true] %s132_s1  ;;  %s162_s29 = int_to_ptr.vmem [resolvable:$true] %s161_s29 }
  0xcc   :  { %s4857_s27 = scalar_lea.hbm %s6346_s8, 1024 }
  0xcd   :  { %p4858_p2 = scmp.ne.s32.totalorder %s6346_s8, %s4857_s27  ;;  %p4861_p3 = scmp.lt.u32.totalorder %s4857_s27, %s6346_s8 }
  0xcf   :  { %p4863_p4 = pnand %p4861_p3, %p4858_p2 }
  0xd1   :  { %4866 = shalt.err (!%p4863_p4)
}
  0xd2   :  { %s4867_s7 = scalar_lea.vmem %s133_s1, 1024  ;;  %p4872_p6 = scmp.lt.s32.totalorder %s133_s1, %s133_s1 }
  0xd3   :  { %p4868_p5 = scmp.ne.s32.totalorder %s133_s1, %s4867_s7  ;;  %p4873_p7 = scmp.lt.s32.totalorder %s4867_s7, %s4867_s7 }
  0xd5   :  { %p4874_p8 = por %p4873_p7, %p4872_p6 }
  0xd7   :  { %p4875_p9 = pnand %p4874_p8, %p4868_p5 }
  0xd9   :  { %4878 = shalt.err (!%p4875_p9)
}
  0xda   :  { %138 = dma.hbm_to_vmem [thread:$0]  %s6346_s8, 1024, %s133_s1, [#allocation16], %s6380_s0, %s6380_s0, %s5033_s26  }
  0xdb   :  { %s4879_s6 = scalar_lea.hbm %s6350_s12, 16 }
  0xdc   :  { %p4880_p10 = scmp.ne.s32.totalorder %s6350_s12, %s4879_s6  ;;  %p4883_p11 = scmp.lt.u32.totalorder %s4879_s6, %s6350_s12 }
  0xde   :  { %p4885_p12 = pnand %p4883_p11, %p4880_p10 }
  0xe0   :  { %4888 = shalt.err (!%p4885_p12)
}
  0xe1   :  { %s4889_s30 = scalar_lea.vmem %s162_s29, 16  ;;  %s4893_s23 = scalar_lea.vmem %s162_s29, 32 }
  0xe2   :  { %p4890_p13 = scmp.ne.s32.totalorder %s162_s29, %s4889_s30  ;;  %p4894_p0 = scmp.lt.s32.totalorder %s162_s29, %s162_s29 }
  0xe3   :  { %p4895_p1 = scmp.lt.s32.totalorder %s4893_s23, %s4889_s30 }
  0xe5   :  { %p4896_p2 = por %p4895_p1, %p4894_p0 }
  0xe7   :  { %p4897_p3 = pnand %p4896_p2, %p4890_p13 }
  0xe9   :  { %4900 = shalt.err (!%p4897_p3)
}
  0xea   :  { %164 = dma.hbm_to_vmem [thread:$0]  %s6350_s12, 16, %s162_s29, [#allocation19]  }
  0xeb   :  { %5011 = dma.done.wait [#allocation4], 64  }
  0xec   :  { %5012 = vsyncadd [#allocation4], 4294967232 }
  0xed   :  { %5013 = dma.done.wait [#allocation7], 320  }
  0xee   :  { %5014 = vsyncadd [#allocation7], 4294966976 }
  0xef   :  { %5015 = dma.done.wait [#allocation10], 320  }
  0xf0   :  { %5016 = vsyncadd [#allocation10], 4294966976 }
  0xf1   :  { %5017 = dma.done.wait [#allocation13], 192  }
  0xf2   :  { %5018 = vsyncadd [#allocation13], 4294967104 }
  0xf3   :  { %5019 = dma.done.wait [#allocation16], 1152  }
  0xf4   :  { %5020 = vsyncadd [#allocation16], 4294966144 }
  0xf5   :  { %5021 = dma.done.wait [#allocation19], 528  }
  0xf6   :  { %5022 = vsyncadd [#allocation19], 4294966768  ;;  %v5042_v1 = vmov 0.0   ;;  %vm5043_vm0 = vmmov 0   ;;  %v208_v2 = vld [vmem:[#allocation6] sm:$0xf]  ;;  %v497_v43 = vlaneseq }
  0xf7   :  { %4221 = vmatprep.subr.bf16.mxu0 %v5042_v1  ;;  %4241 = vmatprep.subr.bf16.mxu1 %v5042_v1  ;;  %v209_v3 = vld [vmem:[#allocation14] sm:$0xf]  ;;  %s5044_s12 = smov 32   ;;  %s5045_s29 = smov 96   ;;  %v4485_v4 = vld [vmem:[#allocation17] sm:$0xff]   ;;  %v4486_v6 = vld [vmem:[#allocation17 + $0x8] sm:$0xff]  }
  0xf8   :  { %4237 = vmatprep.mubr.msk.bf16.mxu0 %vm5043_vm0, %v5042_v1  ;;  %4249 = vmatprep.mubr.msk.bf16.mxu1 %vm5043_vm0, %v5042_v1  ;;  %v207_v5 = vld [vmem:[#allocation3] sm:$0xf]  ;;  %v4487_v7 = vld [vmem:[#allocation17 + $0x10] sm:$0xff]   ;;  %v4488_v8 = vld [vmem:[#allocation17 + $0x18] sm:$0xff]   ;;  %vm225_vm1 = vcmask 261120   ;;  %vm227_vm2 = vcmask 523264  }
  0xf9   :  { %214 = vrot.lane.b32.xlu0 %v208_v2, %s5044_s12  ;;  %222 = vrot.lane.b32.xlu1 %v209_v3, %s5045_s29  ;;  %v211_v9 = vld [vmem:[#allocation15] sm:$0xf]  ;;  %v4489_v10 = vld [vmem:[#allocation17 + $0x20] sm:$0xff]   ;;  %v4490_v11 = vld [vmem:[#allocation17 + $0x28] sm:$0xff]   ;;  %vm229_vm3 = vcmask 785408   ;;  %v5367_v45 = vshrl.u32 %v497_v43, 7 }
  0xfa   :  { %4222 = vmatpush3.bf16.msra.mxu0 %v4485_v4  ;;  %v4491_v12 = vld [vmem:[#allocation17 + $0x30] sm:$0xff]   ;;  %v4492_v13 = vld [vmem:[#allocation17 + $0x38] sm:$0xff]   ;;  %v5354_v35 = vld [vmem:[#allocation11] sm:$0xf]  ;;  %v5046_v41 = vmov 1966171168  }
  0xfb   :  { %4223 = vmatprep.subr.bf16.mxu0 %v5042_v1  ;;  %v5341_v15 = vld [vmem:[#allocation14 + $0x4] sm:$0xf]  ;;  %v4056_v22 = vld [vmem:[%s6347_s9] ss:$0 sm:$0xff]  ;;  %v495_v42 = vunpack.c.l.s4 %v5046_v41  ;;  %v5047_v46 = vmov 0   ;;  %v5379_v51 = vsub.s32 0, %v5367_v45 }
  0xfc   :  { %4484 = vset.pattern.permute.xlu1 %v5047_v46  ;;  %4483 = vset.pattern.permute.xlu0 %v5047_v46  ;;  %v5394_v2 = vld [vmem:[#allocation12] sm:$0xf]  ;;  %v5048_v4 = vmov 1934713408   ;;  %vm844_vm4 = vcmask 1041409   ;;  %vm846_vm5 = vcmask 1042434  }
  0xfd   :  { %218 = vrot.lane.b32.xlu0 %v207_v5, %s6380_s0  ;;  %v496_v44 = vunpack.c.0.s8 %v495_v42  ;;  %v538_v5 = vunpack.c.l.s4 %v5048_v4  ;;  %vm848_vm6 = vcmask 1043459   ;;  %vm851_vm7 = vcmask 60416   ;;  %s5051_s2 = smov [#allocation25]  }
  0xfe   :  { %4224 = vmatpush3.bf16.msra.mxu0 %v4486_v6  ;;  %vm1102_vm8 = vcmask 1043456   ;;  %vm1098_vm9 = vcmask 64512   ;;  %vm1677_vm10 = vcmask 257024   ;;  %vm1805_vm12 = vcmask 3072   ;;  %s4011_s6 = sshll.u32 %s5051_s2, 4  ;;  %s4012_s6 = int_to_ptr.vmem [resolvable:$true] %s4011_s6 }
  0xff   :  { %4225 = vmatprep.subr.bf16.mxu0 %v5042_v1  ;;  %v5372_v47 = vsub.s32 %v496_v44, %v5367_v45 }
 0x101   :  { %351 = vrot.lane.b32.xlu0 %v211_v9, %s5044_s12 }
 0x102   :  { %4226 = vmatpush3.bf16.msra.mxu0 %v4487_v7 }
 0x103   :  { %4227 = vmatprep.subr.bf16.mxu0 %v5042_v1 }
 0x106   :  { %4228 = vmatpush3.bf16.msra.mxu0 %v4488_v8  ;;  %v539_v8 = vunpack.c.0.s8 %v538_v5 }
 0x107   :  { %4229 = vmatprep.subr.bf16.mxu0 %v5042_v1 }
 0x10a   :  { %4230 = vmatpush3.bf16.msra.mxu0 %v4489_v10 }
 0x10b   :  { %4231 = vmatprep.subr.bf16.mxu0 %v5042_v1 }
 0x10e   :  { %4232 = vmatpush3.bf16.msra.mxu0 %v4490_v11  ;;  %v519_v11 = vrot.slane %v5354_v35, 2 }
 0x10f   :  { %4233 = vmatprep.subr.bf16.mxu0 %v5042_v1 }
 0x112   :  { %4234 = vmatpush3.bf16.msra.mxu0 %v4491_v12 }
 0x113   :  { %4235 = vmatprep.subr.bf16.mxu0 %v5042_v1 }
 0x116   :  { %4236 = vmatpush3.bf16.msra.mxu0 %v4492_v13  ;;  %v5405_v13 = vsub.s32 %v539_v8, %v5367_v45 }
 0x117   :  { %4265 = vmatprep.subr.bf16.mxu0 %v5042_v1 }
 0x16b   :  { %v215_v14 = vpop.permute.xlu0 %214  ;;  %v223_v16 = vpop.permute.xlu1 %222 }
 0x16c   :  { %v226_v17 = vsel %vm225_vm1, %v5341_v15, %v215_v14 }
 0x16f   :  { %v219_v18 = vpop.permute.xlu0 %218 }
 0x170   :  { %v228_v19 = vsel %vm227_vm2, %v226_v17, %v219_v18 }
 0x171   :  { %v230_v20 = vsel %vm229_vm3, %v228_v19, %v223_v16 }
 0x172   :  { %v247_v21 = vpack.c.bf16 %v230_v20, %v230_v20 }
 0x173   :  { %v352_v36 = vpop.permute.xlu0 %351 }
 0x174   :  { %4238 = vmatmul.mubr.bf16.vlgmr.msra.gmra.mrb[0].mxu0 %v247_v21 }
 0x175   :  { %4267 = vmatprep.mubr.msk.bf16.mxu0 %vm5043_vm0, %v5042_v1 }
 0x247   :  { %v337_v23 = vpop.f32.mrb[0].mxu0 }
 0x248   :  { %v338_v24 = vadd.f32 %v4056_v22, %v337_v23  ;;  %v4239_v25 = vpop.f32.mrb[1].mxu0 }
 0x249   :  { %v340_v26 = vpop.f32.mrb[2].mxu0 }
 0x24a   :  { %4515 = vtanh.f32 %v338_v24  ;;  %v4240_v27 = vpop.f32.mrb[3].mxu0  ;;  %v4065_v29 = vmul.f32 -1.442695, %v338_v24 }
 0x24c   :  { %4517 = vpow2.f32 %v4065_v29 }
 0x254   :  { %v4516_v28 = vpop.eup %4515 }
 0x255   :  { %356 = vrot.lane.b32.xlu1 %v4516_v28, %s5044_s12 }
 0x256   :  { %v4518_v30 = vpop.eup %4517 }
 0x257   :  { %v346_v31 = vadd.f32 1.0, %v4518_v30 }
 0x259   :  { %4519 = vrcp.f32 %v346_v31 }
 0x263   :  { %v4520_v32 = vpop.eup %4519 }
 0x264   :  { %v354_v37 = vmul.f32 %v4520_v32, %v352_v36 }
 0x2c7   :  { %v357_v33 = vpop.permute.xlu1 %356 }
 0x2c8   :  { %v359_v34 = vmul.f32 %v4520_v32, %v357_v33 }
 0x2ca   :  { %361 = vrot.lane.b32.xlu1 %v359_v34, %s5044_s12 }
 0x2ce   :  { %521 = vrot.lane.b32.xlu1 %v5354_v35, %s5045_s29 }
 0x2d2   :  { %529 = vrot.lane.b32.xlu1 %v5354_v35, %s5044_s12 }
 0x33c   :  { %v362_v38 = vpop.permute.xlu1 %361 }
 0x33d   :  { %v5360_v39 = vadd.f32 %v362_v38, %v354_v37 }
 0x33f   :  { %4521 = vtanh.f32 %v5360_v39 }
 0x340   :  { %v522_v3 = vpop.permute.xlu1 %521 }
 0x341   :  { %v523_v9 = vrot.slane %v522_v3, 2 }
 0x344   :  { %v530_v6 = vpop.permute.xlu1 %529 }
 0x345   :  { %v531_v10 = vrot.slane %v530_v6, 2  ;;  %v545_v14 = vcombine.low %v522_v3, %v530_v6 }
 0x347   :  { %v563_v16 = vcombine.low %v523_v9, %v531_v10  ;;  %v552_v19 = vrot.slane %v545_v14, %v5405_v13 }
 0x349   :  { %v4522_v40 = vpop.eup %4521  ;;  %v570_v20 = vrot.slane %v563_v16, %v5405_v13  ;;  %v577_v23 = vshrl.u32 %v552_v19, 16 }
 0x34a   :  { %367 = vrot.lane.b32.xlu0 %v4522_v40, %s5044_s12 }
 0x34b   :  { %v593_v24 = vshrl.u32 %v570_v20, 16  ;;  %v571_v36 = vcombine.high %v570_v20, %v5047_v46 }
 0x34e   :  { %525 = vrot.lane.b32.xlu0 %v5354_v35, %s6380_s0 }
 0x3bc   :  { %v368_v48 = vpop.permute.xlu0 %367 }
 0x3bd   :  { %v5374_v49 = vmul.f32 %v4520_v32, %v368_v48 }
 0x3bf   :  { %v500_v50 = vrot.slane %v5374_v49, %v5372_v47 }
 0x3c0   :  { %v526_v7 = vpop.permute.xlu0 %525 }
 0x3c1   :  { %v508_v52 = vrot.slane %v500_v50, %v5372_v47  ;;  %v501_v53 = vcombine.high %v500_v50, %v500_v50  ;;  %v527_v12 = vrot.slane %v526_v7, 2  ;;  %v536_v17 = vcombine.low %v5354_v35, %v526_v7 }
 0x3c2   :  { %v553_v35 = vcombine.high %v552_v19, %v5047_v46 }
 0x3c3   :  { %v615_v54 = vrot.slane %v508_v52, %v5379_v51  ;;  %v515_v55 = vrot.slane %v501_v53, %v5372_v47  ;;  %v516_v58 = vcombine.high %v508_v52, %v508_v52  ;;  %v554_v18 = vcombine.low %v519_v11, %v527_v12 }
 0x3c4   :  { %v543_v21 = vrot.slane %v536_v17, %v5405_v13  ;;  %v585_v52 = vshrl.u32 %v553_v35, 16  ;;  %v601_v53 = vshrl.u32 %v571_v36, 16 }
 0x3c5   :  { %632 = vrot.lane.b32.xlu0 %v615_v54, %s6380_s0  ;;  %v628_v56 = vcombine.high %v615_v54, %v615_v54  ;;  %v619_v57 = vrot.slane %v515_v55, %v5379_v51  ;;  %v623_v60 = vrot.slane %v516_v58, %v5379_v51  ;;  %v517_v61 = vcombine.high %v515_v55, %v515_v55 }
 0x3c6   :  { %v561_v22 = vrot.slane %v554_v18, %v5405_v13  ;;  %v574_v25 = vpack.i.b16 %v552_v19, %v543_v21  ;;  %v576_v27 = vshrl.u32 %v543_v21, 16  ;;  %v544_v34 = vcombine.high %v543_v21, %v5047_v46 }
 0x3c7   :  { %634 = vrot.lane.b32.xlu1 %v628_v56, %s6380_s0  ;;  %v629_v59 = vcombine.high %v619_v57, %v619_v57  ;;  %v630_v62 = vcombine.high %v623_v60, %v623_v60  ;;  %v627_v63 = vrot.slane %v517_v61, %v5379_v51  ;;  %v693_v21 = vrot.slane %v5394_v2, 2 }
 0x3c8   :  { %v590_v26 = vpack.i.b16 %v570_v20, %v561_v22  ;;  %v592_v28 = vshrl.u32 %v561_v22, 16  ;;  %v604_v29 = vunpack.c.l.bf16 %v574_v25  ;;  %v578_v31 = vpack.i.b16 %v577_v23, %v576_v27 }
 0x3c9   :  { %636 = vrot.lane.b32.xlu0 %v619_v57, %s6380_s0  ;;  %v631_v0 = vcombine.high %v627_v63, %v627_v63  ;;  %v562_v37 = vcombine.high %v561_v22, %v5047_v46  ;;  %v582_v50 = vpack.i.b16 %v553_v35, %v544_v34  ;;  %v584_v56 = vshrl.u32 %v544_v34, 16 }
 0x3ca   :  { %v605_v30 = vunpack.c.l.bf16 %v590_v26  ;;  %v594_v32 = vpack.i.b16 %v593_v24, %v592_v28  ;;  %v606_v42 = vunpack.c.l.bf16 %v578_v31 }
 0x3cb   :  { %638 = vrot.lane.b32.xlu1 %v629_v59, %s6380_s0  ;;  %v598_v55 = vpack.i.b16 %v571_v36, %v562_v37  ;;  %v600_v57 = vshrl.u32 %v562_v37, 16  ;;  %v586_v4 = vpack.i.b16 %v585_v52, %v584_v56 }
 0x3cc   :  { %v607_v44 = vunpack.c.l.bf16 %v594_v32 }
 0x3cd   :  { %640 = vrot.lane.b32.xlu0 %v623_v60, %s6380_s0  ;;  %v602_v5 = vpack.i.b16 %v601_v53, %v600_v57  ;;  %v610_v11 = vunpack.c.l.bf16 %v586_v4 }
 0x3cf   :  { %642 = vrot.lane.b32.xlu1 %v630_v62, %s6380_s0  ;;  %v608_v62 = vunpack.c.l.bf16 %v582_v50  ;;  %v611_v12 = vunpack.c.l.bf16 %v602_v5 }
 0x3d1   :  { %644 = vrot.lane.b32.xlu0 %v627_v63, %s6380_s0 }
 0x3d3   :  { %646 = vrot.lane.b32.xlu1 %v631_v0, %s6380_s0  ;;  %v609_v0 = vunpack.c.l.bf16 %v598_v55 }
 0x3d5   :  { %695 = vrot.lane.b32.xlu0 %v5394_v2, %s5045_s29 }
 0x3d7   :  { %699 = vrot.lane.b32.xlu1 %v5394_v2, %s6380_s0 }
 0x3d9   :  { %703 = vrot.lane.b32.xlu0 %v5394_v2, %s5044_s12 }
 0x437   :  { %v5412_v33 = vpop.permute.xlu0 %632 }
 0x438   :  { %v656_v40 = vmul.f32 %v5412_v33, %v604_v29 }
 0x439   :  { %v5418_v38 = vpop.permute.xlu1 %634 }
 0x43a   :  { %v657_v41 = vmul.f32 %v5418_v38, %v605_v30 }
 0x43b   :  { %v5422_v48 = vpop.permute.xlu0 %636 }
 0x43c   :  { %v672_v54 = vcombine.low %v656_v40, %v657_v41  ;;  %v658_v59 = vmul.f32 %v5422_v48, %v606_v42 }
 0x43d   :  { %v5424_v58 = vpop.permute.xlu1 %638 }
 0x43e   :  { %v659_v60 = vmul.f32 %v5424_v58, %v607_v44  ;;  %v680_v61 = vsel %vm225_vm1, %v672_v54, 0.0 }
 0x43f   :  { %681 = vadd.xlane.f32.xlu1 %v680_v61  ;;  %v5429_v63 = vpop.permute.xlu0 %640 }
 0x440   :  { %v673_v3 = vcombine.low %v658_v59, %v659_v60  ;;  %v660_v7 = vmul.f32 %v5429_v63, %v608_v62 }
 0x441   :  { %v5431_v6 = vpop.permute.xlu1 %642 }
 0x442   :  { %v661_v8 = vmul.f32 %v5431_v6, %v609_v0  ;;  %v683_v9 = vsel %vm225_vm1, %v673_v3, 0.0 }
 0x443   :  { %684 = vadd.xlane.f32.xlu0 %v683_v9  ;;  %v5436_v10 = vpop.permute.xlu0 %644 }
 0x444   :  { %v674_v14 = vcombine.low %v660_v7, %v661_v8  ;;  %v662_v17 = vmul.f32 %v5436_v10, %v610_v11 }
 0x445   :  { %v5438_v16 = vpop.permute.xlu1 %646 }
 0x446   :  { %v663_v18 = vmul.f32 %v5438_v16, %v611_v12  ;;  %v686_v19 = vsel %vm225_vm1, %v674_v14, 0.0 }
 0x447   :  { %687 = vadd.xlane.f32.xlu0 %v686_v19  ;;  %v696_v20 = vpop.permute.xlu0 %695 }
 0x448   :  { %v675_v22 = vcombine.low %v662_v17, %v663_v18  ;;  %v697_v27 = vrot.slane %v696_v20, 2 }
 0x449   :  { %v700_v23 = vpop.permute.xlu1 %699 }
 0x44a   :  { %v701_v24 = vrot.slane %v700_v23, 2  ;;  %v710_v25 = vcombine.low %v5394_v2, %v700_v23  ;;  %v689_v26 = vsel %vm225_vm1, %v675_v22, 0.0 }
 0x44b   :  { %690 = vadd.xlane.f32.xlu1 %v689_v26  ;;  %v704_v28 = vpop.permute.xlu0 %703 }
 0x44c   :  { %v717_v29 = vrot.slane %v710_v25, %v5405_v13  ;;  %v728_v30 = vcombine.low %v693_v21, %v701_v24  ;;  %v705_v31 = vrot.slane %v704_v28, 2  ;;  %v719_v32 = vcombine.low %v696_v20, %v704_v28 }
 0x44e   :  { %v735_v34 = vrot.slane %v728_v30, %v5405_v13  ;;  %v726_v35 = vrot.slane %v719_v32, %v5405_v13  ;;  %v737_v36 = vcombine.low %v697_v27, %v705_v31  ;;  %v750_v37 = vshrl.u32 %v717_v29, 16 }
 0x44f   :  { %v718_v40 = vcombine.high %v717_v29, %v5047_v46 }
 0x450   :  { %v744_v2 = vrot.slane %v737_v36, %v5405_v13  ;;  %v748_v41 = vpack.i.b16 %v726_v35, %v717_v29  ;;  %v751_v42 = vshrl.u32 %v726_v35, 16  ;;  %v766_v44 = vshrl.u32 %v735_v34, 16 }
 0x451   :  { %v727_v50 = vcombine.high %v726_v35, %v5047_v46  ;;  %v736_v52 = vcombine.high %v735_v34, %v5047_v46  ;;  %v758_v53 = vshrl.u32 %v718_v40, 16 }
 0x452   :  { %v764_v54 = vpack.i.b16 %v744_v2, %v735_v34  ;;  %v778_v55 = vunpack.c.l.bf16 %v748_v41  ;;  %v752_v56 = vpack.i.b16 %v751_v42, %v750_v37  ;;  %v767_v57 = vshrl.u32 %v744_v2, 16 }
 0x453   :  { %v745_v59 = vcombine.high %v744_v2, %v5047_v46  ;;  %v756_v60 = vpack.i.b16 %v727_v50, %v718_v40  ;;  %v759_v61 = vshrl.u32 %v727_v50, 16  ;;  %v774_v62 = vshrl.u32 %v736_v52, 16 }
 0x454   :  { %v779_v0 = vunpack.c.l.bf16 %v764_v54  ;;  %v768_v3 = vpack.i.b16 %v767_v57, %v766_v44  ;;  %v780_v4 = vunpack.c.l.bf16 %v752_v56  ;;  %v786_v11 = vmul.f32 %v778_v55, %v5412_v33 }
 0x455   :  { %v772_v5 = vpack.i.b16 %v745_v59, %v736_v52  ;;  %v782_v7 = vunpack.c.l.bf16 %v756_v60  ;;  %v760_v8 = vpack.i.b16 %v759_v61, %v758_v53  ;;  %v775_v9 = vshrl.u32 %v745_v59, 16 }
 0x456   :  { %v787_v12 = vmul.f32 %v779_v0, %v5418_v38  ;;  %v781_v14 = vunpack.c.l.bf16 %v768_v3  ;;  %v788_v46 = vmul.f32 %v780_v4, %v5422_v48  ;;  %v5511_v61 = vsub.s32 1, %v5367_v45 }
 0x457   :  { %v783_v17 = vunpack.c.l.bf16 %v772_v5  ;;  %v776_v18 = vpack.i.b16 %v775_v9, %v774_v62  ;;  %v784_v19 = vunpack.c.l.bf16 %v760_v8  ;;  %v790_v22 = vmul.f32 %v782_v7, %v5429_v63 }
 0x458   :  { %v802_v20 = vcombine.low %v786_v11, %v787_v12  ;;  %v789_v21 = vmul.f32 %v781_v14, %v5424_v58  ;;  %v5514_v62 = vsub.s32 2, %v5367_v45  ;;  %v5517_v0 = vsub.s32 3, %v5367_v45 }
 0x459   :  { %v791_v23 = vmul.f32 %v783_v17, %v5431_v6  ;;  %v785_v24 = vunpack.c.l.bf16 %v776_v18  ;;  %v792_v38 = vmul.f32 %v784_v19, %v5436_v10  ;;  %v827_v6 = vand.u32 127, %v497_v43 }
 0x45a   :  { %v810_v25 = vsel %vm225_vm1, %v802_v20, 0.0  ;;  %v803_v26 = vcombine.low %v788_v46, %v789_v21 }
 0x45b   :  { %811 = vadd.xlane.f32.xlu0 %v810_v25  ;;  %v804_v33 = vcombine.low %v790_v22, %v791_v23  ;;  %v793_v27 = vmul.f32 %v785_v24, %v5438_v16  ;;  %v5470_v30 = vsub.s32 %v827_v6, %v5367_v45 }
 0x45c   :  { %v813_v28 = vsel %vm225_vm1, %v803_v26, 0.0 }
 0x45d   :  { %814 = vadd.xlane.f32.xlu1 %v813_v28  ;;  %v805_v48 = vcombine.low %v792_v38, %v793_v27  ;;  %v816_v58 = vsel %vm225_vm1, %v804_v33, 0.0 }
 0x45f   :  { %817 = vadd.xlane.f32.xlu0 %v816_v58  ;;  %v819_v63 = vsel %vm225_vm1, %v805_v48, 0.0 }
 0x461   :  { %820 = vadd.xlane.f32.xlu1 %v819_v63 }
 0x4cc   :  { %v5472_v10 = vpop.xlane.xlu1 %681 }
 0x4cd   :  { %v831_v34 = vrot.slane %v5472_v10, %v5470_v30 }
 0x4d0   :  { %v5467_v29 = vpop.xlane.xlu0 %684 }
 0x4d1   :  { %v835_v31 = vrot.slane %v5467_v29, %v5470_v30 }
 0x4d3   :  { %v845_v36 = vsel %vm844_vm4, %v835_v31, %v831_v34 }
 0x4d4   :  { %v5474_v16 = vpop.xlane.xlu0 %687 }
 0x4d5   :  { %v839_v32 = vrot.slane %v5474_v16, %v5470_v30 }
 0x4d7   :  { %v847_v37 = vsel %vm846_vm5, %v839_v32, %v845_v36 }
 0x4d8   :  { %v5482_v43 = vpop.xlane.xlu1 %690 }
 0x4d9   :  { %v843_v35 = vrot.slane %v5482_v43, %v5470_v30 }
 0x4db   :  { %v849_v40 = vsel %vm848_vm6, %v843_v35, %v847_v37 }
 0x4dc   :  { %v852_v2 = vsel %vm851_vm7, %v849_v40, -inf }
 0x4dd   :  { %853 = vmax.xlane.f32.xlu0 %v852_v2 }
 0x4e8   :  { %v5490_v41 = vpop.xlane.xlu0 %811 }
 0x4e9   :  { %v963_v44 = vrot.slane %v5490_v41, %v5470_v30 }
 0x4ea   :  { %v5492_v42 = vpop.xlane.xlu1 %814 }
 0x4eb   :  { %v967_v50 = vrot.slane %v5492_v42, %v5470_v30 }
 0x4ec   :  { %v5498_v52 = vpop.xlane.xlu0 %817 }
 0x4ed   :  { %v971_v53 = vrot.slane %v5498_v52, %v5470_v30  ;;  %v976_v54 = vsel %vm844_vm4, %v967_v50, %v963_v44 }
 0x4ee   :  { %v5503_v55 = vpop.xlane.xlu1 %820 }
 0x4ef   :  { %v975_v56 = vrot.slane %v5503_v55, %v5470_v30  ;;  %v977_v57 = vsel %vm846_vm5, %v971_v53, %v976_v54 }
 0x4f1   :  { %v978_v59 = vsel %vm848_vm6, %v975_v56, %v977_v57 }
 0x4f2   :  { %v980_v60 = vsel %vm851_vm7, %v978_v59, -inf }
 0x4f3   :  { %981 = vmax.xlane.f32.xlu1 %v980_v60 }
 0x56a   :  { %v854_v3 = vpop.xlane.xlu0 %853 }
 0x56b   :  { %v859_v4 = vrot.slane %v854_v3, %v5379_v51  ;;  %v863_v5 = vrot.slane %v854_v3, %v5511_v61  ;;  %v867_v7 = vrot.slane %v854_v3, %v5514_v62  ;;  %v871_v11 = vrot.slane %v854_v3, %v5517_v0 }
 0x56d   :  { %v876_v8 = vsub.f32 %v5472_v10, %v859_v4  ;;  %v877_v9 = vsub.f32 %v5467_v29, %v863_v5  ;;  %v878_v12 = vsub.f32 %v5474_v16, %v867_v7  ;;  %v879_v18 = vsub.f32 %v5482_v43, %v871_v11 }
 0x56f   :  { %v880_v14 = vmul.f32 1.442695, %v876_v8  ;;  %v882_v17 = vmul.f32 1.442695, %v877_v9  ;;  %v884_v19 = vmul.f32 1.442695, %v878_v12 }
 0x570   :  { %v886_v20 = vmul.f32 1.442695, %v879_v18 }
 0x571   :  { %4523 = vpow2.f32 %v880_v14  ;;  %v4493_v14 = vld [vmem:[%s6348_s10] sm:$0xff]  }
 0x572   :  { %4525 = vpow2.f32 %v882_v17  ;;  %4242 = vmatpush3.bf16.msra.mxu1 %v4493_v14 }
 0x573   :  { %4527 = vpow2.f32 %v884_v19  ;;  %4243 = vmatprep.subr.bf16.mxu1 %v5042_v1 }
 0x574   :  { %4529 = vpow2.f32 %v886_v20 }
 0x57b   :  { %v5527_v46 = vpop.eup %4523 }
 0x57c   :  { %v5529_v21 = vpop.eup %4525  ;;  %893 = vperm.xlu0 %4483, %v5527_v46  }
 0x57d   :  { %896 = vperm.xlu1 %4484, %v5529_v21   ;;  %v5533_v22 = vpop.eup %4527 }
 0x57e   :  { %v5541_v27 = vpop.eup %4529 }
 0x580   :  { %v982_v23 = vpop.xlane.xlu1 %981 }
 0x581   :  { %v987_v24 = vrot.slane %v982_v23, %v5379_v51  ;;  %v991_v25 = vrot.slane %v982_v23, %v5511_v61  ;;  %899 = vperm.xlu1 %4484, %v5533_v22   ;;  %v995_v26 = vrot.slane %v982_v23, %v5514_v62  ;;  %v999_v48 = vrot.slane %v982_v23, %v5517_v0 }
 0x583   :  { %v1004_v33 = vsub.f32 %v5490_v41, %v987_v24  ;;  %v1005_v38 = vsub.f32 %v5492_v42, %v991_v25  ;;  %v1006_v58 = vsub.f32 %v5498_v52, %v995_v26  ;;  %v1007_v6 = vsub.f32 %v5503_v55, %v999_v48  ;;  %v4494_v24 = vld [vmem:[%s6348_s10 + $0x8] sm:$0xff]   ;;  %v4495_v25 = vld [vmem:[%s6348_s10 + $0x10] sm:$0xff]   ;;  %v4496_v26 = vld [vmem:[%s6348_s10 + $0x18] sm:$0xff]  }
 0x584   :  { %4244 = vmatpush3.bf16.msra.mxu1 %v4494_v24 }
 0x585   :  { %v1008_v28 = vmul.f32 1.442695, %v1004_v33  ;;  %902 = vperm.xlu1 %4484, %v5541_v27   ;;  %v1010_v63 = vmul.f32 1.442695, %v1005_v38  ;;  %v1012_v31 = vmul.f32 1.442695, %v1006_v58  ;;  %4245 = vmatprep.subr.bf16.mxu1 %v5042_v1 }
 0x586   :  { %v1014_v32 = vmul.f32 1.442695, %v1007_v6 }
 0x587   :  { %4531 = vpow2.f32 %v1008_v28 }
 0x588   :  { %4533 = vpow2.f32 %v1010_v63  ;;  %4246 = vmatpush3.bf16.msra.mxu1 %v4495_v25 }
 0x589   :  { %4535 = vpow2.f32 %v1012_v31  ;;  %4247 = vmatprep.subr.bf16.mxu1 %v5042_v1 }
 0x58a   :  { %4537 = vpow2.f32 %v1014_v32 }
 0x58c   :  { %4248 = vmatpush3.bf16.msra.mxu1 %v4496_v26 }
 0x58d   :  { %4253 = vmatprep.subr.bf16.mxu1 %v5042_v1 }
 0x591   :  { %v5547_v34 = vpop.eup %4531 }
 0x592   :  { %1021 = vperm.xlu1 %4484, %v5547_v34   ;;  %v5550_v35 = vpop.eup %4533 }
 0x593   :  { %v5553_v36 = vpop.eup %4535 }
 0x594   :  { %v5556_v37 = vpop.eup %4537 }
 0x596   :  { %1024 = vperm.xlu1 %4484, %v5550_v35  }
 0x59a   :  { %1027 = vperm.xlu1 %4484, %v5553_v36  }
 0x59e   :  { %1030 = vperm.xlu1 %4484, %v5556_v37  }
 0x5fb   :  { %v894_v2 = vpop.permute.xlu0 %893 }
 0x5fc   :  { %v897_v40 = vpop.permute.xlu1 %896  ;;  %v907_v53 = vrot.slane %v894_v2, %v5470_v30 }
 0x5fd   :  { %v911_v50 = vrot.slane %v897_v40, %v5470_v30 }
 0x5ff   :  { %v920_v59 = vsel %vm844_vm4, %v911_v50, %v907_v53 }
 0x600   :  { %v900_v44 = vpop.permute.xlu1 %899 }
 0x601   :  { %v915_v54 = vrot.slane %v900_v44, %v5470_v30 }
 0x603   :  { %v921_v60 = vsel %vm846_vm5, %v915_v54, %v920_v59 }
 0x604   :  { %v903_v56 = vpop.permute.xlu1 %902 }
 0x605   :  { %v919_v57 = vrot.slane %v903_v56, %v5470_v30 }
 0x607   :  { %v922_v3 = vsel %vm848_vm6, %v919_v57, %v921_v60 }
 0x608   :  { %v924_v4 = vsel %vm851_vm7, %v922_v3, 0.0 }
 0x609   :  { %925 = vadd.xlane.f32.xlu1 %v924_v4 }
 0x611   :  { %v1022_v5 = vpop.permute.xlu1 %1021 }
 0x612   :  { %v1035_v12 = vrot.slane %v1022_v5, %v5470_v30 }
 0x615   :  { %v1025_v7 = vpop.permute.xlu1 %1024 }
 0x616   :  { %v1039_v9 = vrot.slane %v1025_v7, %v5470_v30  ;;  %v486_v7 = vld [vmem:[#allocation8 + $0x8] sm:$0xf] }
 0x618   :  { %v1048_v19 = vsel %vm844_vm4, %v1039_v9, %v1035_v12  ;;  %v5608_v9 = vsel %vm1102_vm8, %v486_v7, 0 }
 0x619   :  { %v1028_v8 = vpop.permute.xlu1 %1027  ;;  %4266 = vmatpush3.bf16.msra.mxu0 %v5608_v9 }
 0x61a   :  { %376 = vrot.lane.b32.xlu1 %v5341_v15, %s5044_s12  ;;  %v1043_v11 = vrot.slane %v1028_v8, %v5470_v30  ;;  %4277 = vmatprep.subr.bf16.mxu0 %v5042_v1 }
 0x61c   :  { %v1049_v20 = vsel %vm846_vm5, %v1043_v11, %v1048_v19  ;;  %v484_v11 = vld [vmem:[#allocation8] sm:$0xf] }
 0x61d   :  { %v1031_v17 = vpop.permute.xlu1 %1030 }
 0x61e   :  { %v1047_v18 = vrot.slane %v1031_v17, %v5470_v30 }
 0x620   :  { %v1050_v15 = vsel %vm848_vm6, %v1047_v18, %v1049_v20  ;;  %v5614_v18 = vsel %vm1102_vm8, %v484_v11, 0 }
 0x621   :  { %v1052_v23 = vsel %vm851_vm7, %v1050_v15, 0.0 }
 0x622   :  { %1053 = vadd.xlane.f32.xlu0 %v1052_v23 }
 0x638   :  { %372 = vrot.lane.b32.xlu0 %v5374_v49, %s6380_s0 }
 0x696   :  { %v926_v33 = vpop.xlane.xlu1 %925 }
 0x697   :  { %v931_v38 = vrot.slane %v926_v33, %v5379_v51  ;;  %v935_v28 = vrot.slane %v926_v33, %v5511_v61  ;;  %v939_v48 = vrot.slane %v926_v33, %v5514_v62  ;;  %v943_v58 = vrot.slane %v926_v33, %v5517_v0 }
 0x699   :  { %4539 = vrcp.f32 %v931_v38 }
 0x69a   :  { %4541 = vrcp.f32 %v935_v28  ;;  %v377_v8 = vpop.permute.xlu1 %376 }
 0x69b   :  { %4543 = vrcp.f32 %v939_v48 }
 0x69c   :  { %4545 = vrcp.f32 %v943_v58 }
 0x6a3   :  { %v4540_v63 = vpop.eup %4539 }
 0x6a4   :  { %v4542_v6 = vpop.eup %4541  ;;  %v949_v31 = vmul.f32 %v4540_v63, %v5527_v46 }
 0x6a5   :  { %v4544_v32 = vpop.eup %4543  ;;  %v951_v40 = vmul.f32 %v4542_v6, %v5529_v21 }
 0x6a6   :  { %v4546_v2 = vpop.eup %4545  ;;  %v1084_v44 = vpack.c.bf16 %v949_v31, %v949_v31  ;;  %v953_v50 = vmul.f32 %v4544_v32, %v5533_v22 }
 0x6a7   :  { %v1085_v53 = vpack.c.bf16 %v951_v40, %v951_v40  ;;  %v955_v54 = vmul.f32 %v4546_v2, %v5541_v27  ;;  %v485_v40 = vld [vmem:[#allocation8 + $0x4] sm:$0xf] }
 0x6a8   :  { %v1089_v56 = vunpack.c.l.b16 %v1084_v44  ;;  %v1086_v57 = vpack.c.bf16 %v953_v50, %v953_v50  ;;  %v488_v50 = vld [vmem:[#allocation9] sm:$0xf] }
 0x6a9   :  { %v1147_v59 = vunpack.c.l.b16 %v1085_v53  ;;  %v1087_v60 = vpack.c.bf16 %v955_v54, %v955_v54 }
 0x6aa   :  { %1091 = vperm.xlu1 %4484, %v1089_v56   ;;  %v1203_v3 = vunpack.c.l.b16 %v1086_v57  ;;  %v5637_v57 = vsel %vm1102_vm8, %v488_v50, 0 }
 0x6ab   :  { %1149 = vperm.xlu0 %4483, %v1147_v59   ;;  %v1259_v4 = vunpack.c.l.b16 %v1087_v60  ;;  %v487_v59 = vld [vmem:[#allocation8 + $0xc] sm:$0xf] }
 0x6ae   :  { %1205 = vperm.xlu1 %4484, %v1203_v3   ;;  %v5644_v3 = vsel %vm1102_vm8, %v487_v59, 0 }
 0x6af   :  { %1261 = vperm.xlu0 %4483, %v1259_v4   ;;  %v1054_v46 = vpop.xlane.xlu0 %1053 }
 0x6b0   :  { %v1059_v21 = vrot.slane %v1054_v46, %v5379_v51  ;;  %v1063_v5 = vrot.slane %v1054_v46, %v5511_v61  ;;  %v1067_v22 = vrot.slane %v1054_v46, %v5514_v62  ;;  %v1071_v27 = vrot.slane %v1054_v46, %v5517_v0 }
 0x6b2   :  { %4547 = vrcp.f32 %v1059_v21  ;;  %v489_v21 = vld [vmem:[#allocation9 + $0x4] sm:$0xf] }
 0x6b3   :  { %4549 = vrcp.f32 %v1063_v5  ;;  %v373_v12 = vpop.permute.xlu0 %372 }
 0x6b4   :  { %4551 = vrcp.f32 %v1067_v22  ;;  %v379_v14 = vsel %vm225_vm1, %v373_v12, %v377_v8  ;;  %v5654_v22 = vsel %vm1102_vm8, %v489_v21, 0  ;;  %v491_v12 = vld [vmem:[#allocation9 + $0xc] sm:$0xf] }
 0x6b5   :  { %4553 = vrcp.f32 %v1071_v27  ;;  %v388_v17 = vpack.c.bf16 %v379_v14, %v379_v14  ;;  %v490_v27 = vld [vmem:[#allocation9 + $0x8] sm:$0xf] }
 0x6b7   :  { %4250 = vmatmul.mubr.msk.bf16.vlgmr.msra.gmra.mrb[0].mxu1 %vm227_vm2, %v388_v17 }
 0x6b8   :  { %4254 = vmatpush3.bf16.msra.mxu1 %v5614_v18  ;;  %4255 = vmatprep.mubr.msk.bf16.mxu1 %vm5043_vm0, %v5042_v1 }
 0x6b9   :  { %4259 = vmatprep.subr.bf16.mxu1 %v5042_v1 }
 0x6bc   :  { %v4548_v19 = vpop.eup %4547 }
 0x6bd   :  { %v4550_v20 = vpop.eup %4549  ;;  %v1077_v15 = vmul.f32 %v4548_v19, %v5547_v34  ;;  %v5664_v19 = vsel %vm1102_vm8, %v490_v27, 0 }
 0x6be   :  { %v4552_v23 = vpop.eup %4551  ;;  %v1079_v24 = vmul.f32 %v4550_v20, %v5550_v35 }
 0x6bf   :  { %v4554_v25 = vpop.eup %4553  ;;  %v1314_v26 = vpack.c.bf16 %v1077_v15, %v1077_v15  ;;  %v1081_v33 = vmul.f32 %v4552_v23, %v5553_v36  ;;  %v5627_v36 = vsel %vm1102_vm8, %v485_v40, 0  ;;  %v5667_v23 = vsel %vm1102_vm8, %v491_v12, 0 }
 0x6c0   :  { %v1315_v38 = vpack.c.bf16 %v1079_v24, %v1079_v24  ;;  %v1083_v28 = vmul.f32 %v4554_v25, %v5556_v37 }
 0x6c1   :  { %v1319_v48 = vunpack.c.l.b16 %v1314_v26  ;;  %v1316_v58 = vpack.c.bf16 %v1081_v33, %v1081_v33 }
 0x6c2   :  { %v1375_v63 = vunpack.c.l.b16 %v1315_v38  ;;  %v1317_v6 = vpack.c.bf16 %v1083_v28, %v1083_v28 }
 0x6c3   :  { %1321 = vperm.xlu1 %4484, %v1319_v48   ;;  %v1431_v31 = vunpack.c.l.b16 %v1316_v58 }
 0x6c4   :  { %1377 = vperm.xlu0 %4483, %v1375_v63   ;;  %v1487_v32 = vunpack.c.l.b16 %v1317_v6  ;;  %v4497_v6 = vld [vmem:[#allocation18] sm:$0xff]  }
 0x6c7   :  { %1433 = vperm.xlu1 %4484, %v1431_v31   ;;  %v4498_v31 = vld [vmem:[#allocation18 + $0x8] sm:$0xff]  }
 0x6c8   :  { %1489 = vperm.xlu0 %4483, %v1487_v32   ;;  %v4499_v32 = vld [vmem:[#allocation18 + $0x10] sm:$0xff]  }
 0x729   :  { %v1092_v34 = vpop.permute.xlu1 %1091 }
 0x72a   :  { %v1096_v35 = vrot.slane %v1092_v34, %v5470_v30  ;;  %v1150_v37 = vpop.permute.xlu0 %1149 }
 0x72b   :  { %v1154_v54 = vrot.slane %v1150_v37, %v5470_v30 }
 0x72c   :  { %v1097_v2 = vpack.c.b16 %v1096_v35, %v1096_v35 }
 0x72d   :  { %v1206_v44 = vpop.permute.xlu1 %1205  ;;  %v1155_v60 = vpack.c.b16 %v1154_v54, %v1154_v54 }
 0x72e   :  { %v1210_v53 = vrot.slane %v1206_v44, %v5470_v30  ;;  %4256 = vmatmul.mubr.msk.bf16.vlgmr.msra.gmra.mrb[4].mxu1 %vm1098_vm9, %v1097_v2  ;;  %v1262_v4 = vpop.permute.xlu0 %1261 }
 0x72f   :  { %4260 = vmatpush3.bf16.msra.mxu1 %v5627_v36  ;;  %4261 = vmatprep.mubr.msk.bf16.mxu1 %vm5043_vm0, %v5042_v1  ;;  %v1266_v46 = vrot.slane %v1262_v4, %v5470_v30 }
 0x730   :  { %v1211_v56 = vpack.c.b16 %v1210_v53, %v1210_v53  ;;  %4271 = vmatprep.subr.bf16.mxu1 %v5042_v1 }
 0x731   :  { %v1267_v5 = vpack.c.b16 %v1266_v46, %v1266_v46 }
 0x732   :  { %4268 = vmatmul.mubr.msk.bf16.vlgmr.msra.gmra.mrb[4].mxu0 %vm1098_vm9, %v1211_v56 }
 0x733   :  { %4278 = vmatpush3.bf16.msra.mxu0 %v5637_v57  ;;  %4279 = vmatprep.mubr.msk.bf16.mxu0 %vm5043_vm0, %v5042_v1 }
 0x734   :  { %4289 = vmatprep.subr.bf16.mxu0 %v5042_v1 }
 0x736   :  { %4262 = vmatmul.mubr.msk.bf16.vlgmr.msra.gmra.mrb[8].mxu1 %vm1098_vm9, %v1155_v60 }
 0x737   :  { %4272 = vmatpush3.bf16.msra.mxu1 %v5644_v3  ;;  %4273 = vmatprep.mubr.msk.bf16.mxu1 %vm5043_vm0, %v5042_v1 }
 0x738   :  { %4283 = vmatprep.subr.bf16.mxu1 %v5042_v1 }
 0x73e   :  { %4274 = vmatmul.mubr.msk.bf16.vlgmr.msra.gmra.mrb[12].mxu1 %vm1098_vm9, %v1267_v5 }
 0x73f   :  { %4284 = vmatpush3.bf16.msra.mxu1 %v5654_v22  ;;  %4285 = vmatprep.mubr.msk.bf16.mxu1 %vm5043_vm0, %v5042_v1 }
 0x740   :  { %4295 = vmatprep.subr.bf16.mxu1 %v5042_v1 }
 0x742   :  { %v1322_v7 = vpop.permute.xlu1 %1321 }
 0x743   :  { %v1326_v8 = vrot.slane %v1322_v7, %v5470_v30  ;;  %v1378_v11 = vpop.permute.xlu0 %1377 }
 0x744   :  { %v1382_v14 = vrot.slane %v1378_v11, %v5470_v30 }
 0x745   :  { %v1327_v17 = vpack.c.b16 %v1326_v8, %v1326_v8 }
 0x746   :  { %v1383_v20 = vpack.c.b16 %v1382_v14, %v1382_v14  ;;  %v1434_v15 = vpop.permute.xlu1 %1433 }
 0x747   :  { %v1490_v24 = vpop.permute.xlu0 %1489  ;;  %4280 = vmatmul.mubr.msk.bf16.vlgmr.msra.gmra.mrb[8].mxu0 %vm1098_vm9, %v1327_v17  ;;  %v1438_v25 = vrot.slane %v1434_v15, %v5470_v30 }
 0x748   :  { %4286 = vmatmul.mubr.msk.bf16.vlgmr.msra.gmra.mrb[16].mxu1 %vm1098_vm9, %v1383_v20  ;;  %4290 = vmatpush3.bf16.msra.mxu0 %v5664_v19  ;;  %v1494_v26 = vrot.slane %v1490_v24, %v5470_v30  ;;  %v4500_v24 = vld [vmem:[#allocation18 + $0x18] sm:$0xff]  }
 0x749   :  { %4296 = vmatpush3.bf16.msra.mxu1 %v5667_v23  ;;  %4291 = vmatprep.mubr.msk.bf16.mxu0 %vm5043_vm0, %v5042_v1  ;;  %v1439_v33 = vpack.c.b16 %v1438_v25, %v1438_v25 }
 0x74a   :  { %4297 = vmatprep.mubr.msk.bf16.mxu1 %vm5043_vm0, %v5042_v1  ;;  %4301 = vmatprep.subr.bf16.mxu0 %v5042_v1  ;;  %v1495_v38 = vpack.c.b16 %v1494_v26, %v1494_v26 }
 0x74b   :  { %4313 = vmatprep.subr.bf16.mxu1 %v5042_v1 }
 0x74f   :  { %4292 = vmatmul.mubr.msk.bf16.vlgmr.msra.gmra.mrb[12].mxu0 %vm1098_vm9, %v1439_v33 }
 0x750   :  { %4298 = vmatmul.mubr.msk.bf16.vlgmr.msra.gmra.mrb[20].mxu1 %vm1098_vm9, %v1495_v38  ;;  %4309 = vmatprep.mubr.msk.bf16.mxu0 %vm5043_vm0, %v5042_v1 }
 0x751   :  { %4317 = vmatprep.mubr.msk.bf16.mxu1 %vm5043_vm0, %v5042_v1  ;;  %4302 = vmatpush3.bf16.msra.mxu0 %v4497_v6 }
 0x752   :  { %4303 = vmatprep.subr.bf16.mxu0 %v5042_v1 }
 0x755   :  { %4304 = vmatpush3.bf16.msra.mxu0 %v4498_v31 }
 0x756   :  { %4305 = vmatprep.subr.bf16.mxu0 %v5042_v1 }
 0x759   :  { %4306 = vmatpush3.bf16.msra.mxu0 %v4499_v32 }
 0x75a   :  { %4307 = vmatprep.subr.bf16.mxu0 %v5042_v1 }
 0x75d   :  { %4308 = vmatpush3.bf16.msra.mxu0 %v4500_v24 }
 0x75e   :  { %4327 = vmatprep.subr.bf16.mxu0 %v5042_v1 }
 0x78a   :  { %v5687_v28 = vpop.f32.mrb[0].mxu1 }
 0x78b   :  { %v4251_v48 = vpop.f32.mrb[1].mxu1 }
 0x78c   :  { %v460_v58 = vpop.f32.mrb[2].mxu1 }
 0x78d   :  { %v4252_v63 = vpop.f32.mrb[3].mxu1 }
 0x801   :  { %v1140_v34 = vpop.f32.mrb[4].mxu1 }
 0x802   :  { %v4257_v40 = vpop.f32.mrb[5].mxu1 }
 0x803   :  { %v1143_v35 = vpop.f32.mrb[6].mxu1 }
 0x804   :  { %v4258_v2 = vpop.f32.mrb[7].mxu1 }
 0x805   :  { %v1252_v37 = vpop.f32.mrb[4].mxu0 }
 0x806   :  { %v4269_v44 = vpop.f32.mrb[5].mxu0  ;;  %v1548_v60 = vrot.slane %v1252_v37, 6 }
 0x807   :  { %v1255_v50 = vpop.f32.mrb[6].mxu0 }
 0x808   :  { %v4270_v53 = vpop.f32.mrb[7].mxu0 }
 0x809   :  { %v1196_v54 = vpop.f32.mrb[8].mxu1 }
 0x80a   :  { %v1546_v56 = vrot.slane %v1196_v54, 7  ;;  %v4263_v59 = vpop.f32.mrb[9].mxu1 }
 0x80b   :  { %v1199_v4 = vpop.f32.mrb[10].mxu1 }
 0x80c   :  { %v1547_v46 = vsel %vm844_vm4, %v1546_v56, %v1140_v34  ;;  %v4264_v21 = vpop.f32.mrb[11].mxu1  ;;  %v212_v56 = vld [vmem:[#allocation15 + $0x4] sm:$0xf] }
 0x80d   :  { %v1549_v5 = vsel %vm846_vm5, %v1548_v60, %v1547_v46  ;;  %v4066_v46 = vld [vmem:[#allocation20] ss:$0 sm:$0xff] }
 0x80e   :  { %v5708_v21 = vadd.f32 %v4066_v46, %v5687_v28 }
 0x811   :  { %v1308_v7 = vpop.f32.mrb[12].mxu1 }
 0x812   :  { %v1550_v27 = vrot.slane %v1308_v7, 5  ;;  %v4275_v8 = vpop.f32.mrb[13].mxu1 }
 0x813   :  { %v1311_v11 = vpop.f32.mrb[14].mxu1 }
 0x814   :  { %v4276_v12 = vpop.f32.mrb[15].mxu1  ;;  %v1551_v14 = vsel %vm848_vm6, %v1550_v27, %v1549_v5 }
 0x81a   :  { %v1368_v17 = vpop.f32.mrb[8].mxu0 }
 0x81b   :  { %v1424_v20 = vpop.f32.mrb[16].mxu1  ;;  %v4281_v15 = vpop.f32.mrb[9].mxu0 }
 0x81c   :  { %v1557_v25 = vrot.slane %v1424_v20, 7  ;;  %v4287_v26 = vpop.f32.mrb[17].mxu1  ;;  %v1371_v33 = vpop.f32.mrb[10].mxu0 }
 0x81d   :  { %v1427_v38 = vpop.f32.mrb[18].mxu1  ;;  %v4282_v48 = vpop.f32.mrb[11].mxu0 }
 0x81e   :  { %v1558_v58 = vsel %vm844_vm4, %v1557_v25, %v1368_v17  ;;  %v4288_v63 = vpop.f32.mrb[19].mxu1 }
 0x822   :  { %v1480_v6 = vpop.f32.mrb[12].mxu0 }
 0x823   :  { %v1559_v31 = vrot.slane %v1480_v6, 6  ;;  %v1536_v32 = vpop.f32.mrb[20].mxu1  ;;  %v4293_v34 = vpop.f32.mrb[13].mxu0 }
 0x824   :  { %v1561_v40 = vrot.slane %v1536_v32, 5  ;;  %v4299_v35 = vpop.f32.mrb[21].mxu1  ;;  %v1483_v2 = vpop.f32.mrb[14].mxu0 }
 0x825   :  { %v1539_v37 = vpop.f32.mrb[22].mxu1  ;;  %v4294_v44 = vpop.f32.mrb[15].mxu0  ;;  %v1560_v50 = vsel %vm846_vm5, %v1559_v31, %v1558_v58 }
 0x826   :  { %v4300_v53 = vpop.f32.mrb[23].mxu1  ;;  %v1562_v54 = vsel %vm848_vm6, %v1561_v40, %v1560_v50 }
 0x827   :  { %1563 = vrot.lane.b32.xlu1 %v1562_v54, %s5044_s12 }
 0x82b   :  { %1651 = vrot.lane.b32.xlu1 %v212_v56, %s5044_s12 }
 0x899   :  { %v1564_v59 = vpop.permute.xlu1 %1563 }
 0x89a   :  { %v1566_v60 = vsel %vm225_vm1, %v1551_v14, %v1564_v59 }
 0x89b   :  { %v1575_v4 = vpack.c.bf16 %v1566_v60, %v1566_v60 }
 0x89d   :  { %4310 = vmatmul.mubr.msk.bf16.vlgmr.msra.gmra.mrb[16].mxu0 %vm227_vm2, %v1575_v4  ;;  %v5713_v28 = vpop.permute.xlu1 %1651 }
 0x89e   :  { %4328 = vmatpush3.bf16.msra.mxu0 %v5627_v36  ;;  %4329 = vmatprep.mubr.msk.bf16.mxu0 %vm5043_vm0, %v5042_v1 }
 0x89f   :  { %4339 = vmatprep.subr.bf16.mxu0 %v5042_v1 }
 0x970   :  { %v1637_v5 = vpop.f32.mrb[16].mxu0 }
 0x971   :  { %v1638_v7 = vadd.f32 %v1637_v5, %v5708_v21  ;;  %v4311_v27 = vpop.f32.mrb[17].mxu0 }
 0x972   :  { %v1640_v8 = vpop.f32.mrb[18].mxu0 }
 0x973   :  { %4555 = vtanh.f32 %v1638_v7  ;;  %v4312_v11 = vpop.f32.mrb[19].mxu0  ;;  %v4088_v14 = vmul.f32 -1.442695, %v1638_v7 }
 0x975   :  { %4557 = vpow2.f32 %v4088_v14 }
 0x97d   :  { %v4556_v12 = vpop.eup %4555 }
 0x97e   :  { %1656 = vrot.lane.b32.xlu0 %v4556_v12, %s5044_s12 }
 0x97f   :  { %v4558_v17 = vpop.eup %4557 }
 0x980   :  { %v1646_v20 = vadd.f32 1.0, %v4558_v17 }
 0x982   :  { %4559 = vrcp.f32 %v1646_v20 }
 0x98c   :  { %v4560_v15 = vpop.eup %4559 }
 0x98d   :  { %v1654_v26 = vmul.f32 %v4560_v15, %v5713_v28 }
 0x9f0   :  { %v1657_v24 = vpop.permute.xlu0 %1656 }
 0x9f1   :  { %v1659_v25 = vmul.f32 %v4560_v15, %v1657_v24 }
 0x9f3   :  { %1661 = vrot.lane.b32.xlu0 %v1659_v25, %s5044_s12 }
 0xa65   :  { %v1662_v33 = vpop.permute.xlu0 %1661 }
 0xa66   :  { %v5716_v38 = vadd.f32 %v1662_v33, %v1654_v26 }
 0xa68   :  { %4561 = vtanh.f32 %v5716_v38 }
 0xa72   :  { %v4562_v48 = vpop.eup %4561 }
 0xa73   :  { %1667 = vrot.lane.b32.xlu1 %v4562_v48, %s5044_s12 }
 0xae5   :  { %v1668_v58 = vpop.permute.xlu1 %1667 }
 0xae6   :  { %v5720_v63 = vmul.f32 %v4560_v15, %v1668_v58 }
 0xae8   :  { %v1672_v6 = vmul.f32 %v5720_v63, %v5374_v49 }
 0xaea   :  { %1674 = vrot.lane.b32.xlu0 %v1672_v6, %s6380_s0 }
 0xb5c   :  { %v1675_v31 = vpop.permute.xlu0 %1674 }
 0xb5d   :  { %v1678_v32 = vsel %vm1677_vm10, %v1675_v31, 0.0 }
 0xb5e   :  { %1679 = vadd.xlane.f32.xlu1 %v1678_v32 }
 0xbeb   :  { %v1680_v34 = vpop.xlane.xlu1 %1679 }
 0xbec   :  { %v1681_v40 = vmul.f32 0.1, %v1680_v34 }
 0xbee   :  { %v1686_v35 = vrot.slane %v1681_v40, %v5379_v51  ;;  %v1690_v37 = vrot.slane %v1681_v40, %v5511_v61  ;;  %v1694_v50 = vrot.slane %v1681_v40, %v5514_v62  ;;  %v1698_v54 = vrot.slane %v1681_v40, %v5517_v0 }
 0xbf0   :  { %v5728_v2 = vadd.f32 %v1686_v35, %v5472_v10  ;;  %v5733_v44 = vadd.f32 %v1690_v37, %v5467_v29  ;;  %v5738_v53 = vadd.f32 %v1694_v50, %v5474_v16  ;;  %v5743_v10 = vadd.f32 %v1698_v54, %v5482_v43 }
 0xbf1   :  { %v5747_v56 = vadd.f32 %v1686_v35, %v5490_v41  ;;  %v5751_v29 = vadd.f32 %v1690_v37, %v5492_v42  ;;  %v5755_v16 = vadd.f32 %v1694_v50, %v5498_v52  ;;  %v5759_v43 = vadd.f32 %v1698_v54, %v5503_v55 }
 0xbf2   :  { %1818 = vperm.xlu0 %4483, %v5728_v2  }
 0xbf6   :  { %1821 = vperm.xlu0 %4483, %v5733_v44  }
 0xbfa   :  { %1824 = vperm.xlu0 %4483, %v5738_v53  }
 0xbfe   :  { %1827 = vperm.xlu0 %4483, %v5743_v10  }
 0xc02   :  { %1958 = vperm.xlu0 %4483, %v5747_v56  }
 0xc06   :  { %1961 = vperm.xlu0 %4483, %v5751_v29  }
 0xc0a   :  { %1964 = vperm.xlu0 %4483, %v5755_v16  }
 0xc0e   :  { %1967 = vperm.xlu0 %4483, %v5759_v43  }
 0xc71   :  { %v1819_v59 = vpop.permute.xlu0 %1818 }
 0xc72   :  { %v1832_v46 = vrot.slane %v1819_v59, %v5470_v30 }
 0xc75   :  { %v1822_v41 = vpop.permute.xlu0 %1821 }
 0xc76   :  { %v1836_v4 = vrot.slane %v1822_v41, %v5470_v30 }
 0xc78   :  { %v1845_v52 = vsel %vm844_vm4, %v1836_v4, %v1832_v46 }
 0xc79   :  { %v1825_v60 = vpop.permute.xlu0 %1824 }
 0xc7a   :  { %v1840_v42 = vrot.slane %v1825_v60, %v5470_v30 }
 0xc7c   :  { %v1846_v27 = vsel %vm846_vm5, %v1840_v42, %v1845_v52 }
 0xc7d   :  { %v1828_v5 = vpop.permute.xlu0 %1827 }
 0xc7e   :  { %v1844_v7 = vrot.slane %v1828_v5, %v5470_v30 }
 0xc80   :  { %v1847_v55 = vsel %vm848_vm6, %v1844_v7, %v1846_v27 }
 0xc81   :  { %v1959_v8 = vpop.permute.xlu0 %1958  ;;  %v1849_v11 = vsel %vm851_vm7, %v1847_v55, -inf }
 0xc82   :  { %1850 = vmax.xlane.f32.xlu0 %v1849_v11  ;;  %v1972_v15 = vrot.slane %v1959_v8, %v5470_v30 }
 0xc85   :  { %v1962_v12 = vpop.permute.xlu0 %1961 }
 0xc86   :  { %v1976_v17 = vrot.slane %v1962_v12, %v5470_v30 }
 0xc88   :  { %v1985_v25 = vsel %vm844_vm4, %v1976_v17, %v1972_v15 }
 0xc89   :  { %v1965_v14 = vpop.permute.xlu0 %1964 }
 0xc8a   :  { %v1980_v20 = vrot.slane %v1965_v14, %v5470_v30 }
 0xc8c   :  { %v1986_v33 = vsel %vm846_vm5, %v1980_v20, %v1985_v25 }
 0xc8d   :  { %v1968_v24 = vpop.permute.xlu0 %1967 }
 0xc8e   :  { %v1984_v26 = vrot.slane %v1968_v24, %v5470_v30 }
 0xc90   :  { %v1987_v48 = vsel %vm848_vm6, %v1984_v26, %v1986_v33 }
 0xc91   :  { %v1989_v58 = vsel %vm851_vm7, %v1987_v48, -inf }
 0xc92   :  { %1990 = vmax.xlane.f32.xlu1 %v1989_v58 }
 0xd0f   :  { %v1851_v6 = vpop.xlane.xlu0 %1850 }
 0xd10   :  { %v1856_v31 = vrot.slane %v1851_v6, %v5379_v51  ;;  %v1860_v32 = vrot.slane %v1851_v6, %v5511_v61  ;;  %v1868_v34 = vrot.slane %v1851_v6, %v5517_v0  ;;  %v1864_v40 = vrot.slane %v1851_v6, %v5514_v62 }
 0xd12   :  { %v1873_v35 = vsub.f32 %v5728_v2, %v1856_v31  ;;  %v1874_v37 = vsub.f32 %v5733_v44, %v1860_v32  ;;  %v1876_v50 = vsub.f32 %v5743_v10, %v1868_v34  ;;  %v1875_v41 = vsub.f32 %v5738_v53, %v1864_v40 }
 0xd14   :  { %v1877_v54 = vmul.f32 1.442695, %v1873_v35  ;;  %v1883_v59 = vmul.f32 1.442695, %v1876_v50  ;;  %v1879_v60 = vmul.f32 1.442695, %v1874_v37 }
 0xd15   :  { %v1881_v4 = vmul.f32 1.442695, %v1875_v41 }
 0xd16   :  { %4563 = vpow2.f32 %v1877_v54 }
 0xd17   :  { %4565 = vpow2.f32 %v1883_v59 }
 0xd18   :  { %4567 = vpow2.f32 %v1879_v60 }
 0xd19   :  { %4569 = vpow2.f32 %v1881_v4 }
 0xd1f   :  { %v1991_v42 = vpop.xlane.xlu1 %1990 }
 0xd20   :  { %v5786_v46 = vpop.eup %4563  ;;  %v1996_v5 = vrot.slane %v1991_v42, %v5379_v51  ;;  %v2000_v52 = vrot.slane %v1991_v42, %v5511_v61  ;;  %v2004_v7 = vrot.slane %v1991_v42, %v5514_v62  ;;  %v2008_v14 = vrot.slane %v1991_v42, %v5517_v0 }
 0xd21   :  { %1890 = vperm.xlu1 %4484, %v5786_v46   ;;  %v5794_v8 = vpop.eup %4565 }
 0xd22   :  { %v2013_v27 = vsub.f32 %v5747_v56, %v1996_v5  ;;  %v2014_v55 = vsub.f32 %v5751_v29, %v2000_v52  ;;  %v5796_v11 = vpop.eup %4567  ;;  %1899 = vperm.xlu0 %4483, %v5794_v8   ;;  %v2015_v17 = vsub.f32 %v5755_v16, %v2004_v7  ;;  %v2016_v24 = vsub.f32 %v5759_v43, %v2008_v14 }
 0xd23   :  { %v5802_v15 = vpop.eup %4569 }
 0xd24   :  { %v2017_v12 = vmul.f32 1.442695, %v2013_v27  ;;  %v2019_v20 = vmul.f32 1.442695, %v2014_v55  ;;  %v2021_v25 = vmul.f32 1.442695, %v2015_v17 }
 0xd25   :  { %1893 = vperm.xlu1 %4484, %v5796_v11   ;;  %v2023_v26 = vmul.f32 1.442695, %v2016_v24 }
 0xd26   :  { %4571 = vpow2.f32 %v2017_v12 }
 0xd27   :  { %4573 = vpow2.f32 %v2019_v20 }
 0xd28   :  { %4575 = vpow2.f32 %v2021_v25 }
 0xd29   :  { %1896 = vperm.xlu1 %4484, %v5802_v15   ;;  %4577 = vpow2.f32 %v2023_v26  ;;  %v4501_v26 = vld [vmem:[%s6351_s13] sm:$0xff]  }
 0xd2a   :  { %4314 = vmatpush3.bf16.msra.mxu1 %v4501_v26 }
 0xd2b   :  { %4315 = vmatprep.subr.bf16.mxu1 %v5042_v1 }
 0xd30   :  { %v5806_v33 = vpop.eup %4571 }
 0xd31   :  { %2030 = vperm.xlu1 %4484, %v5806_v33   ;;  %v5809_v48 = vpop.eup %4573 }
 0xd32   :  { %v5812_v58 = vpop.eup %4575 }
 0xd33   :  { %v5815_v6 = vpop.eup %4577 }
 0xd35   :  { %2033 = vperm.xlu1 %4484, %v5809_v48  }
 0xd39   :  { %2036 = vperm.xlu1 %4484, %v5812_v58  }
 0xd3d   :  { %2039 = vperm.xlu1 %4484, %v5815_v6  }
 0xda0   :  { %v1891_v31 = vpop.permute.xlu1 %1890 }
 0xda1   :  { %v1900_v40 = vpop.permute.xlu0 %1899  ;;  %v1904_v35 = vrot.slane %v1891_v31, %v5470_v30 }
 0xda2   :  { %v1916_v54 = vrot.slane %v1900_v40, %v5470_v30 }
 0xda4   :  { %v1894_v32 = vpop.permute.xlu1 %1893 }
 0xda5   :  { %v1908_v34 = vrot.slane %v1894_v32, %v5470_v30 }
 0xda7   :  { %v1917_v59 = vsel %vm844_vm4, %v1908_v34, %v1904_v35 }
 0xda8   :  { %v1897_v37 = vpop.permute.xlu1 %1896 }
 0xda9   :  { %v1912_v50 = vrot.slane %v1897_v37, %v5470_v30 }
 0xdab   :  { %v1918_v41 = vsel %vm846_vm5, %v1912_v50, %v1917_v59 }
 0xdac   :  { %v1919_v60 = vsel %vm848_vm6, %v1916_v54, %v1918_v41 }
 0xdad   :  { %v1921_v4 = vsel %vm851_vm7, %v1919_v60, 0.0 }
 0xdae   :  { %1922 = vadd.xlane.f32.xlu1 %v1921_v4 }
 0xdb0   :  { %v2031_v42 = vpop.permute.xlu1 %2030 }
 0xdb1   :  { %v2044_v55 = vrot.slane %v2031_v42, %v5470_v30 }
 0xdb4   :  { %v2034_v5 = vpop.permute.xlu1 %2033 }
 0xdb5   :  { %v2048_v7 = vrot.slane %v2034_v5, %v5470_v30 }
 0xdb7   :  { %v2057_v14 = vsel %vm844_vm4, %v2048_v7, %v2044_v55 }
 0xdb8   :  { %v2037_v52 = vpop.permute.xlu1 %2036 }
 0xdb9   :  { %v2052_v27 = vrot.slane %v2037_v52, %v5470_v30 }
 0xdbb   :  { %v2058_v20 = vsel %vm846_vm5, %v2052_v27, %v2057_v14 }
 0xdbc   :  { %v2040_v12 = vpop.permute.xlu1 %2039 }
 0xdbd   :  { %v2056_v17 = vrot.slane %v2040_v12, %v5470_v30 }
 0xdbf   :  { %v2059_v24 = vsel %vm848_vm6, %v2056_v17, %v2058_v20 }
 0xdc0   :  { %v2061_v25 = vsel %vm851_vm7, %v2059_v24, 0.0  ;;  %v4502_v24 = vld [vmem:[%s6351_s13 + $0x8] sm:$0xff]  }
 0xdc1   :  { %2062 = vadd.xlane.f32.xlu0 %v2061_v25  ;;  %4316 = vmatpush3.bf16.msra.mxu1 %v4502_v24 }
 0xdc2   :  { %4321 = vmatprep.subr.bf16.mxu1 %v5042_v1 }
 0xe3b   :  { %v1923_v31 = vpop.xlane.xlu1 %1922 }
 0xe3c   :  { %v1928_v32 = vrot.slane %v1923_v31, %v5379_v51  ;;  %v1932_v34 = vrot.slane %v1923_v31, %v5511_v61  ;;  %v1936_v40 = vrot.slane %v1923_v31, %v5514_v62  ;;  %v1940_v35 = vrot.slane %v1923_v31, %v5517_v0 }
 0xe3e   :  { %4579 = vrcp.f32 %v1928_v32 }
 0xe3f   :  { %4581 = vrcp.f32 %v1932_v34 }
 0xe40   :  { %4583 = vrcp.f32 %v1936_v40 }
 0xe41   :  { %4585 = vrcp.f32 %v1940_v35 }
 0xe48   :  { %v4580_v37 = vpop.eup %4579 }
 0xe49   :  { %v4582_v50 = vpop.eup %4581  ;;  %v1946_v54 = vmul.f32 %v4580_v37, %v5786_v46 }
 0xe4a   :  { %v4584_v59 = vpop.eup %4583  ;;  %v1948_v41 = vmul.f32 %v4582_v50, %v5796_v11 }
 0xe4b   :  { %v4586_v60 = vpop.eup %4585  ;;  %v2093_v4 = vpack.c.bf16 %v1946_v54, %v1946_v54  ;;  %v1950_v7 = vmul.f32 %v4584_v59, %v5802_v15 }
 0xe4c   :  { %v2094_v42 = vpack.c.bf16 %v1948_v41, %v1948_v41  ;;  %v1952_v5 = vmul.f32 %v4586_v60, %v5794_v8  ;;  %v1715_v8 = vpack.c.bf16 %v5720_v63, %v5720_v63 }
 0xe4d   :  { %v2098_v52 = vunpack.c.l.b16 %v2093_v4  ;;  %v2095_v20 = vpack.c.bf16 %v1950_v7, %v1950_v7 }
 0xe4e   :  { %v2063_v27 = vpop.xlane.xlu0 %2062  ;;  %v2151_v55 = vunpack.c.l.b16 %v2094_v42  ;;  %v2096_v12 = vpack.c.bf16 %v1952_v5, %v1952_v5 }
 0xe4f   :  { %v2068_v14 = vrot.slane %v2063_v27, %v5379_v51  ;;  %v2072_v17 = vrot.slane %v2063_v27, %v5511_v61  ;;  %v2076_v46 = vrot.slane %v2063_v27, %v5514_v62  ;;  %2100 = vperm.xlu1 %4484, %v2098_v52   ;;  %v2080_v11 = vrot.slane %v2063_v27, %v5517_v0 }
 0xe50   :  { %2153 = vperm.xlu0 %4483, %v2151_v55   ;;  %v2257_v15 = vunpack.c.l.b16 %v2096_v12  ;;  %v2204_v25 = vunpack.c.l.b16 %v2095_v20 }
 0xe51   :  { %4587 = vrcp.f32 %v2068_v14 }
 0xe52   :  { %4589 = vrcp.f32 %v2072_v17 }
 0xe53   :  { %4591 = vrcp.f32 %v2076_v46  ;;  %1717 = vrot.lane.b32.xlu1 %v1715_v8, %s6380_s0 }
 0xe54   :  { %4593 = vrcp.f32 %v2080_v11  ;;  %2259 = vperm.xlu0 %4483, %v2257_v15  }
 0xe57   :  { %2206 = vperm.xlu1 %4484, %v2204_v25  }
 0xe5b   :  { %v4588_v26 = vpop.eup %4587 }
 0xe5c   :  { %v4590_v31 = vpop.eup %4589  ;;  %v2086_v32 = vmul.f32 %v4588_v26, %v5806_v33 }
 0xe5d   :  { %v4592_v34 = vpop.eup %4591  ;;  %v2088_v40 = vmul.f32 %v4590_v31, %v5809_v48 }
 0xe5e   :  { %v4594_v35 = vpop.eup %4593  ;;  %v2309_v37 = vpack.c.bf16 %v2086_v32, %v2086_v32  ;;  %v2090_v50 = vmul.f32 %v4592_v34, %v5812_v58 }
 0xe5f   :  { %v2310_v54 = vpack.c.bf16 %v2088_v40, %v2088_v40  ;;  %v2092_v59 = vmul.f32 %v4594_v35, %v5815_v6 }
 0xe60   :  { %v2314_v41 = vunpack.c.l.b16 %v2309_v37  ;;  %v2311_v60 = vpack.c.bf16 %v2090_v50, %v2090_v50 }
 0xe61   :  { %v2367_v4 = vunpack.c.l.b16 %v2310_v54  ;;  %v2312_v42 = vpack.c.bf16 %v2092_v59, %v2092_v59  ;;  %v4503_v54 = vld [vmem:[#allocation18] sm:$0xff]   ;;  %v4504_v59 = vld [vmem:[#allocation18 + $0x8] sm:$0xff]  }
 0xe62   :  { %2316 = vperm.xlu1 %4484, %v2314_v41   ;;  %v2420_v5 = vunpack.c.l.b16 %v2311_v60  ;;  %v4505_v41 = vld [vmem:[#allocation18 + $0x10] sm:$0xff]  }
 0xe63   :  { %2369 = vperm.xlu0 %4483, %v2367_v4   ;;  %v2473_v52 = vunpack.c.l.b16 %v2312_v42 }
 0xe66   :  { %2422 = vperm.xlu1 %4484, %v2420_v5  }
 0xe67   :  { %2475 = vperm.xlu0 %4483, %v2473_v52  }
 0xece   :  { %v2101_v33 = vpop.permute.xlu1 %2100 }
 0xecf   :  { %v2154_v7 = vpop.permute.xlu0 %2153  ;;  %v2105_v6 = vrot.slane %v2101_v33, %v5470_v30 }
 0xed0   :  { %v2158_v48 = vrot.slane %v2154_v7, %v5470_v30 }
 0xed1   :  { %v2106_v14 = vpack.c.b16 %v2105_v6, %v2105_v6 }
 0xed2   :  { %v2159_v27 = vpack.c.b16 %v2158_v48, %v2158_v48  ;;  %v1718_v55 = vpop.permute.xlu1 %1717 }
 0xed3   :  { %v2260_v58 = vpop.permute.xlu0 %2259  ;;  %4318 = vmatmul.mubr.msk.bf16.vlgmr.msra.gmra.mrb[24].mxu1 %vm225_vm1, %v1718_v55 }
 0xed4   :  { %4322 = vmatpush3.bf16.msra.mxu1 %v5614_v18  ;;  %4330 = vmatmul.mubr.msk.bf16.vlgmr.msra.gmra.mrb[20].mxu0 %vm1098_vm9, %v2159_v27  ;;  %v2264_v12 = vrot.slane %v2260_v58, %v5470_v30 }
 0xed5   :  { %4340 = vmatpush3.bf16.msra.mxu0 %v5644_v3  ;;  %4323 = vmatprep.mubr.msk.bf16.mxu1 %vm5043_vm0, %v5042_v1 }
 0xed6   :  { %4333 = vmatprep.subr.bf16.mxu1 %v5042_v1  ;;  %4341 = vmatprep.mubr.msk.bf16.mxu0 %vm5043_vm0, %v5042_v1  ;;  %v2265_v17 = vpack.c.b16 %v2264_v12, %v2264_v12  ;;  %v2207_v46 = vpop.permute.xlu1 %2206 }
 0xed7   :  { %4351 = vmatprep.subr.bf16.mxu0 %v5042_v1  ;;  %v2211_v11 = vrot.slane %v2207_v46, %v5470_v30 }
 0xed9   :  { %v2212_v8 = vpack.c.b16 %v2211_v11, %v2211_v11 }
 0xedb   :  { %4324 = vmatmul.mubr.msk.bf16.vlgmr.msra.gmra.mrb[28].mxu1 %vm1098_vm9, %v2106_v14 }
 0xedc   :  { %4334 = vmatpush3.bf16.msra.mxu1 %v5608_v9  ;;  %4342 = vmatmul.mubr.msk.bf16.vlgmr.msra.gmra.mrb[24].mxu0 %vm1098_vm9, %v2265_v17 }
 0xedd   :  { %4335 = vmatprep.mubr.msk.bf16.mxu1 %vm5043_vm0, %v5042_v1  ;;  %4345 = vmatprep.subr.bf16.mxu1 %v5042_v1 }
 0xede   :  { %4352 = vmatpush3.bf16.msra.mxu0 %v5654_v22  ;;  %4353 = vmatprep.mubr.msk.bf16.mxu0 %vm5043_vm0, %v5042_v1 }
 0xedf   :  { %4363 = vmatprep.subr.bf16.mxu0 %v5042_v1 }
 0xee1   :  { %v2317_v15 = vpop.permute.xlu1 %2316 }
 0xee2   :  { %v2370_v20 = vpop.permute.xlu0 %2369  ;;  %v2321_v26 = vrot.slane %v2317_v15, %v5470_v30 }
 0xee3   :  { %v2374_v24 = vrot.slane %v2370_v20, %v5470_v30  ;;  %4336 = vmatmul.mubr.msk.bf16.vlgmr.msra.gmra.mrb[32].mxu1 %vm1098_vm9, %v2212_v8 }
 0xee4   :  { %4346 = vmatpush3.bf16.msra.mxu1 %v5637_v57  ;;  %4347 = vmatprep.mubr.msk.bf16.mxu1 %vm5043_vm0, %v5042_v1  ;;  %v2322_v32 = vpack.c.b16 %v2321_v26, %v2321_v26 }
 0xee5   :  { %v2375_v25 = vpack.c.b16 %v2374_v24, %v2374_v24  ;;  %4357 = vmatprep.subr.bf16.mxu1 %v5042_v1  ;;  %v2423_v40 = vpop.permute.xlu1 %2422 }
 0xee6   :  { %v2476_v31 = vpop.permute.xlu0 %2475  ;;  %v2427_v37 = vrot.slane %v2423_v40, %v5470_v30 }
 0xee7   :  { %4354 = vmatmul.mubr.msk.bf16.vlgmr.msra.gmra.mrb[28].mxu0 %vm1098_vm9, %v2375_v25  ;;  %v2480_v34 = vrot.slane %v2476_v31, %v5470_v30 }
 0xee8   :  { %4364 = vmatpush3.bf16.msra.mxu0 %v5667_v23  ;;  %4365 = vmatprep.mubr.msk.bf16.mxu0 %vm5043_vm0, %v5042_v1  ;;  %v2428_v50 = vpack.c.b16 %v2427_v37, %v2427_v37 }
 0xee9   :  { %4381 = vmatprep.subr.bf16.mxu0 %v5042_v1  ;;  %v2481_v35 = vpack.c.b16 %v2480_v34, %v2480_v34 }
 0xeeb   :  { %4348 = vmatmul.mubr.msk.bf16.vlgmr.msra.gmra.mrb[36].mxu1 %vm1098_vm9, %v2322_v32 }
 0xeec   :  { %4358 = vmatpush3.bf16.msra.mxu1 %v5664_v19  ;;  %4359 = vmatprep.mubr.msk.bf16.mxu1 %vm5043_vm0, %v5042_v1 }
 0xeed   :  { %4369 = vmatprep.subr.bf16.mxu1 %v5042_v1 }
 0xeef   :  { %4366 = vmatmul.mubr.msk.bf16.vlgmr.msra.gmra.mrb[32].mxu0 %vm1098_vm9, %v2481_v35 }
 0xef0   :  { %4385 = vmatprep.mubr.msk.bf16.mxu0 %vm5043_vm0, %v5042_v1 }
 0xef3   :  { %4360 = vmatmul.mubr.msk.bf16.vlgmr.msra.gmra.mrb[40].mxu1 %vm1098_vm9, %v2428_v50 }
 0xef4   :  { %4377 = vmatprep.mubr.msk.bf16.mxu1 %vm5043_vm0, %v5042_v1  ;;  %4370 = vmatpush3.bf16.msra.mxu1 %v4503_v54 }
 0xef5   :  { %4371 = vmatprep.subr.bf16.mxu1 %v5042_v1 }
 0xef8   :  { %4372 = vmatpush3.bf16.msra.mxu1 %v4504_v59 }
 0xef9   :  { %4373 = vmatprep.subr.bf16.mxu1 %v5042_v1 }
 0xefc   :  { %4374 = vmatpush3.bf16.msra.mxu1 %v4505_v41 }
 0xefd   :  { %4375 = vmatprep.subr.bf16.mxu1 %v5042_v1 }
 0xfa6   :  { %v5913_v60 = vpop.f32.mrb[24].mxu1 }
 0xfa7   :  { %v2197_v4 = vpop.f32.mrb[20].mxu0  ;;  %v4319_v42 = vpop.f32.mrb[25].mxu1 }
 0xfa8   :  { %v4331_v5 = vpop.f32.mrb[21].mxu0  ;;  %v1771_v52 = vpop.f32.mrb[26].mxu1  ;;  %v2529_v27 = vrot.slane %v2197_v4, 7  ;;  %v4506_v42 = vld [vmem:[#allocation18 + $0x18] sm:$0xff]  }
 0xfa9   :  { %v2200_v33 = vpop.f32.mrb[22].mxu0  ;;  %v4320_v7 = vpop.f32.mrb[27].mxu1  ;;  %4376 = vmatpush3.bf16.msra.mxu1 %v4506_v42 }
 0xfaa   :  { %v4332_v48 = vpop.f32.mrb[23].mxu0  ;;  %4395 = vmatprep.subr.bf16.mxu1 %v5042_v1 }
 0xfae   :  { %v2144_v55 = vpop.f32.mrb[28].mxu1 }
 0xfaf   :  { %v2530_v58 = vsel %vm844_vm4, %v2529_v27, %v2144_v55  ;;  %v2303_v6 = vpop.f32.mrb[24].mxu0  ;;  %v4325_v12 = vpop.f32.mrb[29].mxu1 }
 0xfb0   :  { %v4343_v14 = vpop.f32.mrb[25].mxu0  ;;  %v2147_v17 = vpop.f32.mrb[30].mxu1  ;;  %v2533_v25 = vrot.slane %v2303_v6, 5 }
 0xfb1   :  { %v2306_v46 = vpop.f32.mrb[26].mxu0  ;;  %v4326_v11 = vpop.f32.mrb[31].mxu1 }
 0xfb2   :  { %v4344_v8 = vpop.f32.mrb[27].mxu0 }
 0xfb6   :  { %v2250_v20 = vpop.f32.mrb[32].mxu1 }
 0xfb7   :  { %v2531_v15 = vrot.slane %v2250_v20, 6  ;;  %v4337_v24 = vpop.f32.mrb[33].mxu1 }
 0xfb8   :  { %v2253_v26 = vpop.f32.mrb[34].mxu1 }
 0xfb9   :  { %v2532_v31 = vsel %vm846_vm5, %v2531_v15, %v2530_v58  ;;  %v4338_v32 = vpop.f32.mrb[35].mxu1 }
 0xfba   :  { %v2413_v34 = vpop.f32.mrb[28].mxu0  ;;  %v2534_v40 = vsel %vm848_vm6, %v2533_v25, %v2532_v31 }
 0xfbb   :  { %v4355_v35 = vpop.f32.mrb[29].mxu0  ;;  %v2540_v50 = vrot.slane %v2413_v34, 7 }
 0xfbc   :  { %v2416_v37 = vpop.f32.mrb[30].mxu0 }
 0xfbd   :  { %v4356_v54 = vpop.f32.mrb[31].mxu0 }
 0xfbe   :  { %v2360_v59 = vpop.f32.mrb[36].mxu1 }
 0xfbf   :  { %v2541_v41 = vsel %vm844_vm4, %v2540_v50, %v2360_v59  ;;  %v4349_v4 = vpop.f32.mrb[37].mxu1 }
 0xfc0   :  { %v2363_v5 = vpop.f32.mrb[38].mxu1 }
 0xfc1   :  { %v4350_v52 = vpop.f32.mrb[39].mxu1  ;;  %v5940_v5 = vld [vmem:[%s6352_s14] ss:$0 sm:$0xff] }
 0xfc2   :  { %v2519_v33 = vpop.f32.mrb[32].mxu0  ;;  %v1769_v52 = vadd.f32 %v5940_v5, %v5913_v60 }
 0xfc3   :  { %v4367_v7 = vpop.f32.mrb[33].mxu0  ;;  %v2544_v12 = vrot.slane %v2519_v33, 5 }
 0xfc4   :  { %v2522_v48 = vpop.f32.mrb[34].mxu0  ;;  %v1774_v33 = vmax.f32 %v1769_v52, 0.0  ;;  %v5947_v7 = vld [vmem:[%s6353_s15] ss:$0 sm:$0xff] }
 0xfc5   :  { %v4368_v27 = vpop.f32.mrb[35].mxu0 }
 0xfc6   :  { %v2466_v55 = vpop.f32.mrb[40].mxu1  ;;  %v1775_v48 = vmul.f32 %v5947_v7, %v1774_v33 }
 0xfc7   :  { %v2542_v58 = vrot.slane %v2466_v55, 6  ;;  %v4361_v6 = vpop.f32.mrb[41].mxu1 }
 0xfc8   :  { %v2469_v14 = vpop.f32.mrb[42].mxu1  ;;  %v1776_v27 = vsel %vm1677_vm10, %v1775_v48, 0.0 }
 0xfc9   :  { %v4362_v17 = vpop.f32.mrb[43].mxu1  ;;  %v2543_v46 = vsel %vm846_vm5, %v2542_v58, %v2541_v41  ;;  %v5957_v14 = vld [vmem:[#allocation2] ss:$0 sm:$0xff] }
 0xfca   :  { %v2545_v11 = vsel %vm848_vm6, %v2544_v12, %v2543_v46 }
 0xfcb   :  { %2546 = vrot.lane.b32.xlu1 %v2545_v11, %s5044_s12 }
0x103d   :  { %v2547_v8 = vpop.permute.xlu1 %2546 }
0x103e   :  { %v2549_v20 = vsel %vm225_vm1, %v2534_v40, %v2547_v8 }
0x103f   :  { %v2558_v15 = vpack.c.bf16 %v2549_v20, %v2549_v20 }
0x1041   :  { %4378 = vmatmul.mubr.msk.bf16.vlgmr.msra.gmra.mrb[44].mxu1 %vm227_vm2, %v2558_v15 }
0x1042   :  { %4396 = vmatpush3.bf16.msra.mxu1 %v5627_v36  ;;  %4397 = vmatprep.mubr.msk.bf16.mxu1 %vm5043_vm0, %v5042_v1 }
0x1043   :  { %4407 = vmatprep.subr.bf16.mxu1 %v5042_v1 }
0x1114   :  { %v2620_v24 = vpop.f32.mrb[44].mxu1 }
0x1115   :  { %v2621_v25 = vadd.f32 %v2620_v24, %v5708_v21  ;;  %v4379_v26 = vpop.f32.mrb[45].mxu1 }
0x1116   :  { %v2623_v31 = vpop.f32.mrb[46].mxu1 }
0x1117   :  { %4595 = vtanh.f32 %v2621_v25  ;;  %v4380_v32 = vpop.f32.mrb[47].mxu1  ;;  %v4107_v40 = vmul.f32 -1.442695, %v2621_v25 }
0x1119   :  { %4597 = vpow2.f32 %v4107_v40 }
0x1121   :  { %v4596_v34 = vpop.eup %4595 }
0x1122   :  { %2635 = vrot.lane.b32.xlu0 %v4596_v34, %s5044_s12 }
0x1123   :  { %v4598_v35 = vpop.eup %4597 }
0x1124   :  { %v2629_v37 = vadd.f32 1.0, %v4598_v35 }
0x1126   :  { %4599 = vrcp.f32 %v2629_v37 }
0x1130   :  { %v4600_v36 = vpop.eup %4599 }
0x1131   :  { %v2633_v59 = vmul.f32 %v4600_v36, %v5713_v28 }
0x1194   :  { %v2636_v50 = vpop.permute.xlu0 %2635 }
0x1195   :  { %v2638_v54 = vmul.f32 %v4600_v36, %v2636_v50 }
0x1197   :  { %2640 = vrot.lane.b32.xlu1 %v2638_v54, %s5044_s12 }
0x1209   :  { %v2641_v41 = vpop.permute.xlu1 %2640 }
0x120a   :  { %v5933_v4 = vadd.f32 %v2641_v41, %v2633_v59 }
0x120c   :  { %4601 = vtanh.f32 %v5933_v4 }
0x1216   :  { %v4602_v42 = vpop.eup %4601 }
0x1217   :  { %2646 = vrot.lane.b32.xlu0 %v4602_v42, %s5044_s12 }
0x1236   :  { %1777 = vadd.xlane.f32.xlu0 %v1776_v27 }
0x1289   :  { %v2647_v55 = vpop.permute.xlu0 %2646 }
0x128a   :  { %v5951_v58 = vmul.f32 %v4600_v36, %v2647_v55 }
0x128c   :  { %v2657_v6 = vmul.f32 %v5951_v58, %v5374_v49 }
0x128e   :  { %2659 = vrot.lane.b32.xlu1 %v2657_v6, %s6380_s0 }
0x12c3   :  { %v1778_v17 = vpop.xlane.xlu0 %1777 }
0x12c4   :  { %v1779_v46 = vadd.f32 %v5957_v14, %v1778_v17 }
0x12c6   :  { %v4092_v11 = vmul.f32 -1.442695, %v1779_v46 }
0x12c8   :  { %4603 = vpow2.f32 %v4092_v11 }
0x12d2   :  { %v4604_v8 = vpop.eup %4603 }
0x12d3   :  { %v1783_v20 = vadd.f32 1.0, %v4604_v8 }
0x12d5   :  { %4605 = vrcp.f32 %v1783_v20 }
0x12df   :  { %v5960_v15 = vpop.eup %4605 }
0x12e0   :  { %vm1802_vm11 = vcmp.lt.f32.partialorder %v5960_v15, 0.9 }
0x12e1   :  { %v5964_v24 = vsel %vm1802_vm11, 1.0, %v5042_v1 }
0x12e2   :  { %v1806_v25 = vsel %vm1805_vm12, %v5964_v24, -inf }
0x12e3   :  { %v1807_v26 = vrot.slane %v1806_v25, 4 }
0x12e5   :  { %v1808_v31 = vmax.f32 %v1806_v25, %v1807_v26 }
0x12e7   :  { %v1809_v32 = vrot.slane %v1808_v31, 2 }
0x12e9   :  { %v1810_v34 = vmax.f32 %v1808_v31, %v1809_v32 }
0x12eb   :  { %v1811_v40 = vrot.slane %v1810_v34, 1 }
0x12ed   :  { %v5968_v37 = vmax.f32 %v1810_v34, %v1811_v40 }
0x1300   :  { %v2660_v60 = vpop.permute.xlu1 %2659 }
0x1301   :  { %v2662_v12 = vsel %vm1677_vm10, %v2660_v60, 0.0 }
0x1302   :  { %2663 = vadd.xlane.f32.xlu1 %v2662_v12 }
0x138f   :  { %v2664_v35 = vpop.xlane.xlu1 %2663 }
0x1390   :  { %v2665_v36 = vmul.f32 0.1, %v2664_v35 }
0x1392   :  { %v2666_v50 = vmul.f32 %v2665_v36, %v5968_v37 }
0x1394   :  { %2669 = vperm.xlu0 %4483, %v2666_v50  }
0x1413   :  { %v2670_v54 = vpop.permute.xlu0 %2669 }
0x1414   :  { %v2674_v59 = vrot.slane %v2670_v54, %v5379_v51  ;;  %v2678_v41 = vrot.slane %v2670_v54, %v5511_v61  ;;  %v2682_v42 = vrot.slane %v2670_v54, %v5514_v62  ;;  %v2686_v52 = vrot.slane %v2670_v54, %v5517_v0 }
0x1416   :  { %v2692_v33 = vadd.f32 %v2678_v41, %v5733_v44  ;;  %v2691_v48 = vadd.f32 %v2674_v59, %v5728_v2  ;;  %v2694_v27 = vadd.f32 %v2686_v52, %v5743_v10  ;;  %v2693_v55 = vadd.f32 %v2682_v42, %v5738_v53 }
0x1417   :  { %v2696_v6 = vadd.f32 %v2678_v41, %v5751_v29  ;;  %v2695_v60 = vadd.f32 %v2674_v59, %v5747_v56  ;;  %v2698_v12 = vadd.f32 %v2686_v52, %v5759_v43  ;;  %v2697_v44 = vadd.f32 %v2682_v42, %v5755_v16 }
0x1418   :  { %2814 = vperm.xlu0 %4483, %v2692_v33   ;;  %2811 = vperm.xlu1 %4484, %v2691_v48  }
0x141c   :  { %2820 = vperm.xlu0 %4483, %v2694_v27   ;;  %2817 = vperm.xlu1 %4484, %v2693_v55  }
0x1420   :  { %2954 = vperm.xlu0 %4483, %v2696_v6   ;;  %2951 = vperm.xlu1 %4484, %v2695_v60  }
0x1424   :  { %2960 = vperm.xlu0 %4483, %v2698_v12   ;;  %2957 = vperm.xlu1 %4484, %v2697_v44  }
0x1497   :  { %v2815_v2 = vpop.permute.xlu0 %2814  ;;  %v2812_v17 = vpop.permute.xlu1 %2811 }
0x1498   :  { %v2829_v10 = vrot.slane %v2815_v2, %v5470_v30  ;;  %v2825_v53 = vrot.slane %v2812_v17, %v5470_v30 }
0x149a   :  { %v2838_v8 = vsel %vm844_vm4, %v2829_v10, %v2825_v53 }
0x149b   :  { %v2821_v46 = vpop.permute.xlu0 %2820  ;;  %v2818_v11 = vpop.permute.xlu1 %2817 }
0x149c   :  { %v2837_v29 = vrot.slane %v2821_v46, %v5470_v30  ;;  %v2833_v56 = vrot.slane %v2818_v11, %v5470_v30 }
0x149e   :  { %v2839_v43 = vsel %vm846_vm5, %v2833_v56, %v2838_v8 }
0x149f   :  { %v2955_v20 = vpop.permute.xlu0 %2954  ;;  %v2952_v16 = vpop.permute.xlu1 %2951  ;;  %v2840_v25 = vsel %vm848_vm6, %v2837_v29, %v2839_v43 }
0x14a0   :  { %v2842_v26 = vsel %vm851_vm7, %v2840_v25, -inf  ;;  %v2969_v31 = vrot.slane %v2955_v20, %v5470_v30  ;;  %v2965_v32 = vrot.slane %v2952_v16, %v5470_v30 }
0x14a1   :  { %2843 = vmax.xlane.f32.xlu1 %v2842_v26 }
0x14a2   :  { %v2978_v50 = vsel %vm844_vm4, %v2969_v31, %v2965_v32 }
0x14a3   :  { %v2961_v34 = vpop.permute.xlu0 %2960  ;;  %v2958_v40 = vpop.permute.xlu1 %2957 }
0x14a4   :  { %v2977_v35 = vrot.slane %v2961_v34, %v5470_v30  ;;  %v2973_v36 = vrot.slane %v2958_v40, %v5470_v30 }
0x14a6   :  { %v2979_v54 = vsel %vm846_vm5, %v2973_v36, %v2978_v50 }
0x14a7   :  { %v2980_v59 = vsel %vm848_vm6, %v2977_v35, %v2979_v54 }
0x14a8   :  { %v2982_v41 = vsel %vm851_vm7, %v2980_v59, -inf }
0x14a9   :  { %2983 = vmax.xlane.f32.xlu0 %v2982_v41 }
0x152e   :  { %v2844_v42 = vpop.xlane.xlu1 %2843 }
0x152f   :  { %v2849_v52 = vrot.slane %v2844_v42, %v5379_v51  ;;  %v2853_v2 = vrot.slane %v2844_v42, %v5511_v61  ;;  %v2857_v17 = vrot.slane %v2844_v42, %v5514_v62  ;;  %v2861_v10 = vrot.slane %v2844_v42, %v5517_v0 }
0x1531   :  { %v2866_v53 = vsub.f32 %v2691_v48, %v2849_v52  ;;  %v2867_v46 = vsub.f32 %v2692_v33, %v2853_v2  ;;  %v2869_v11 = vsub.f32 %v2694_v27, %v2861_v10  ;;  %v2868_v29 = vsub.f32 %v2693_v55, %v2857_v17 }
0x1533   :  { %v2870_v56 = vmul.f32 1.442695, %v2866_v53  ;;  %v2872_v8 = vmul.f32 1.442695, %v2867_v46  ;;  %v2876_v43 = vmul.f32 1.442695, %v2869_v11 }
0x1534   :  { %v2874_v20 = vmul.f32 1.442695, %v2868_v29 }
0x1535   :  { %4607 = vpow2.f32 %v2870_v56 }
0x1536   :  { %4609 = vpow2.f32 %v2872_v8  ;;  %v2984_v16 = vpop.xlane.xlu0 %2983 }
0x1537   :  { %v2989_v25 = vrot.slane %v2984_v16, %v5379_v51  ;;  %v2993_v26 = vrot.slane %v2984_v16, %v5511_v61  ;;  %v2997_v31 = vrot.slane %v2984_v16, %v5514_v62  ;;  %v3001_v32 = vrot.slane %v2984_v16, %v5517_v0 }
0x1538   :  { %4611 = vpow2.f32 %v2876_v43 }
0x1539   :  { %v3006_v48 = vsub.f32 %v2695_v60, %v2989_v25  ;;  %v3007_v33 = vsub.f32 %v2696_v6, %v2993_v26  ;;  %v3008_v27 = vsub.f32 %v2697_v44, %v2997_v31  ;;  %4613 = vpow2.f32 %v2874_v20 }
0x153a   :  { %v3009_v55 = vsub.f32 %v2698_v12, %v3001_v32 }
0x153b   :  { %v3010_v34 = vmul.f32 1.442695, %v3006_v48  ;;  %v3012_v40 = vmul.f32 1.442695, %v3007_v33  ;;  %v3014_v35 = vmul.f32 1.442695, %v3008_v27 }
0x153c   :  { %v3016_v36 = vmul.f32 1.442695, %v3009_v55 }
0x153d   :  { %4615 = vpow2.f32 %v3010_v34 }
0x153e   :  { %4617 = vpow2.f32 %v3012_v40 }
0x153f   :  { %v6007_v50 = vpop.eup %4607  ;;  %4619 = vpow2.f32 %v3014_v35  ;;  %v4507_v35 = vld [vmem:[%s6351_s13] sm:$0xff]  }
0x1540   :  { %v6009_v54 = vpop.eup %4609  ;;  %2883 = vperm.xlu0 %4483, %v6007_v50   ;;  %4621 = vpow2.f32 %v3016_v36  ;;  %4382 = vmatpush3.bf16.msra.mxu0 %v4507_v35 }
0x1541   :  { %2886 = vperm.xlu1 %4484, %v6009_v54   ;;  %4383 = vmatprep.subr.bf16.mxu0 %v5042_v1 }
0x1542   :  { %v6013_v6 = vpop.eup %4611 }
0x1543   :  { %v6015_v60 = vpop.eup %4613 }
0x1544   :  { %2892 = vperm.xlu0 %4483, %v6013_v6  }
0x1545   :  { %2889 = vperm.xlu1 %4484, %v6015_v60  }
0x1547   :  { %v6019_v12 = vpop.eup %4615 }
0x1548   :  { %v6021_v44 = vpop.eup %4617 }
0x1549   :  { %3023 = vperm.xlu1 %4484, %v6019_v12   ;;  %3026 = vperm.xlu0 %4483, %v6021_v44   ;;  %v6025_v59 = vpop.eup %4619 }
0x154a   :  { %v6027_v41 = vpop.eup %4621 }
0x154d   :  { %3029 = vperm.xlu1 %4484, %v6025_v59   ;;  %3032 = vperm.xlu0 %4483, %v6027_v41  }
0x15bf   :  { %v2884_v42 = vpop.permute.xlu0 %2883 }
0x15c0   :  { %v2887_v52 = vpop.permute.xlu1 %2886  ;;  %v2897_v17 = vrot.slane %v2884_v42, %v5470_v30 }
0x15c1   :  { %v2901_v2 = vrot.slane %v2887_v52, %v5470_v30 }
0x15c3   :  { %v2893_v10 = vpop.permute.xlu0 %2892  ;;  %v2910_v29 = vsel %vm844_vm4, %v2901_v2, %v2897_v17 }
0x15c4   :  { %v2890_v53 = vpop.permute.xlu1 %2889  ;;  %v2909_v46 = vrot.slane %v2893_v10, %v5470_v30 }
0x15c5   :  { %v2905_v11 = vrot.slane %v2890_v53, %v5470_v30 }
0x15c7   :  { %v2911_v56 = vsel %vm846_vm5, %v2905_v11, %v2910_v29 }
0x15c8   :  { %v3024_v8 = vpop.permute.xlu1 %3023  ;;  %v3027_v43 = vpop.permute.xlu0 %3026  ;;  %v2912_v20 = vsel %vm848_vm6, %v2909_v46, %v2911_v56 }
0x15c9   :  { %v2914_v16 = vsel %vm851_vm7, %v2912_v20, 0.0  ;;  %v3037_v25 = vrot.slane %v3024_v8, %v5470_v30  ;;  %v3041_v26 = vrot.slane %v3027_v43, %v5470_v30 }
0x15ca   :  { %2915 = vadd.xlane.f32.xlu1 %v2914_v16 }
0x15cb   :  { %v3050_v27 = vsel %vm844_vm4, %v3041_v26, %v3037_v25 }
0x15cc   :  { %v3030_v31 = vpop.permute.xlu1 %3029  ;;  %v3033_v32 = vpop.permute.xlu0 %3032 }
0x15cd   :  { %v3045_v48 = vrot.slane %v3030_v31, %v5470_v30  ;;  %v3049_v33 = vrot.slane %v3033_v32, %v5470_v30 }
0x15cf   :  { %v3051_v55 = vsel %vm846_vm5, %v3045_v48, %v3050_v27 }
0x15d0   :  { %v3052_v34 = vsel %vm848_vm6, %v3049_v33, %v3051_v55 }
0x15d1   :  { %v3054_v40 = vsel %vm851_vm7, %v3052_v34, 0.0 }
0x15d2   :  { %3055 = vadd.xlane.f32.xlu0 %v3054_v40 }
0x1657   :  { %v2916_v36 = vpop.xlane.xlu1 %2915 }
0x1658   :  { %v2921_v42 = vrot.slane %v2916_v36, %v5379_v51  ;;  %v2925_v52 = vrot.slane %v2916_v36, %v5511_v61  ;;  %v2929_v2 = vrot.slane %v2916_v36, %v5514_v62  ;;  %v2933_v17 = vrot.slane %v2916_v36, %v5517_v0 }
0x165a   :  { %4623 = vrcp.f32 %v2921_v42 }
0x165b   :  { %4625 = vrcp.f32 %v2925_v52 }
0x165c   :  { %4627 = vrcp.f32 %v2929_v2 }
0x165d   :  { %4629 = vrcp.f32 %v2933_v17 }
0x165f   :  { %v3056_v10 = vpop.xlane.xlu0 %3055 }
0x1660   :  { %v3061_v53 = vrot.slane %v3056_v10, %v5379_v51  ;;  %v3065_v46 = vrot.slane %v3056_v10, %v5511_v61  ;;  %v3069_v11 = vrot.slane %v3056_v10, %v5514_v62  ;;  %v3073_v29 = vrot.slane %v3056_v10, %v5517_v0 }
0x1662   :  { %4631 = vrcp.f32 %v3061_v53 }
0x1663   :  { %4633 = vrcp.f32 %v3065_v46 }
0x1664   :  { %v4624_v56 = vpop.eup %4623  ;;  %4635 = vrcp.f32 %v3069_v11 }
0x1665   :  { %v4626_v8 = vpop.eup %4625  ;;  %4637 = vrcp.f32 %v3073_v29  ;;  %v2939_v43 = vmul.f32 %v4624_v56, %v6007_v50 }
0x1666   :  { %v4628_v20 = vpop.eup %4627  ;;  %v2941_v16 = vmul.f32 %v4626_v8, %v6009_v54  ;;  %v4508_v54 = vld [vmem:[%s6351_s13 + $0x8] sm:$0xff]  }
0x1667   :  { %v4630_v25 = vpop.eup %4629  ;;  %v3086_v26 = vpack.c.bf16 %v2939_v43, %v2939_v43  ;;  %v2943_v31 = vmul.f32 %v4628_v20, %v6015_v60  ;;  %v2703_v60 = vpack.c.bf16 %v5951_v58, %v5951_v58  ;;  %4384 = vmatpush3.bf16.msra.mxu0 %v4508_v54  ;;  %v4510_v54 = vld [vmem:[#allocation18 + $0x8] sm:$0xff]  }
0x1668   :  { %v3087_v61 = vpack.c.bf16 %v2941_v16, %v2941_v16  ;;  %v2945_v0 = vmul.f32 %v4630_v25, %v6013_v6  ;;  %4389 = vmatprep.subr.bf16.mxu0 %v5042_v1 }
0x1669   :  { %v3091_v32 = vunpack.c.l.b16 %v3086_v26  ;;  %v3088_v62 = vpack.c.bf16 %v2943_v31, %v2943_v31 }
0x166a   :  { %v3144_v48 = vunpack.c.l.b16 %v3087_v61  ;;  %v3089_v40 = vpack.c.bf16 %v2945_v0, %v2945_v0 }
0x166b   :  { %3093 = vperm.xlu0 %4483, %v3091_v32   ;;  %v3197_v55 = vunpack.c.l.b16 %v3088_v62 }
0x166c   :  { %v4632_v33 = vpop.eup %4631  ;;  %3146 = vperm.xlu1 %4484, %v3144_v48   ;;  %v3250_v2 = vunpack.c.l.b16 %v3089_v40 }
0x166d   :  { %v4634_v27 = vpop.eup %4633  ;;  %v3079_v50 = vmul.f32 %v4632_v33, %v6019_v12 }
0x166e   :  { %v4636_v34 = vpop.eup %4635  ;;  %v3081_v35 = vmul.f32 %v4634_v27, %v6021_v44 }
0x166f   :  { %v4638_v36 = vpop.eup %4637  ;;  %3199 = vperm.xlu0 %4483, %v3197_v55   ;;  %v3302_v6 = vpack.c.bf16 %v3079_v50, %v3079_v50  ;;  %v3083_v42 = vmul.f32 %v4636_v34, %v6025_v59  ;;  %v4509_v50 = vld [vmem:[#allocation18] sm:$0xff]  }
0x1670   :  { %2705 = vrot.lane.b32.xlu1 %v2703_v60, %s6380_s0  ;;  %v3303_v17 = vpack.c.bf16 %v3081_v35, %v3081_v35  ;;  %v3085_v10 = vmul.f32 %v4638_v36, %v6027_v41 }
0x1671   :  { %v3307_v12 = vunpack.c.l.b16 %v3302_v6  ;;  %v3304_v52 = vpack.c.bf16 %v3083_v42, %v3083_v42 }
0x1672   :  { %v3360_v44 = vunpack.c.l.b16 %v3303_v17  ;;  %v3305_v46 = vpack.c.bf16 %v3085_v10, %v3085_v10 }
0x1673   :  { %3309 = vperm.xlu0 %4483, %v3307_v12   ;;  %v3413_v53 = vunpack.c.l.b16 %v3304_v52 }
0x1674   :  { %3252 = vperm.xlu1 %4484, %v3250_v2   ;;  %v3466_v11 = vunpack.c.l.b16 %v3305_v46 }
0x1677   :  { %3415 = vperm.xlu0 %4483, %v3413_v53  }
0x1678   :  { %3362 = vperm.xlu1 %4484, %v3360_v44  }
0x167c   :  { %3468 = vperm.xlu1 %4484, %v3466_v11  }
0x16ea   :  { %v3094_v8 = vpop.permute.xlu0 %3093 }
0x16eb   :  { %v3147_v59 = vpop.permute.xlu1 %3146  ;;  %v3098_v41 = vrot.slane %v3094_v8, %v5470_v30 }
0x16ec   :  { %v3151_v29 = vrot.slane %v3147_v59, %v5470_v30 }
0x16ed   :  { %v3099_v25 = vpack.c.b16 %v3098_v41, %v3098_v41 }
0x16ee   :  { %v3152_v56 = vpack.c.b16 %v3151_v29, %v3151_v29 }
0x16ef   :  { %v2706_v43 = vpop.permute.xlu1 %2705 }
0x16f0   :  { %4386 = vmatmul.mubr.msk.bf16.vlgmr.msra.gmra.mrb[36].mxu0 %vm225_vm1, %v2706_v43  ;;  %4398 = vmatmul.mubr.msk.bf16.vlgmr.msra.gmra.mrb[48].mxu1 %vm1098_vm9, %v3152_v56 }
0x16f1   :  { %4390 = vmatpush3.bf16.msra.mxu0 %v5614_v18  ;;  %4408 = vmatpush3.bf16.msra.mxu1 %v5644_v3  ;;  %v3200_v18 = vpop.permute.xlu0 %3199 }
0x16f2   :  { %4391 = vmatprep.mubr.msk.bf16.mxu0 %vm5043_vm0, %v5042_v1  ;;  %4401 = vmatprep.subr.bf16.mxu0 %v5042_v1  ;;  %v3204_v3 = vrot.slane %v3200_v18, %v5470_v30 }
0x16f3   :  { %v3253_v20 = vpop.permute.xlu1 %3252  ;;  %4409 = vmatprep.mubr.msk.bf16.mxu1 %vm5043_vm0, %v5042_v1  ;;  %4419 = vmatprep.subr.bf16.mxu1 %v5042_v1 }
0x16f4   :  { %v3257_v16 = vrot.slane %v3253_v20, %v5470_v30  ;;  %v3205_v32 = vpack.c.b16 %v3204_v3, %v3204_v3 }
0x16f5   :  { %v3310_v48 = vpop.permute.xlu0 %3309 }
0x16f6   :  { %v3258_v26 = vpack.c.b16 %v3257_v16, %v3257_v16 }
0x16f7   :  { %v3363_v31 = vpop.permute.xlu1 %3362 }
0x16f8   :  { %4392 = vmatmul.mubr.msk.bf16.vlgmr.msra.gmra.mrb[40].mxu0 %vm1098_vm9, %v3099_v25  ;;  %4410 = vmatmul.mubr.msk.bf16.vlgmr.msra.gmra.mrb[52].mxu1 %vm1098_vm9, %v3258_v26  ;;  %v3367_v61 = vrot.slane %v3363_v31, %v5470_v30 }
0x16f9   :  { %4402 = vmatpush3.bf16.msra.mxu0 %v5608_v9  ;;  %4420 = vmatpush3.bf16.msra.mxu1 %v5654_v22  ;;  %v3314_v22 = vrot.slane %v3310_v48, %v5470_v30  ;;  %v3416_v55 = vpop.permute.xlu0 %3415  ;;  %v4512_v48 = vld [vmem:[#allocation18 + $0x18] sm:$0xff]  }
0x16fa   :  { %4403 = vmatprep.mubr.msk.bf16.mxu0 %vm5043_vm0, %v5042_v1  ;;  %4413 = vmatprep.subr.bf16.mxu0 %v5042_v1  ;;  %v3368_v62 = vpack.c.b16 %v3367_v61, %v3367_v61 }
0x16fb   :  { %4421 = vmatprep.mubr.msk.bf16.mxu1 %vm5043_vm0, %v5042_v1  ;;  %4431 = vmatprep.subr.bf16.mxu1 %v5042_v1  ;;  %v3469_v9 = vpop.permute.xlu1 %3468  ;;  %v3315_v33 = vpack.c.b16 %v3314_v22, %v3314_v22 }
0x16fc   :  { %v3473_v0 = vrot.slane %v3469_v9, %v5470_v30 }
0x16fe   :  { %v3474_v27 = vpack.c.b16 %v3473_v0, %v3473_v0 }
0x1700   :  { %4404 = vmatmul.mubr.msk.bf16.vlgmr.msra.gmra.mrb[44].mxu0 %vm1098_vm9, %v3205_v32  ;;  %4422 = vmatmul.mubr.msk.bf16.vlgmr.msra.gmra.mrb[56].mxu1 %vm1098_vm9, %v3368_v62 }
0x1701   :  { %4414 = vmatpush3.bf16.msra.mxu0 %v5637_v57  ;;  %4432 = vmatpush3.bf16.msra.mxu1 %v5667_v23  ;;  %v3420_v57 = vrot.slane %v3416_v55, %v5470_v30 }
0x1702   :  { %4415 = vmatprep.mubr.msk.bf16.mxu0 %vm5043_vm0, %v5042_v1  ;;  %4425 = vmatprep.subr.bf16.mxu0 %v5042_v1 }
0x1703   :  { %4433 = vmatprep.mubr.msk.bf16.mxu1 %vm5043_vm0, %v5042_v1  ;;  %4449 = vmatprep.subr.bf16.mxu1 %v5042_v1  ;;  %v3421_v23 = vpack.c.b16 %v3420_v57, %v3420_v57 }
0x1708   :  { %4416 = vmatmul.mubr.msk.bf16.vlgmr.msra.gmra.mrb[48].mxu0 %vm1098_vm9, %v3315_v33  ;;  %4434 = vmatmul.mubr.msk.bf16.vlgmr.msra.gmra.mrb[60].mxu1 %vm1098_vm9, %v3474_v27 }
0x1709   :  { %4426 = vmatpush3.bf16.msra.mxu0 %v5664_v19  ;;  %4427 = vmatprep.mubr.msk.bf16.mxu0 %vm5043_vm0, %v5042_v1  ;;  %v4511_v19 = vld [vmem:[#allocation18 + $0x10] sm:$0xff]  }
0x170a   :  { %4437 = vmatprep.subr.bf16.mxu0 %v5042_v1  ;;  %4453 = vmatprep.mubr.msk.bf16.mxu1 %vm5043_vm0, %v5042_v1 }
0x1710   :  { %4428 = vmatmul.mubr.msk.bf16.vlgmr.msra.gmra.mrb[52].mxu0 %vm1098_vm9, %v3421_v23 }
0x1711   :  { %4445 = vmatprep.mubr.msk.bf16.mxu0 %vm5043_vm0, %v5042_v1  ;;  %4438 = vmatpush3.bf16.msra.mxu0 %v4509_v50 }
0x1712   :  { %4439 = vmatprep.subr.bf16.mxu0 %v5042_v1 }
0x1715   :  { %4440 = vmatpush3.bf16.msra.mxu0 %v4510_v54 }
0x1716   :  { %4441 = vmatprep.subr.bf16.mxu0 %v5042_v1 }
0x1719   :  { %4442 = vmatpush3.bf16.msra.mxu0 %v4511_v19 }
0x171a   :  { %4443 = vmatprep.subr.bf16.mxu0 %v5042_v1 }
0x171d   :  { %4444 = vmatpush3.bf16.msra.mxu0 %v4512_v48 }
0x17c3   :  { %v6126_v30 = vpop.f32.mrb[36].mxu0  ;;  %v3190_v34 = vpop.f32.mrb[48].mxu1 }
0x17c4   :  { %v4387_v60 = vpop.f32.mrb[37].mxu0  ;;  %v4399_v40 = vpop.f32.mrb[49].mxu1  ;;  %v3522_v12 = vrot.slane %v3190_v34, 7 }
0x17c5   :  { %v2759_v35 = vpop.f32.mrb[38].mxu0  ;;  %v3193_v36 = vpop.f32.mrb[50].mxu1 }
0x17c6   :  { %v4388_v6 = vpop.f32.mrb[39].mxu0  ;;  %v4400_v42 = vpop.f32.mrb[51].mxu1 }
0x17cb   :  { %v3137_v52 = vpop.f32.mrb[40].mxu0  ;;  %v3296_v2 = vpop.f32.mrb[52].mxu1 }
0x17cc   :  { %v3523_v17 = vsel %vm844_vm4, %v3522_v12, %v3137_v52  ;;  %v4393_v10 = vpop.f32.mrb[41].mxu0  ;;  %v4411_v53 = vpop.f32.mrb[53].mxu1  ;;  %v3526_v20 = vrot.slane %v3296_v2, 5 }
0x17cd   :  { %v3140_v44 = vpop.f32.mrb[42].mxu0  ;;  %v3299_v46 = vpop.f32.mrb[54].mxu1 }
0x17ce   :  { %v4394_v11 = vpop.f32.mrb[43].mxu0  ;;  %v4412_v59 = vpop.f32.mrb[55].mxu1 }
0x17d3   :  { %v3243_v29 = vpop.f32.mrb[44].mxu0  ;;  %v3406_v56 = vpop.f32.mrb[56].mxu1 }
0x17d4   :  { %v3524_v8 = vrot.slane %v3243_v29, 6  ;;  %v4405_v43 = vpop.f32.mrb[45].mxu0  ;;  %v4423_v41 = vpop.f32.mrb[57].mxu1  ;;  %v3533_v61 = vrot.slane %v3406_v56, 7 }
0x17d5   :  { %v3246_v16 = vpop.f32.mrb[46].mxu0  ;;  %v3409_v25 = vpop.f32.mrb[58].mxu1 }
0x17d6   :  { %v3525_v26 = vsel %vm846_vm5, %v3524_v8, %v3523_v17  ;;  %v4406_v18 = vpop.f32.mrb[47].mxu0  ;;  %v4424_v31 = vpop.f32.mrb[59].mxu1 }
0x17d7   :  { %v3527_v3 = vsel %vm848_vm6, %v3526_v20, %v3525_v26  ;;  %v2757_v20 = vadd.f32 %v5940_v5, %v6126_v30  ;;  %v4514_v18 = vld [vmem:[%s6351_s13 + $0x8] sm:$0xff]  }
0x17d9   :  { %v2762_v16 = vmax.f32 %v2757_v20, 0.0 }
0x17db   :  { %v3353_v32 = vpop.f32.mrb[48].mxu0  ;;  %v3512_v62 = vpop.f32.mrb[60].mxu1  ;;  %v2763_v25 = vmul.f32 %v5947_v7, %v2762_v16 }
0x17dc   :  { %v3534_v9 = vsel %vm844_vm4, %v3533_v61, %v3353_v32  ;;  %v4417_v22 = vpop.f32.mrb[49].mxu0  ;;  %v4435_v0 = vpop.f32.mrb[61].mxu1  ;;  %v3537_v19 = vrot.slane %v3512_v62, 5 }
0x17dd   :  { %v3356_v33 = vpop.f32.mrb[50].mxu0  ;;  %v3515_v27 = vpop.f32.mrb[62].mxu1  ;;  %v2764_v26 = vsel %vm1677_vm10, %v2763_v25, 0.0  ;;  %v1800_v22 = vsub.f32 1.0, %v5960_v15 }
0x17de   :  { %v4418_v55 = vpop.f32.mrb[51].mxu0  ;;  %v4436_v57 = vpop.f32.mrb[63].mxu1 }
0x17e3   :  { %v3459_v23 = vpop.f32.mrb[52].mxu0 }
0x17e4   :  { %v3535_v50 = vrot.slane %v3459_v23, 6  ;;  %v4429_v54 = vpop.f32.mrb[53].mxu0 }
0x17e5   :  { %v3462_v34 = vpop.f32.mrb[54].mxu0 }
0x17e6   :  { %v3536_v60 = vsel %vm846_vm5, %v3535_v50, %v3534_v9  ;;  %v4430_v40 = vpop.f32.mrb[55].mxu0 }
0x17e7   :  { %v3538_v35 = vsel %vm848_vm6, %v3537_v19, %v3536_v60 }
0x17e8   :  { %3539 = vrot.lane.b32.xlu0 %v3538_v35, %s5044_s12 }
0x185a   :  { %v3540_v36 = vpop.permute.xlu0 %3539 }
0x185b   :  { %v3542_v6 = vsel %vm225_vm1, %v3527_v3, %v3540_v36 }
0x185c   :  { %v3551_v42 = vpack.c.bf16 %v3542_v6, %v3542_v6 }
0x185e   :  { %4446 = vmatmul.mubr.msk.bf16.vlgmr.msra.gmra.mrb[56].mxu0 %vm227_vm2, %v3551_v42 }
0x1931   :  { %v3613_v12 = vpop.f32.mrb[56].mxu0 }
0x1932   :  { %v3614_v52 = vadd.f32 %v3613_v12, %v5708_v21  ;;  %v4447_v2 = vpop.f32.mrb[57].mxu0 }
0x1933   :  { %v3616_v17 = vpop.f32.mrb[58].mxu0 }
0x1934   :  { %4639 = vtanh.f32 %v3614_v52  ;;  %v4448_v10 = vpop.f32.mrb[59].mxu0  ;;  %v4126_v44 = vmul.f32 -1.442695, %v3614_v52 }
0x1936   :  { %4641 = vpow2.f32 %v4126_v44 }
0x193e   :  { %v4640_v53 = vpop.eup %4639 }
0x193f   :  { %3628 = vrot.lane.b32.xlu1 %v4640_v53, %s5044_s12 }
0x1940   :  { %v4642_v46 = vpop.eup %4641 }
0x1941   :  { %v3622_v11 = vadd.f32 1.0, %v4642_v46 }
0x1943   :  { %4643 = vrcp.f32 %v3622_v11 }
0x194d   :  { %v4644_v59 = vpop.eup %4643 }
0x194e   :  { %v3626_v8 = vmul.f32 %v4644_v59, %v5713_v28  ;;  %v4513_v28 = vld [vmem:[%s6351_s13] sm:$0xff]  }
0x194f   :  { %4450 = vmatpush3.bf16.msra.mxu1 %v4513_v28 }
0x1950   :  { %4451 = vmatprep.subr.bf16.mxu1 %v5042_v1 }
0x1953   :  { %4452 = vmatpush3.bf16.msra.mxu1 %v4514_v18 }
0x19b1   :  { %v3629_v29 = vpop.permute.xlu1 %3628 }
0x19b2   :  { %v3631_v56 = vmul.f32 %v4644_v59, %v3629_v29 }
0x19b4   :  { %3633 = vrot.lane.b32.xlu0 %v3631_v56, %s5044_s12 }
0x1a26   :  { %v3634_v21 = vpop.permute.xlu0 %3633 }
0x1a27   :  { %v6141_v43 = vadd.f32 %v3634_v21, %v3626_v8 }
0x1a29   :  { %4645 = vtanh.f32 %v6141_v43 }
0x1a33   :  { %v4646_v41 = vpop.eup %4645 }
0x1a34   :  { %3639 = vrot.lane.b32.xlu1 %v4646_v41, %s5044_s12 }
0x1a58   :  { %2765 = vadd.xlane.f32.xlu1 %v2764_v26 }
0x1aa6   :  { %v3640_v31 = vpop.permute.xlu1 %3639 }
0x1aa7   :  { %v6156_v30 = vmul.f32 %v4644_v59, %v3640_v31 }
0x1aa9   :  { %v3654_v3 = vpack.c.bf16 %v6156_v30, %v6156_v30 }
0x1aab   :  { %3656 = vrot.lane.b32.xlu0 %v3654_v3, %s6380_s0 }
0x1aaf   :  { %1789 = vperm.xlu0 %4483, %v5960_v15  }
0x1ab3   :  { %2652 = vperm.xlu0 %4483, %v5968_v37  }
0x1ae5   :  { %v2766_v61 = vpop.xlane.xlu1 %2765 }
0x1ae6   :  { %v2767_v32 = vadd.f32 %v5957_v14, %v2766_v61 }
0x1ae8   :  { %v4111_v62 = vmul.f32 -1.442695, %v2767_v32 }
0x1aea   :  { %4647 = vpow2.f32 %v4111_v62 }
0x1af4   :  { %v4648_v48 = vpop.eup %4647 }
0x1af5   :  { %v2771_v9 = vadd.f32 1.0, %v4648_v48 }
0x1af7   :  { %4649 = vrcp.f32 %v2771_v9 }
0x1b01   :  { %v4650_v0 = vpop.eup %4649 }
0x1b02   :  { %v2791_v33 = vsub.f32 1.0, %v4650_v0  ;;  %v2775_v27 = vmul.f32 %v4650_v0, %v1800_v22 }
0x1b04   :  { %v2792_v55 = vmul.f32 2.0, %v2791_v33  ;;  %v2776_v57 = vmul.f32 %v5964_v24, %v2775_v27 }
0x1b06   :  { %v2793_v23 = vmul.f32 %v5964_v24, %v2792_v55  ;;  %2780 = vperm.xlu0 %4483, %v2776_v57   ;;  %v6168_v37 = vadd.f32 %v5960_v15, %v2776_v57 }
0x1b08   :  { %v6170_v50 = vadd.f32 %v2793_v23, %v1800_v22  ;;  %vm2795_vm13 = vcmp.lt.f32.partialorder %v6168_v37, 0.9 }
0x1b09   :  { %v4112_v54 = vsel %vm2795_vm13, 1.0, %v5042_v1 }
0x1b0a   :  { %v6175_v19 = vmul.f32 %v4112_v54, %v5964_v24 }
0x1b0c   :  { %v2799_v34 = vsel %vm1805_vm12, %v6175_v19, -inf }
0x1b0d   :  { %v2800_v60 = vrot.slane %v2799_v34, 4 }
0x1b0f   :  { %v2801_v40 = vmax.f32 %v2799_v34, %v2800_v60 }
0x1b11   :  { %v2802_v35 = vrot.slane %v2801_v40, 2 }
0x1b13   :  { %v2803_v36 = vmax.f32 %v2801_v40, %v2802_v35 }
0x1b15   :  { %v2804_v6 = vrot.slane %v2803_v36, 1 }
0x1b17   :  { %v2805_v42 = vmax.f32 %v2803_v36, %v2804_v6 }
0x1b19   :  { %3645 = vperm.xlu0 %4483, %v2805_v42  }
0x1b1d   :  { %v3657_v15 = vpop.permute.xlu0 %3656 }
0x1b1e   :  { %4454 = vmatmul.mubr.msk.bf16.vlgmr.msra.gmra.mrb[64].mxu1 %vm225_vm1, %v3657_v15 }
0x1b2e   :  { %v1790_v12 = vpop.permute.xlu0 %1789 }
0x1b2f   :  { %v1792_v2 = vmul.f32 %v1790_v12, %v5374_v49  ;;  %v1794_v24 = vmul.f32 %v1790_v12, %v5360_v39  ;;  %v1796_v17 = vmul.f32 %v1790_v12, %v5720_v63  ;;  %v1798_v10 = vmul.f32 %v1790_v12, %v5716_v38 }
0x1b32   :  { %v2653_v52 = vpop.permute.xlu0 %2652 }
0x1b33   :  { %v2655_v41 = vmul.f32 %v2653_v52, %v5951_v58 }
0x1b35   :  { %v2656_v20 = vadd.f32 %v2655_v41, %v5720_v63 }
0x1b85   :  { %v2781_v53 = vpop.permute.xlu0 %2780 }
0x1b86   :  { %v2783_v44 = vmul.f32 %v2781_v53, %v5374_v49  ;;  %v2785_v46 = vmul.f32 %v2781_v53, %v5360_v39  ;;  %v2787_v11 = vmul.f32 %v2781_v53, %v5951_v58  ;;  %v2789_v59 = vmul.f32 %v2781_v53, %v5933_v4 }
0x1b88   :  { %v6188_v29 = vadd.f32 %v2783_v44, %v1792_v2  ;;  %v6190_v56 = vadd.f32 %v2785_v46, %v1794_v24  ;;  %v6192_v8 = vadd.f32 %v2787_v11, %v1796_v17  ;;  %v6194_v21 = vadd.f32 %v2789_v59, %v1798_v10 }
0x1b98   :  { %v3646_v38 = vpop.permute.xlu0 %3645 }
0x1b99   :  { %v3648_v16 = vmul.f32 %v3646_v38, %v6156_v30 }
0x1b9b   :  { %v3649_v25 = vadd.f32 %v3648_v16, %v2656_v20 }
0x1b9d   :  { %v3780_v26 = vmul.f32 0.1, %v3649_v25 }
0x1b9f   :  { %v3788_v28 = vrot.slane %v3780_v26, %v5372_v47 }
0x1ba1   :  { %v3796_v4 = vrot.slane %v3788_v28, %v5372_v47  ;;  %v3789_v9 = vcombine.high %v3788_v28, %v3788_v28 }
0x1ba3   :  { %v3809_v18 = vrot.slane %v3796_v4, %v5379_v51  ;;  %v3803_v22 = vrot.slane %v3789_v9, %v5372_v47  ;;  %v3804_v40 = vcombine.high %v3796_v4, %v3796_v4 }
0x1ba5   :  { %3822 = vrot.lane.b32.xlu1 %v3809_v18, %s6380_s0  ;;  %v3813_v0 = vrot.slane %v3803_v22, %v5379_v51  ;;  %v3817_v6 = vrot.slane %v3804_v40, %v5379_v51  ;;  %v3805_v42 = vcombine.high %v3803_v22, %v3803_v22 }
0x1bf1   :  { %v3707_v31 = vpop.f32.mrb[64].mxu1 }
0x1bf2   :  { %v3708_v3 = vadd.f32 %v5940_v5, %v3707_v31  ;;  %v4455_v61 = vpop.f32.mrb[65].mxu1 }
0x1bf3   :  { %v3710_v58 = vpop.f32.mrb[66].mxu1 }
0x1bf4   :  { %v3713_v32 = vmax.f32 %v3708_v3, 0.0  ;;  %v4456_v62 = vpop.f32.mrb[67].mxu1 }
0x1bf6   :  { %v3714_v63 = vmul.f32 %v5947_v7, %v3713_v32  ;;  %v3725_v7 = vsub.f32 1.0, %v6168_v37 }
0x1bf8   :  { %v3715_v48 = vsel %vm1677_vm10, %v3714_v63, 0.0 }
0x1bf9   :  { %3716 = vadd.xlane.f32.xlu0 %v3715_v48 }
0x1c0f   :  { %3824 = vrot.lane.b32.xlu0 %v3813_v0, %s6380_s0 }
0x1c86   :  { %v3717_v33 = vpop.xlane.xlu0 %3716 }
0x1c87   :  { %v3718_v27 = vadd.f32 %v5957_v14, %v3717_v33 }
0x1c89   :  { %v4130_v5 = vmul.f32 -1.442695, %v3718_v27 }
0x1c8a   :  { %v3825_v2 = vpop.permute.xlu0 %3824 }
0x1c8b   :  { %4651 = vpow2.f32 %v4130_v5 }
0x1c95   :  { %v4652_v55 = vpop.eup %4651 }
0x1c96   :  { %v3722_v57 = vadd.f32 1.0, %v4652_v55 }
0x1c98   :  { %4653 = vrcp.f32 %v3722_v57 }
0x1ca2   :  { %v4654_v23 = vpop.eup %4653 }
0x1ca3   :  { %v3742_v54 = vsub.f32 1.0, %v4654_v23  ;;  %v3726_v34 = vmul.f32 %v4654_v23, %v3725_v7 }
0x1ca5   :  { %v3743_v60 = vmul.f32 3.0, %v3742_v54  ;;  %v3727_v47 = vmul.f32 %v3726_v34, %v6175_v19 }
0x1ca7   :  { %v3744_v35 = vmul.f32 %v3743_v60, %v6175_v19  ;;  %3731 = vperm.xlu1 %4484, %v3727_v47   ;;  %v3728_v36 = vadd.f32 %v3727_v47, %v6168_v37  ;;  %v3821_v19 = vrot.slane %v3805_v42, %v5379_v51  ;;  %v3823_v37 = vpop.permute.xlu1 %3822 }
0x1ca9   :  { %v3745_v14 = vadd.f32 %v3744_v35, %v6170_v50  ;;  %4655 = vrcp.f32 %v3728_v36  ;;  %v5049_v50 = vmov 1983009808  }
0x1caa   :  { %v3837_v52 = vunpack.c.l.s4 %v5049_v50 }
0x1cab   :  { %3758 = vst.msk [vmem:[%s6358_s20] sm:$0xf] %vm1805_vm12, %v3745_v14  ;;  %3826 = vrot.lane.b32.xlu1 %v3817_v6, %s6380_s0  ;;  %s5050_s20 = smov [#allocation21]  }
0x1cac   :  { %v3838_v24 = vunpack.c.0.s8 %v3837_v52 }
0x1cae   :  { %v3841_v53 = vsub.s32 %v3838_v24, %v5367_v45 }
0x1cb3   :  { %v4656_v15 = vpop.eup %4655 }
0x1cb4   :  { %3749 = vperm.xlu0 %4483, %v4656_v15  }
0x1cb8   :  { %3828 = vrot.lane.b32.xlu0 %v3821_v19, %s6380_s0 }
0x1d26   :  { %v3732_v12 = vpop.permute.xlu1 %3731 }
0x1d27   :  { %v3738_v61 = vmul.f32 %v3732_v12, %v6156_v30  ;;  %v3734_v63 = vmul.f32 %v3732_v12, %v5374_v49  ;;  %v3736_v30 = vmul.f32 %v3732_v12, %v5360_v39  ;;  %v3740_v33 = vmul.f32 %v3732_v12, %v6141_v43 }
0x1d29   :  { %v3739_v9 = vadd.f32 %v3738_v61, %v6192_v8  ;;  %v3735_v22 = vadd.f32 %v3734_v63, %v6188_v29  ;;  %v3737_v49 = vadd.f32 %v3736_v30, %v6190_v56 }
0x1d2a   :  { %v3827_v17 = vpop.permute.xlu1 %3826 }
0x1d2b   :  { %v3834_v44 = vcombine.low %v3823_v37, %v3827_v17  ;;  %v3835_v46 = vcombine.high %v3823_v37, %v3827_v17 }
0x1d2d   :  { %v3842_v38 = vrot.slane %v3834_v44, %v3841_v53  ;;  %v3849_v20 = vrot.slane %v3835_v46, %v3841_v53 }
0x1d33   :  { %v3750_v10 = vpop.permute.xlu0 %3749 }
0x1d34   :  { %v3759_v0 = vmul.f32 %v3750_v10, %v3735_v22  ;;  %v3767_v27 = vmul.f32 %v3750_v10, %v3737_v49 }
0x1d37   :  { %v3829_v11 = vpop.permute.xlu0 %3828 }
0x1d38   :  { %v3850_v59 = vcombine.low %v3825_v2, %v3829_v11  ;;  %v3851_v41 = vcombine.high %v3825_v2, %v3829_v11 }
0x1d3a   :  { %v3858_v51 = vrot.slane %v3850_v59, %v3841_v53  ;;  %v3865_v16 = vrot.slane %v3851_v41, %v3841_v53 }
0x1d3c   :  { %v3866_v25 = vcombine.low %v3842_v38, %v3858_v51  ;;  %v3867_v26 = vcombine.high %v3842_v38, %v3858_v51  ;;  %v3882_v28 = vcombine.low %v3849_v20, %v3865_v16  ;;  %v3883_v18 = vcombine.high %v3849_v20, %v3865_v16 }
0x1d3e   :  { %v6225_v4 = vrot.slane %v3866_v25, %v5405_v13  ;;  %v6228_v31 = vrot.slane %v3882_v28, %v5405_v13  ;;  %v3881_v45 = vrot.slane %v3867_v26, %v5405_v13  ;;  %v3897_v58 = vrot.slane %v3883_v18, %v5405_v13 }
0x1d3f   :  { %v3752_v13 = vmul.f32 %v3750_v10, %v3739_v9 }
0x1d40   :  { %3907 = vrot.lane.b32.xlu0 %v3881_v45, %s6380_s0  ;;  %v3898_v3 = vcombine.high %v6225_v4, %v5042_v1  ;;  %v3900_v32 = vcombine.high %v6228_v31, %v5042_v1  ;;  %v3899_v62 = vcombine.high %v3881_v45, %v5042_v1  ;;  %v3901_v48 = vcombine.high %v3897_v58, %v5042_v1 }
0x1d41   :  { %v3741_v1 = vadd.f32 %v3740_v33, %v6194_v21 }
0x1d42   :  { %3903 = vrot.lane.b32.xlu1 %v3898_v3, %s5044_s12 }
0x1d43   :  { %v3773_v8 = vmul.f32 %v3750_v10, %v3741_v1 }
0x1d44   :  { %3915 = vrot.lane.b32.xlu0 %v3900_v32, %s5044_s12  ;;  %s3980_s12 = sshll.u32 %s5050_s20, 4  ;;  %s3981_s12 = int_to_ptr.vmem [resolvable:$true] %s3980_s12 }
0x1d45   :  { %s4901_s3 = scalar_lea.vmem %s3981_s12, 64  ;;  %p4906_p5 = scmp.lt.s32.totalorder %s3981_s12, %s3981_s12 }
0x1d46   :  { %3911 = vrot.lane.b32.xlu1 %v3899_v62, %s5045_s29  ;;  %p4902_p4 = scmp.ne.s32.totalorder %s3981_s12, %s4901_s3  ;;  %p4907_p6 = scmp.lt.s32.totalorder %s4901_s3, %s4901_s3 }
0x1d48   :  { %3923 = vrot.lane.b32.xlu0 %v3901_v48, %s5045_s29  ;;  %p4908_p7 = por %p4907_p6, %p4906_p5 }
0x1d4a   :  { %3754 = vrot.lane.b32.xlu1 %v3752_v13, %s6380_s0  ;;  %p4909_p8 = pnand %p4908_p7, %p4902_p4 }
0x1d4e   :  { %3761 = vrot.lane.b32.xlu1 %v3759_v0, %s6380_s0 }
0x1d52   :  { %3769 = vrot.lane.b32.xlu1 %v3767_v27, %s5045_s29 }
0x1d56   :  { %3775 = vrot.lane.b32.xlu1 %v3773_v8, %s5045_s29 }
0x1d5a   :  { %3919 = vrot.lane.b32.xlu1 %v3897_v58, %s6380_s0 }
0x1db4   :  { %v3904_v39 = vpop.permute.xlu1 %3903 }
0x1db8   :  { %v6256_v5 = vpop.permute.xlu1 %3911 }
0x1dbc   :  { %v3755_v43 = vpop.permute.xlu1 %3754 }
0x1dbd   :  { %3766 = vst.msk [vmem:[#allocation25 + $0x4] sm:$0xf] %vm1677_vm10, %v3755_v43  ;;  %3757 = vst.msk [vmem:[#allocation21] sm:$0xf] %vm1677_vm10, %v3755_v43 }
0x1dbe   :  { %4912 = shalt.err (!%p4909_p8)
}
0x1dbf   :  { %s4913_s28 = scalar_lea.hbm %s6355_s17, 64 }
0x1dc0   :  { %p4914_p9 = scmp.ne.s32.totalorder %s6355_s17, %s4913_s28  ;;  %p4917_p10 = scmp.lt.u32.totalorder %s4913_s28, %s6355_s17 }
0x1dc2   :  { %p4919_p11 = pnand %p4917_p10, %p4914_p9 }
0x1dc4   :  { %4922 = shalt.err (!%p4919_p11)
}
0x1dc5   :  { %3983 = dma.vmem_to_hbm [thread:$0]  %s3981_s12, 64, %s6355_s17, [#allocation5]   ;;  %v3762_v29 = vpop.permute.xlu1 %3761  ;;  %v3908_v56 = vpop.permute.xlu0 %3907 }
0x1dc6   :  { %3764 = vst.msk [vmem:[#allocation25] sm:$0xf] %vm1677_vm10, %v3762_v29  ;;  %s4923_s14 = scalar_lea.vmem %s4012_s6, 128  ;;  %p4928_p13 = scmp.lt.s32.totalorder %s4012_s6, %s4012_s6 }
0x1dc7   :  { %p4924_p12 = scmp.ne.s32.totalorder %s4012_s6, %s4923_s14  ;;  %p4929_p0 = scmp.lt.s32.totalorder %s4923_s14, %s4923_s14 }
0x1dc9   :  { %p4930_p1 = por %p4929_p0, %p4928_p13 }
0x1dcb   :  { %p4931_p2 = pnand %p4930_p1, %p4924_p12 }
0x1dcd   :  { %4934 = shalt.err (!%p4931_p2)
}
0x1dce   :  { %s4935_s5 = scalar_lea.hbm %s6359_s21, 128 }
0x1dcf   :  { %p4936_p3 = scmp.ne.s32.totalorder %s6359_s21, %s4935_s5  ;;  %p4939_p4 = scmp.lt.u32.totalorder %s4935_s5, %s6359_s21 }
0x1dd1   :  { %p4941_p5 = pnand %p4939_p4, %p4936_p3 }
0x1dd3   :  { %4944 = shalt.err (!%p4941_p5)
}
0x1dd4   :  { %4017 = dma.vmem_to_hbm [thread:$0]  %s4012_s6, 128, %s6359_s21, [#allocation26], %s6380_s0, %s6380_s0, %s5033_s26   ;;  %v3770_v21 = vpop.permute.xlu1 %3769  ;;  %v3916_v55 = vpop.permute.xlu0 %3915  ;;  %v3926_v7 = vsel %vm225_vm1, %v6225_v4, %v3904_v39 }
0x1dd5   :  { %s5052_s11 = smov [#allocation27]   ;;  %3772 = vst.msk [vmem:[#allocation27] sm:$0xf] %vm1677_vm10, %v3770_v21 }
0x1dd6   :  { %s4023_s20 = sshll.u32 %s5052_s11, 4  ;;  %s4024_s20 = int_to_ptr.vmem [resolvable:$true] %s4023_s20 }
0x1dd7   :  { %s4945_s12 = scalar_lea.vmem %s4024_s20, 128  ;;  %p4950_p7 = scmp.lt.s32.totalorder %s4024_s20, %s4024_s20 }
0x1dd8   :  { %v3776_v57 = vpop.permute.xlu1 %3775  ;;  %p4946_p6 = scmp.ne.s32.totalorder %s4024_s20, %s4945_s12  ;;  %p4951_p8 = scmp.lt.s32.totalorder %s4945_s12, %s4945_s12 }
0x1dd9   :  { %3779 = vst.msk [vmem:[#allocation27 + $0x4] sm:$0xf] %vm1677_vm10, %v3776_v57 }
0x1dda   :  { %p4952_p9 = por %p4951_p8, %p4950_p7 }
0x1ddc   :  { %p4953_p10 = pnand %p4952_p9, %p4946_p6 }
0x1dde   :  { %4956 = shalt.err (!%p4953_p10)
}
0x1ddf   :  { %s4957_s6 = scalar_lea.hbm %s6360_s22, 128 }
0x1de0   :  { %p4958_p11 = scmp.ne.s32.totalorder %s6360_s22, %s4957_s6  ;;  %p4961_p12 = scmp.lt.u32.totalorder %s4957_s6, %s6360_s22 }
0x1de2   :  { %p4963_p13 = pnand %p4961_p12, %p4958_p11 }
0x1de4   :  { %4966 = shalt.err (!%p4963_p13)
}
0x1de5   :  { %4029 = dma.vmem_to_hbm [thread:$0]  %s4024_s20, 128, %s6360_s22, [#allocation26], %s6380_s0, %s6380_s0, %s5033_s26   ;;  %v3929_v23 = vsel %vm225_vm1, %v6228_v31, %v3916_v55  ;;  %v3920_v54 = vpop.permute.xlu1 %3919  ;;  %v3927_v34 = vsel %vm227_vm2, %v3926_v7, %v3908_v56  ;;  %v3924_v60 = vpop.permute.xlu0 %3923  ;;  %v4657_v47 = vld [vmem:[#allocation12] sm:$0xf]  ;;  %v4658_v36 = vld [vmem:[#allocation11] sm:$0xf] }
0x1de6   :  { %v3955_v40 = vunpack.c.l.bf16 %v4657_v47  ;;  %v3930_v35 = vsel %vm227_vm2, %v3929_v23, %v3920_v54  ;;  %v3932_v14 = vunpack.c.l.bf16 %v4658_v36  ;;  %v3928_v6 = vsel %vm229_vm3, %v3927_v34, %v6256_v5  ;;  %s5053_s22 = smov [#allocation22]   ;;  %s5054_s0 = smov [#allocation24]  }
0x1de7   :  { %v3931_v42 = vsel %vm229_vm3, %v3930_v35, %v3924_v60  ;;  %s3990_s26 = sshll.u32 %s5053_s22, 4  ;;  %s4000_s30 = sshll.u32 %s5054_s0, 4  ;;  %s3991_s26 = int_to_ptr.vmem [resolvable:$true] %s3990_s26  ;;  %s4001_s30 = int_to_ptr.vmem [resolvable:$true] %s4000_s30 }
0x1de8   :  { %v3935_v15 = vcombine.low %v3928_v6, %v3931_v42  ;;  %s4967_s23 = scalar_lea.vmem %s3991_s26, 64  ;;  %p4972_p1 = scmp.lt.s32.totalorder %s3991_s26, %s3991_s26 }
0x1de9   :  { %p4968_p0 = scmp.ne.s32.totalorder %s3991_s26, %s4967_s23  ;;  %p4973_p2 = scmp.lt.s32.totalorder %s4967_s23, %s4967_s23 }
0x1dea   :  { %v3956_v19 = vadd.f32 %v3955_v40, %v3935_v15  ;;  %v3937_v37 = vadd.f32 %v3935_v15, %v3932_v14 }
0x1deb   :  { %p4974_p3 = por %p4973_p2, %p4972_p1 }
0x1dec   :  { %v3939_v12 = vcombine.high %v3937_v37, %v3937_v37  ;;  %v3958_v50 = vcombine.high %v3956_v19, %v3956_v19 }
0x1ded   :  { %p4975_p4 = pnand %p4974_p3, %p4968_p0 }
0x1dee   :  { %v4131_v52 = vpack.c.bf16 %v3939_v12, %v3937_v37  ;;  %v4133_v2 = vpack.c.bf16 %v3958_v50, %v3956_v19 }
0x1df0   :  { %4132 = vst.sshfl [vmem:[#allocation22] sm:$0x33 pattern:$0x76325410] %v4131_v52 }
0x1df1   :  { %4134 = vst.sshfl [vmem:[#allocation24] sm:$0x33 pattern:$0x76325410] %v4133_v2 }
0x1df2   :  { %4978 = shalt.err (!%p4975_p4)
}
0x1df3   :  { %s4979_s14 = scalar_lea.hbm %s6356_s18, 64 }
0x1df4   :  { %p4980_p5 = scmp.ne.s32.totalorder %s6356_s18, %s4979_s14  ;;  %p4983_p6 = scmp.lt.u32.totalorder %s4979_s14, %s6356_s18 }
0x1df6   :  { %p4985_p7 = pnand %p4983_p6, %p4980_p5 }
0x1df8   :  { %4988 = shalt.err (!%p4985_p7)
}
0x1df9   :  { %3993 = dma.vmem_to_hbm [thread:$0]  %s3991_s26, 64, %s6356_s18, [#allocation23]  }
0x1dfa   :  { %s4989_s4 = scalar_lea.vmem %s4001_s30, 64  ;;  %p4994_p9 = scmp.lt.s32.totalorder %s4001_s30, %s4001_s30 }
0x1dfb   :  { %p4990_p8 = scmp.ne.s32.totalorder %s4001_s30, %s4989_s4  ;;  %p4995_p10 = scmp.lt.s32.totalorder %s4989_s4, %s4989_s4 }
0x1dfd   :  { %p4996_p11 = por %p4995_p10, %p4994_p9 }
0x1dff   :  { %p4997_p12 = pnand %p4996_p11, %p4990_p8 }
0x1e01   :  { %5000 = shalt.err (!%p4997_p12)
}
0x1e02   :  { %s5001_s11 = scalar_lea.hbm %s6357_s19, 64 }
0x1e03   :  { %p5002_p13 = scmp.ne.s32.totalorder %s6357_s19, %s5001_s11  ;;  %p5005_p0 = scmp.lt.u32.totalorder %s5001_s11, %s6357_s19 }
0x1e05   :  { %p5007_p1 = pnand %p5005_p0, %p5002_p13 }
0x1e07   :  { %5010 = shalt.err (!%p5007_p1)
}
0x1e08   :  { %4003 = dma.vmem_to_hbm [thread:$0]  %s4001_s30, 64, %s6357_s19, [#allocation23]  }
0x1e09   :  { %5023 = dma.done.wait [#allocation5], 64  }
0x1e0a   :  { %5024 = vsyncadd [#allocation5], 4294967232 }
0x1e0b   :  { %5025 = dma.done.wait [#allocation23], 128  }
0x1e0c   :  { %5026 = vsyncadd [#allocation23], 4294967168 }
0x1e0d   :  { %5027 = dma.done.wait [#allocation26], 256  }
0x1e0e   :  { %5028 = vsyncadd [#allocation26], 4294967040 }
0x1e0f   :  { %4047 = vsyncpa [#allocation4], 1 }
0x1e10   :  { %4048 = vsyncpa [#allocation7], 1 }
0x1e11   :  { %4049 = vsyncpa [#allocation10], 1 }
0x1e12   :  { %4050 = vsyncpa [#allocation13], 1 }
0x1e13   :  { %4051 = vsyncpa [#allocation16], 1 }
0x1e14   :  { %4052 = vsyncpa [#allocation19], 1 }
0x1e15   :  { %4053 = vsyncpa [#allocation5], 1 }
0x1e16   :  { %4054 = vsyncpa [#allocation23], 1 }
0x1e17   :  { %4055 = vsyncpa [#allocation26], 1 }

</bundles_post_ra>
